<compile_context>
chip_gen: v5e
topology: v5e:2x2
jax: 0.10.0
libtpu: 0.0.40
codegen_flags: <defaults>
</compile_context>

<pallas_src>
import numpy as np
import jax
import jax.numpy as jnp
from jax.experimental import pallas as pl
from jax.experimental.pallas import tpu as pltpu

# ----------------------------- static configuration -----------------------------
B      = 2            # batch
N_IN   = 200          # input spectrum length
K1, C1 = 5, 128       # conv1 kernel / out-channels
K2, C2 = 10, 64       # conv2 kernel / out-channels
POOL1  = 5
POOL2  = 10
PAD1   = K1 // 2                       # 2
PAD2   = K2 // 2                       # 5
L1     = N_IN // POOL1                 # 40  (length after pool1)
L2C    = L1 + 2 * PAD2 - K2 + 1        # 41  (length after conv2)
L2     = L1 // POOL2                   # 4   (length after pool2)
N_FEAT = C2 * L2                       # 256 (== filters[-1] * n_in//5//10)
EPS    = 1e-5
H1, H2, H3 = 128, 64, 32               # MLP hidden sizes
LANES  = 128

# packed constant array layout (rows of a (PACK_ROWS, 128) f32 array)
OFF_W1  = 0                            # rows 0..4   : conv1 weight (K1, 128)
OFF_FW1 = 8                            # rows 8..263 : MLP layer-1 weight (256, 128)
OFF_MLP = OFF_FW1 + N_FEAT             # 264
OFF_FW2 = OFF_MLP                      # rows 264..391
OFF_FW3 = OFF_MLP + H1                 # rows 392..455
OFF_FW4 = OFF_MLP + H1 + H2            # rows 456..487
OFF_VEC = OFF_MLP + H1 + H2 + H3       # rows 488..496 : bias / PReLU-slope table
PACK_ROWS = 504

# rows of the per-channel vector table inside the pack (biases / PReLU slopes)
R_A1, R_A2 = 0, 1
R_FB1, R_FA1 = 2, 3
R_FB2, R_FA2 = 4, 5
R_FB3, R_FA3 = 6, 7
R_FB4 = 8


# ----------------------------- the fused kernel ----------------------------------
def rv_fused_kernel(xt_ref, w2im_ref, pack_ref, out_ref, *scr):
    f32 = jnp.float32
    xb    = scr[0:B]            # per-batch (204, 128) broadcast-input buffers
    hbuf  = scr[B:2 * B]        # per-batch (200, 128) activations / pool staging
    hp    = scr[2 * B:3 * B]    # per-batch (50, 128)  length-padded pool1 output
    col   = scr[3 * B:4 * B]    # per-batch (41, 1280) conv2 im2col buffers
    feat_scr = scr[4 * B]       # (B, 256) flattened softmax features

    a1 = pack_ref[OFF_VEC + R_A1:OFF_VEC + R_A1 + 1, :]          # (1, 128) PReLU slope 1
    a2 = pack_ref[OFF_VEC + R_A2:OFF_VEC + R_A2 + 1, 0:C2]       # (1, 64)  PReLU slope 2
    zpad = jnp.zeros((PAD2, C1), f32)

    for b in range(B):
        # ---- conv1 (1->128, k=5, pad=2) on the VPU ----------------------------
        # Lane-broadcast the spectrum once; the 5 taps become sublane-shifted
        # loads.  Conv bias dropped: affine-free InstanceNorm cancels it.
        xb[b][...] = jnp.broadcast_to(xt_ref[0:N_IN + 2 * PAD1, b:b + 1],
                                      (N_IN + 2 * PAD1, C1))
        h = xb[b][0:N_IN, :] * pack_ref[OFF_W1:OFF_W1 + 1, :]
        for k in range(1, K1):
            h = h + xb[b][k:k + N_IN, :] * pack_ref[OFF_W1 + k:OFF_W1 + k + 1, :]

        # InstanceNorm1d (biased variance, eps=1e-5), single-pass stats.
        s = jnp.sum(h, axis=0, keepdims=True)
        sq = jnp.sum(h * h, axis=0, keepdims=True)
        mu = s * (1.0 / N_IN)
        var = sq * (1.0 / N_IN) - mu * mu
        h = (h - mu) * jax.lax.rsqrt(var + EPS)
        h = jnp.where(h > 0, h, a1 * h)                                   # PReLU(128)

        # MaxPool1d(5): strided sublane gathers + running max.
        hbuf[b][...] = h
        p1 = hbuf[b][pl.ds(0, L1, stride=POOL1), :]
        for j in range(1, POOL1):
            p1 = jnp.maximum(p1, hbuf[b][pl.ds(j, L1, stride=POOL1), :])  # (40, 128)

        # conv2 im2col: zero only the 2*PAD2 pad rows, place the data rows, then
        # copy the K2 shifted windows as lane-aligned 128-wide column blocks.
        hp[b][0:PAD2, :] = zpad
        hp[b][PAD2 + L1:PAD2 + L1 + PAD2, :] = zpad
        hp[b][PAD2:PAD2 + L1, :] = p1                                     # (50, 128)
        for k in range(K2):
            col[b][0:L2C, k * C1:(k + 1) * C1] = hp[b][k:k + L2C, :]

        # ---- conv2 (128->64, k=10, pad=5): per-batch deep-K matmul -------------
        # Issued inside the batch loop so this batch's MXU work overlaps the
        # other batch's VPU/XLU work (the batch chains share no scratch).
        pre = jnp.dot(col[b][...], w2im_ref[...],
                      preferred_element_type=f32)                         # (41, 64)

        s = jnp.sum(pre, axis=0, keepdims=True)
        sq = jnp.sum(pre * pre, axis=0, keepdims=True)
        mu = s * (1.0 / L2C)
        var = sq * (1.0 / L2C) - mu * mu
        # only the 40 rows that survive MaxPool1d(10) need normalizing.
        hn = (pre[0:L2 * POOL2, :] - mu) * jax.lax.rsqrt(var + EPS)
        hn = jnp.where(hn > 0, hn, a2 * hn)                               # PReLU(64)

        # MaxPool1d(10): strided sublane gathers + running max (reuse hbuf[b];
        # the WAR on hbuf[b] is already implied by the RAW chain within batch b).
        hbuf[b][0:L2 * POOL2, 0:C2] = hn
        p2 = hbuf[b][pl.ds(0, L2, stride=POOL2), 0:C2]
        for j in range(1, POOL2):
            p2 = jnp.maximum(p2, hbuf[b][pl.ds(j, L2, stride=POOL2), 0:C2])  # (4, 64)

        # Softmax over the length axis (== PyTorch dim=-1 of (B, C2, L2)).
        m = jnp.max(p2, axis=0, keepdims=True)
        e = jnp.exp(p2 - m)
        sm = e * pl.reciprocal(jnp.sum(e, axis=0, keepdims=True))         # (4, 64)

        # Length-major flatten (matches the pre-permuted fw1p row order): write
        # the L2 softmax rows as 64-lane blocks of feature row b.
        for l in range(L2):
            feat_scr[b:b + 1, l * C2:(l + 1) * C2] = sm[l:l + 1, :]

    # ---- MLP 256 -> 128 -> 64 -> 32 -> 1, batch folded into M -------------------
    fb1 = pack_ref[OFF_VEC + R_FB1:OFF_VEC + R_FB1 + 1, :]
    fa1 = pack_ref[OFF_VEC + R_FA1:OFF_VEC + R_FA1 + 1, :]
    fb2 = pack_ref[OFF_VEC + R_FB2:OFF_VEC + R_FB2 + 1, 0:H2]
    fa2 = pack_ref[OFF_VEC + R_FA2:OFF_VEC + R_FA2 + 1, 0:H2]
    fb3 = pack_ref[OFF_VEC + R_FB3:OFF_VEC + R_FB3 + 1, 0:H3]
    fa3 = pack_ref[OFF_VEC + R_FA3:OFF_VEC + R_FA3 + 1, 0:H3]
    fb4 = pack_ref[OFF_VEC + R_FB4:OFF_VEC + R_FB4 + 1, 0:1]

    h = jnp.dot(feat_scr[...], pack_ref[OFF_FW1:OFF_FW1 + N_FEAT, :],
                preferred_element_type=f32) + fb1                          # (B, 128)
    h = jnp.where(h > 0, h, fa1 * h)                                       # PReLU(128)
    h = jnp.dot(h, pack_ref[OFF_FW2:OFF_FW2 + H1, 0:H2],
                preferred_element_type=f32) + fb2                          # (B, 64)
    h = jnp.where(h > 0, h, fa2 * h)                                       # PReLU(64)
    h = jnp.dot(h, pack_ref[OFF_FW3:OFF_FW3 + H2, 0:H3],
                preferred_element_type=f32) + fb3                          # (B, 32)
    h = jnp.where(h > 0, h, fa3 * h)                                       # PReLU(32)
    out_ref[...] = jnp.dot(h, pack_ref[OFF_FW4:OFF_FW4 + H3, 0:1],
                           preferred_element_type=f32) + fb4               # (B, 1)


# ----------------------------- parameter packing (one-time, host side) -----------
def pack_params(p):
    """Convert PyTorch-layout parameters into the kernel layout (call once)."""
    def row(v):
        v = v.astype(jnp.float32)
        return jnp.pad(v, (0, LANES - v.shape[0]))

    vecs = jnp.stack([
        row(p['a1']), row(p['a2']),
        row(p['fb1']), row(p['fa1']),
        row(p['fb2']), row(p['fa2']),
        row(p['fb3']), row(p['fa3']),
        row(p['fb4']),
    ], axis=0)                                                 # (9, 128)

    mlpw = jnp.concatenate([
        jnp.pad(p['fw2'], ((0, 0), (0, LANES - H2))),          # (128, 128)
        jnp.pad(p['fw3'], ((0, 0), (0, LANES - H3))),          # (64, 128)
        jnp.pad(p['fw4'], ((0, 0), (0, LANES - 1))),           # (32, 128)
    ], axis=0)                                                 # (224, 128)

    # Fold PyTorch's channel-major flatten into the first MLP weight:
    # kernel feature order is (length, channel); torch order is (channel, length).
    fw1p = p['fw1'].reshape(C2, L2, H1).transpose(1, 0, 2).reshape(N_FEAT, H1)
    w1pad = jnp.pad(p['w1'].astype(jnp.float32), ((0, OFF_FW1 - K1), (0, 0)))  # (8, 128)

    pack = jnp.concatenate([w1pad, fw1p, mlpw, vecs], axis=0)              # (497, 128)
    pack = jnp.pad(pack, ((0, PACK_ROWS - pack.shape[0]), (0, 0)))         # (504, 128)

    # conv2 weight in im2col layout: row k*C1 + cin, column cout.
    w2im = p['w2'].reshape(K2 * C1, C2)
    # NOTE: conv biases b1/b2 are not packed -- affine-free InstanceNorm cancels them.
    return dict(w2im=w2im, pack=pack)


# ----------------------------- wrapper --------------------------------------------
def rv_estimator_forward(x, kp):
    """x: (B, N_IN) float32, kp: pack_params(...) -> (B, 1) float32."""
    # Only wrapper glue: length-pad and transpose the tiny input so the conv1
    # taps become sublane shifts inside the kernel.
    xt = jnp.pad(x, ((0, 0), (PAD1, PAD1))).T                  # (N_IN + 4, B)

    vmem = lambda: pl.BlockSpec(memory_space=pltpu.MemorySpace.VMEM)
    per_batch = lambda shape: [pltpu.VMEM(shape, jnp.float32) for _ in range(B)]
    return pl.pallas_call(
        rv_fused_kernel,
        out_shape=jax.ShapeDtypeStruct((B, 1), jnp.float32),
        in_specs=[vmem(), vmem(), vmem()],
        out_specs=vmem(),
        scratch_shapes=(per_batch((N_IN + 2 * PAD1, C1))            # xb  : input broadcast
                        + per_batch((N_IN, C1))                     # hbuf: acts / pool staging
                        + per_batch((L1 + 2 * PAD2, C1))            # hp  : padded pool1 out
                        + per_batch((L2C, K2 * C1))                 # col : conv2 im2col
                        + [pltpu.VMEM((B, N_FEAT), jnp.float32)]),  # feat: flattened softmax
    )(xt, kp['w2im'], kp['pack'])


# ----------------------------- pure-JAX reference (for verification) --------------
def ref_forward(x, p):
    xpad = jnp.pad(x, ((0, 0), (PAD1, PAD1)))
    xs = jnp.stack([xpad[:, k:k + N_IN] for k in range(K1)], axis=-1)
    h = jnp.einsum('blk,kc->blc', xs, p['w1']) + p['b1']
    mu = h.mean(axis=1, keepdims=True)
    var = ((h - mu) ** 2).mean(axis=1, keepdims=True)
    h = (h - mu) / jnp.sqrt(var + EPS)
    h = jnp.where(h > 0, h, p['a1'] * h)
    h = h.reshape(B, L1, POOL1, C1).max(axis=2)

    hp = jnp.pad(h, ((0, 0), (PAD2, PAD2), (0, 0)))
    h2 = sum(jnp.einsum('blc,cd->bld', hp[:, k:k + L2C, :], p['w2'][k]) for k in range(K2))
    h2 = h2 + p['b2']
    mu = h2.mean(axis=1, keepdims=True)
    var = ((h2 - mu) ** 2).mean(axis=1, keepdims=True)
    h2 = (h2 - mu) / jnp.sqrt(var + EPS)
    h2 = jnp.where(h2 > 0, h2, p['a2'] * h2)
    h2 = h2[:, :L2 * POOL2, :].reshape(B, L2, POOL2, C2).max(axis=2)     # (B, L2, C2)
    h2 = jax.nn.softmax(h2, axis=1)                                      # softmax over length

    feat = jnp.transpose(h2, (0, 2, 1)).reshape(B, N_FEAT)               # channel-major flatten
    h = feat @ p['fw1'] + p['fb1']; h = jnp.where(h > 0, h, p['fa1'] * h)
    h = h @ p['fw2'] + p['fb2'];    h = jnp.where(h > 0, h, p['fa2'] * h)
    h = h @ p['fw3'] + p['fb3'];    h = jnp.where(h > 0, h, p['fa3'] * h)
    return h @ p['fw4'] + p['fb4']


# ----------------------------- deterministic parameter init -----------------------
def init_params(key):
    ks = jax.random.split(key, 16)

    def unif(k, shape, fan_in):
        s = 1.0 / np.sqrt(fan_in)
        return jax.random.uniform(k, shape, jnp.float32, -s, s)

    p = {}
    # conv1: stored as (K1, C1)  == Conv1d(1,128,5).weight[c,0,k] transposed
    p['w1'] = unif(ks[0], (K1, C1), 1 * K1)
    p['b1'] = unif(ks[1], (C1,), 1 * K1)
    p['a1'] = jnp.full((C1,), 0.25, jnp.float32)        # PReLU init
    # conv2: stored as (K2, C1, C2) == Conv1d(128,64,10).weight[c,cin,k] permuted
    p['w2'] = unif(ks[2], (K2, C1, C2), C1 * K2)
    p['b2'] = unif(ks[3], (C2,), C1 * K2)
    p['a2'] = jnp.full((C2,), 0.25, jnp.float32)
    # MLP 256 -> 128 -> 64 -> 32 -> 1, acts PReLU, PReLU, PReLU, Identity
    p['fw1'] = unif(ks[4], (N_FEAT, H1), N_FEAT); p['fb1'] = unif(ks[5], (H1,), N_FEAT)
    p['fa1'] = jnp.full((H1,), 0.25, jnp.float32)
    p['fw2'] = unif(ks[6], (H1, H2), H1);         p['fb2'] = unif(ks[7], (H2,), H1)
    p['fa2'] = jnp.full((H2,), 0.25, jnp.float32)
    p['fw3'] = unif(ks[8], (H2, H3), H2);         p['fb3'] = unif(ks[9], (H3,), H2)
    p['fa3'] = jnp.full((H3,), 0.25, jnp.float32)
    p['fw4'] = unif(ks[10], (H3, 1), H3);         p['fb4'] = unif(ks[11], (1,), H3)
    return p


# ----------------------------- main -----------------------------------------------
if __name__ == "__main__":
    key = jax.random.PRNGKey(0)
    k_par, k_x = jax.random.split(key)
    params = init_params(k_par)
    kparams = pack_params(params)            # one-time weight repack / permutation
    x = jax.random.normal(k_x, (B, N_IN), jnp.float32)

    out = jax.block_until_ready(jax.jit(rv_estimator_forward)(x, kparams))
    ref = jax.block_until_ready(jax.jit(ref_forward)(x, params))

    assert out.shape == (B, 1)
    np.testing.assert_allclose(np.asarray(out), np.asarray(ref), rtol=1e-4, atol=1e-4)
    print("KERNEL_OK")
</pallas_src>

<mosaic_0001>
module attributes {stable_mosaic.version = 11 : i64} {
  func.func @rv_fused_kernel(%arg0: memref<204x2xf32, #tpu.memory_space<vmem>>, %arg1: memref<1280x64xf32, #tpu.memory_space<vmem>>, %arg2: memref<504x128xf32, #tpu.memory_space<vmem>>, %arg3: memref<2x1xf32, #tpu.memory_space<vmem>>, %arg4: memref<204x128xf32, #tpu.memory_space<vmem>>, %arg5: memref<204x128xf32, #tpu.memory_space<vmem>>, %arg6: memref<200x128xf32, #tpu.memory_space<vmem>>, %arg7: memref<200x128xf32, #tpu.memory_space<vmem>>, %arg8: memref<50x128xf32, #tpu.memory_space<vmem>>, %arg9: memref<50x128xf32, #tpu.memory_space<vmem>>, %arg10: memref<41x1280xf32, #tpu.memory_space<vmem>>, %arg11: memref<41x1280xf32, #tpu.memory_space<vmem>>, %arg12: memref<2x256xf32, #tpu.memory_space<vmem>>) attributes {dimension_semantics = [], scalar_prefetch = 0 : i64, scratch_operands = 9 : i64, tpu.core_type = #tpu.core_type<tc>} {
    %c488 = arith.constant 488 : index
    %c0 = arith.constant 0 : index
    %0 = vector.load %arg2[%c488, %c0] : memref<504x128xf32, #tpu.memory_space<vmem>>, vector<1x128xf32>
    %c489 = arith.constant 489 : index
    %c0_0 = arith.constant 0 : index
    %1 = vector.load %arg2[%c489, %c0_0] : memref<504x128xf32, #tpu.memory_space<vmem>>, vector<1x64xf32>
    %cst = arith.constant 0.000000e+00 : f32
    %2 = vector.broadcast %cst : f32 to vector<5x128xf32>
    %c0_1 = arith.constant 0 : index
    %c0_2 = arith.constant 0 : index
    %3 = vector.load %arg0[%c0_1, %c0_2] : memref<204x2xf32, #tpu.memory_space<vmem>>, vector<204x1xf32>
    %4 = vector.shape_cast %3 : vector<204x1xf32> to vector<204x1xf32>
    %5 = vector.broadcast %4 : vector<204x1xf32> to vector<204x128xf32>
    %c0_3 = arith.constant 0 : index
    %c0_4 = arith.constant 0 : index
    %6 = vector.load %arg4[%c0_3, %c0_4] : memref<204x128xf32, #tpu.memory_space<vmem>>, vector<204x128xf32>
    tpu.vector_store %arg4[%c0_3, %c0_4], %5 {strides = array<i32>} : memref<204x128xf32, #tpu.memory_space<vmem>>, vector<204x128xf32>,
    %c0_5 = arith.constant 0 : index
    %c0_6 = arith.constant 0 : index
    %7 = vector.load %arg4[%c0_5, %c0_6] : memref<204x128xf32, #tpu.memory_space<vmem>>, vector<200x128xf32>
    %c0_7 = arith.constant 0 : index
    %c0_8 = arith.constant 0 : index
    %8 = vector.load %arg2[%c0_7, %c0_8] : memref<504x128xf32, #tpu.memory_space<vmem>>, vector<1x128xf32>
    %9 = vector.broadcast %8 : vector<1x128xf32> to vector<200x128xf32>
    %10 = arith.mulf %7, %9 : vector<200x128xf32>
    %c1 = arith.constant 1 : index
    %c0_9 = arith.constant 0 : index
    %11 = vector.load %arg4[%c1, %c0_9] : memref<204x128xf32, #tpu.memory_space<vmem>>, vector<200x128xf32>
    %c1_10 = arith.constant 1 : index
    %c0_11 = arith.constant 0 : index
    %12 = vector.load %arg2[%c1_10, %c0_11] : memref<504x128xf32, #tpu.memory_space<vmem>>, vector<1x128xf32>
    %13 = vector.broadcast %12 : vector<1x128xf32> to vector<200x128xf32>
    %14 = arith.mulf %11, %13 : vector<200x128xf32>
    %15 = arith.addf %10, %14 : vector<200x128xf32>
    %c2 = arith.constant 2 : index
    %c0_12 = arith.constant 0 : index
    %16 = vector.load %arg4[%c2, %c0_12] : memref<204x128xf32, #tpu.memory_space<vmem>>, vector<200x128xf32>
    %c2_13 = arith.constant 2 : index
    %c0_14 = arith.constant 0 : index
    %17 = vector.load %arg2[%c2_13, %c0_14] : memref<504x128xf32, #tpu.memory_space<vmem>>, vector<1x128xf32>
    %18 = vector.broadcast %17 : vector<1x128xf32> to vector<200x128xf32>
    %19 = arith.mulf %16, %18 : vector<200x128xf32>
    %20 = arith.addf %15, %19 : vector<200x128xf32>
    %c3 = arith.constant 3 : index
    %c0_15 = arith.constant 0 : index
    %21 = vector.load %arg4[%c3, %c0_15] : memref<204x128xf32, #tpu.memory_space<vmem>>, vector<200x128xf32>
    %c3_16 = arith.constant 3 : index
    %c0_17 = arith.constant 0 : index
    %22 = vector.load %arg2[%c3_16, %c0_17] : memref<504x128xf32, #tpu.memory_space<vmem>>, vector<1x128xf32>
    %23 = vector.broadcast %22 : vector<1x128xf32> to vector<200x128xf32>
    %24 = arith.mulf %21, %23 : vector<200x128xf32>
    %25 = arith.addf %20, %24 : vector<200x128xf32>
    %c4 = arith.constant 4 : index
    %c0_18 = arith.constant 0 : index
    %26 = vector.load %arg4[%c4, %c0_18] : memref<204x128xf32, #tpu.memory_space<vmem>>, vector<200x128xf32>
    %c4_19 = arith.constant 4 : index
    %c0_20 = arith.constant 0 : index
    %27 = vector.load %arg2[%c4_19, %c0_20] : memref<504x128xf32, #tpu.memory_space<vmem>>, vector<1x128xf32>
    %28 = vector.broadcast %27 : vector<1x128xf32> to vector<200x128xf32>
    %29 = arith.mulf %26, %28 : vector<200x128xf32>
    %30 = arith.addf %25, %29 : vector<200x128xf32>
    %cst_21 = arith.constant dense<0.000000e+00> : vector<128xf32>
    %31 = vector.multi_reduction <add>, %30, %cst_21 [0] : vector<200x128xf32> to vector<128xf32>
    %32 = vector.shape_cast %31 : vector<128xf32> to vector<1x128xf32>
    %33 = arith.mulf %30, %30 : vector<200x128xf32>
    %cst_22 = arith.constant dense<0.000000e+00> : vector<128xf32>
    %34 = vector.multi_reduction <add>, %33, %cst_22 [0] : vector<200x128xf32> to vector<128xf32>
    %35 = vector.shape_cast %34 : vector<128xf32> to vector<1x128xf32>
    %cst_23 = arith.constant 5.000000e-03 : f32
    %36 = vector.broadcast %cst_23 : f32 to vector<1x128xf32>
    %37 = arith.mulf %32, %36 : vector<1x128xf32>
    %cst_24 = arith.constant 5.000000e-03 : f32
    %38 = vector.broadcast %cst_24 : f32 to vector<1x128xf32>
    %39 = arith.mulf %35, %38 : vector<1x128xf32>
    %40 = arith.mulf %37, %37 : vector<1x128xf32>
    %41 = arith.subf %39, %40 : vector<1x128xf32>
    %42 = vector.broadcast %37 : vector<1x128xf32> to vector<200x128xf32>
    %43 = arith.subf %30, %42 : vector<200x128xf32>
    %cst_25 = arith.constant 9.99999974E-6 : f32
    %44 = vector.broadcast %cst_25 : f32 to vector<1x128xf32>
    %45 = arith.addf %41, %44 : vector<1x128xf32>
    %46 = math.rsqrt %45 : vector<1x128xf32>
    %47 = vector.broadcast %46 : vector<1x128xf32> to vector<200x128xf32>
    %48 = arith.mulf %43, %47 : vector<200x128xf32>
    %cst_26 = arith.constant 0.000000e+00 : f32
    %49 = vector.broadcast %cst_26 : f32 to vector<200x128xf32>
    %50 = arith.cmpf ogt, %48, %49 : vector<200x128xf32>
    %51 = vector.broadcast %0 : vector<1x128xf32> to vector<200x128xf32>
    %52 = arith.mulf %51, %48 : vector<200x128xf32>
    %53 = arith.select %50, %48, %52 : vector<200x128xi1>, vector<200x128xf32>
    %c0_27 = arith.constant 0 : index
    %c0_28 = arith.constant 0 : index
    %54 = vector.load %arg6[%c0_27, %c0_28] : memref<200x128xf32, #tpu.memory_space<vmem>>, vector<200x128xf32>
    tpu.vector_store %arg6[%c0_27, %c0_28], %53 {strides = array<i32>} : memref<200x128xf32, #tpu.memory_space<vmem>>, vector<200x128xf32>,
    %c0_29 = arith.constant 0 : index
    %c0_30 = arith.constant 0 : index
    %55 = tpu.strided_load %arg6[%c0_29, %c0_30] {strides = array<i32: 5, 1>} : memref<200x128xf32, #tpu.memory_space<vmem>>, vector<40x128xf32>
    %c1_31 = arith.constant 1 : index
    %c0_32 = arith.constant 0 : index
    %56 = tpu.strided_load %arg6[%c1_31, %c0_32] {strides = array<i32: 5, 1>} : memref<200x128xf32, #tpu.memory_space<vmem>>, vector<40x128xf32>
    %57 = arith.maximumf %55, %56 : vector<40x128xf32>
    %c2_33 = arith.constant 2 : index
    %c0_34 = arith.constant 0 : index
    %58 = tpu.strided_load %arg6[%c2_33, %c0_34] {strides = array<i32: 5, 1>} : memref<200x128xf32, #tpu.memory_space<vmem>>, vector<40x128xf32>
    %59 = arith.maximumf %57, %58 : vector<40x128xf32>
    %c3_35 = arith.constant 3 : index
    %c0_36 = arith.constant 0 : index
    %60 = tpu.strided_load %arg6[%c3_35, %c0_36] {strides = array<i32: 5, 1>} : memref<200x128xf32, #tpu.memory_space<vmem>>, vector<40x128xf32>
    %61 = arith.maximumf %59, %60 : vector<40x128xf32>
    %c4_37 = arith.constant 4 : index
    %c0_38 = arith.constant 0 : index
    %62 = tpu.strided_load %arg6[%c4_37, %c0_38] {strides = array<i32: 5, 1>} : memref<200x128xf32, #tpu.memory_space<vmem>>, vector<40x128xf32>
    %63 = arith.maximumf %61, %62 : vector<40x128xf32>
    %c0_39 = arith.constant 0 : index
    %c0_40 = arith.constant 0 : index
    %64 = vector.load %arg8[%c0_39, %c0_40] : memref<50x128xf32, #tpu.memory_space<vmem>>, vector<5x128xf32>
    tpu.vector_store %arg8[%c0_39, %c0_40], %2 {strides = array<i32>} : memref<50x128xf32, #tpu.memory_space<vmem>>, vector<5x128xf32>,
    %c45 = arith.constant 45 : index
    %c0_41 = arith.constant 0 : index
    %65 = vector.load %arg8[%c45, %c0_41] : memref<50x128xf32, #tpu.memory_space<vmem>>, vector<5x128xf32>
    tpu.vector_store %arg8[%c45, %c0_41], %2 {strides = array<i32>} : memref<50x128xf32, #tpu.memory_space<vmem>>, vector<5x128xf32>,
    %c5 = arith.constant 5 : index
    %c0_42 = arith.constant 0 : index
    %66 = vector.load %arg8[%c5, %c0_42] : memref<50x128xf32, #tpu.memory_space<vmem>>, vector<40x128xf32>
    tpu.vector_store %arg8[%c5, %c0_42], %63 {strides = array<i32>} : memref<50x128xf32, #tpu.memory_space<vmem>>, vector<40x128xf32>,
    %c0_43 = arith.constant 0 : index
    %c0_44 = arith.constant 0 : index
    %67 = vector.load %arg8[%c0_43, %c0_44] : memref<50x128xf32, #tpu.memory_space<vmem>>, vector<41x128xf32>
    %c0_45 = arith.constant 0 : index
    %c0_46 = arith.constant 0 : index
    %68 = vector.load %arg10[%c0_45, %c0_46] : memref<41x1280xf32, #tpu.memory_space<vmem>>, vector<41x128xf32>
    tpu.vector_store %arg10[%c0_45, %c0_46], %67 {strides = array<i32>} : memref<41x1280xf32, #tpu.memory_space<vmem>>, vector<41x128xf32>,
    %c1_47 = arith.constant 1 : index
    %c0_48 = arith.constant 0 : index
    %69 = vector.load %arg8[%c1_47, %c0_48] : memref<50x128xf32, #tpu.memory_space<vmem>>, vector<41x128xf32>
    %c0_49 = arith.constant 0 : index
    %c128 = arith.constant 128 : index
    %70 = vector.load %arg10[%c0_49, %c128] : memref<41x1280xf32, #tpu.memory_space<vmem>>, vector<41x128xf32>
    tpu.vector_store %arg10[%c0_49, %c128], %69 {strides = array<i32>} : memref<41x1280xf32, #tpu.memory_space<vmem>>, vector<41x128xf32>,
    %c2_50 = arith.constant 2 : index
    %c0_51 = arith.constant 0 : index
    %71 = vector.load %arg8[%c2_50, %c0_51] : memref<50x128xf32, #tpu.memory_space<vmem>>, vector<41x128xf32>
    %c0_52 = arith.constant 0 : index
    %c256 = arith.constant 256 : index
    %72 = vector.load %arg10[%c0_52, %c256] : memref<41x1280xf32, #tpu.memory_space<vmem>>, vector<41x128xf32>
    tpu.vector_store %arg10[%c0_52, %c256], %71 {strides = array<i32>} : memref<41x1280xf32, #tpu.memory_space<vmem>>, vector<41x128xf32>,
    %c3_53 = arith.constant 3 : index
    %c0_54 = arith.constant 0 : index
    %73 = vector.load %arg8[%c3_53, %c0_54] : memref<50x128xf32, #tpu.memory_space<vmem>>, vector<41x128xf32>
    %c0_55 = arith.constant 0 : index
    %c384 = arith.constant 384 : index
    %74 = vector.load %arg10[%c0_55, %c384] : memref<41x1280xf32, #tpu.memory_space<vmem>>, vector<41x128xf32>
    tpu.vector_store %arg10[%c0_55, %c384], %73 {strides = array<i32>} : memref<41x1280xf32, #tpu.memory_space<vmem>>, vector<41x128xf32>,
    %c4_56 = arith.constant 4 : index
    %c0_57 = arith.constant 0 : index
    %75 = vector.load %arg8[%c4_56, %c0_57] : memref<50x128xf32, #tpu.memory_space<vmem>>, vector<41x128xf32>
    %c0_58 = arith.constant 0 : index
    %c512 = arith.constant 512 : index
    %76 = vector.load %arg10[%c0_58, %c512] : memref<41x1280xf32, #tpu.memory_space<vmem>>, vector<41x128xf32>
    tpu.vector_store %arg10[%c0_58, %c512], %75 {strides = array<i32>} : memref<41x1280xf32, #tpu.memory_space<vmem>>, vector<41x128xf32>,
    %c5_59 = arith.constant 5 : index
    %c0_60 = arith.constant 0 : index
    %77 = vector.load %arg8[%c5_59, %c0_60] : memref<50x128xf32, #tpu.memory_space<vmem>>, vector<41x128xf32>
    %c0_61 = arith.constant 0 : index
    %c640 = arith.constant 640 : index
    %78 = vector.load %arg10[%c0_61, %c640] : memref<41x1280xf32, #tpu.memory_space<vmem>>, vector<41x128xf32>
    tpu.vector_store %arg10[%c0_61, %c640], %77 {strides = array<i32>} : memref<41x1280xf32, #tpu.memory_space<vmem>>, vector<41x128xf32>,
    %c6 = arith.constant 6 : index
    %c0_62 = arith.constant 0 : index
    %79 = vector.load %arg8[%c6, %c0_62] : memref<50x128xf32, #tpu.memory_space<vmem>>, vector<41x128xf32>
    %c0_63 = arith.constant 0 : index
    %c768 = arith.constant 768 : index
    %80 = vector.load %arg10[%c0_63, %c768] : memref<41x1280xf32, #tpu.memory_space<vmem>>, vector<41x128xf32>
    tpu.vector_store %arg10[%c0_63, %c768], %79 {strides = array<i32>} : memref<41x1280xf32, #tpu.memory_space<vmem>>, vector<41x128xf32>,
    %c7 = arith.constant 7 : index
    %c0_64 = arith.constant 0 : index
    %81 = vector.load %arg8[%c7, %c0_64] : memref<50x128xf32, #tpu.memory_space<vmem>>, vector<41x128xf32>
    %c0_65 = arith.constant 0 : index
    %c896 = arith.constant 896 : index
    %82 = vector.load %arg10[%c0_65, %c896] : memref<41x1280xf32, #tpu.memory_space<vmem>>, vector<41x128xf32>
    tpu.vector_store %arg10[%c0_65, %c896], %81 {strides = array<i32>} : memref<41x1280xf32, #tpu.memory_space<vmem>>, vector<41x128xf32>,
    %c8 = arith.constant 8 : index
    %c0_66 = arith.constant 0 : index
    %83 = vector.load %arg8[%c8, %c0_66] : memref<50x128xf32, #tpu.memory_space<vmem>>, vector<41x128xf32>
    %c0_67 = arith.constant 0 : index
    %c1024 = arith.constant 1024 : index
    %84 = vector.load %arg10[%c0_67, %c1024] : memref<41x1280xf32, #tpu.memory_space<vmem>>, vector<41x128xf32>
    tpu.vector_store %arg10[%c0_67, %c1024], %83 {strides = array<i32>} : memref<41x1280xf32, #tpu.memory_space<vmem>>, vector<41x128xf32>,
    %c9 = arith.constant 9 : index
    %c0_68 = arith.constant 0 : index
    %85 = vector.load %arg8[%c9, %c0_68] : memref<50x128xf32, #tpu.memory_space<vmem>>, vector<41x128xf32>
    %c0_69 = arith.constant 0 : index
    %c1152 = arith.constant 1152 : index
    %86 = vector.load %arg10[%c0_69, %c1152] : memref<41x1280xf32, #tpu.memory_space<vmem>>, vector<41x128xf32>
    tpu.vector_store %arg10[%c0_69, %c1152], %85 {strides = array<i32>} : memref<41x1280xf32, #tpu.memory_space<vmem>>, vector<41x128xf32>,
    %c0_70 = arith.constant 0 : index
    %c0_71 = arith.constant 0 : index
    %87 = vector.load %arg10[%c0_70, %c0_71] : memref<41x1280xf32, #tpu.memory_space<vmem>>, vector<41x1280xf32>
    %c0_72 = arith.constant 0 : index
    %c0_73 = arith.constant 0 : index
    %88 = vector.load %arg1[%c0_72, %c0_73] : memref<1280x64xf32, #tpu.memory_space<vmem>>, vector<1280x64xf32>
    %cst_74 = arith.constant dense<0.000000e+00> : vector<41x64xf32>
    %89 = tpu.matmul %87, %88, %cst_74 {dimension_numbers = #tpu.dot_dimension_numbers<[1], [0], [0], [1], [0, 0, 1, 1], [], []>} : vector<41x1280xf32>, vector<1280x64xf32>, vector<41x64xf32> -> vector<41x64xf32>
    %cst_75 = arith.constant dense<0.000000e+00> : vector<64xf32>
    %90 = vector.multi_reduction <add>, %89, %cst_75 [0] : vector<41x64xf32> to vector<64xf32>
    %91 = vector.shape_cast %90 : vector<64xf32> to vector<1x64xf32>
    %92 = arith.mulf %89, %89 : vector<41x64xf32>
    %cst_76 = arith.constant dense<0.000000e+00> : vector<64xf32>
    %93 = vector.multi_reduction <add>, %92, %cst_76 [0] : vector<41x64xf32> to vector<64xf32>
    %94 = vector.shape_cast %93 : vector<64xf32> to vector<1x64xf32>
    %cst_77 = arith.constant 0.024390243 : f32
    %95 = vector.broadcast %cst_77 : f32 to vector<1x64xf32>
    %96 = arith.mulf %91, %95 : vector<1x64xf32>
    %cst_78 = arith.constant 0.024390243 : f32
    %97 = vector.broadcast %cst_78 : f32 to vector<1x64xf32>
    %98 = arith.mulf %94, %97 : vector<1x64xf32>
    %99 = arith.mulf %96, %96 : vector<1x64xf32>
    %100 = arith.subf %98, %99 : vector<1x64xf32>
    %101 = vector.extract_strided_slice %89 {offsets = [0, 0], sizes = [40, 64], strides = [1, 1]} : vector<41x64xf32> to vector<40x64xf32>
    %102 = vector.broadcast %96 : vector<1x64xf32> to vector<40x64xf32>
    %103 = arith.subf %101, %102 : vector<40x64xf32>
    %cst_79 = arith.constant 9.99999974E-6 : f32
    %104 = vector.broadcast %cst_79 : f32 to vector<1x64xf32>
    %105 = arith.addf %100, %104 : vector<1x64xf32>
    %106 = math.rsqrt %105 : vector<1x64xf32>
    %107 = vector.broadcast %106 : vector<1x64xf32> to vector<40x64xf32>
    %108 = arith.mulf %103, %107 : vector<40x64xf32>
    %cst_80 = arith.constant 0.000000e+00 : f32
    %109 = vector.broadcast %cst_80 : f32 to vector<40x64xf32>
    %110 = arith.cmpf ogt, %108, %109 : vector<40x64xf32>
    %111 = vector.broadcast %1 : vector<1x64xf32> to vector<40x64xf32>
    %112 = arith.mulf %111, %108 : vector<40x64xf32>
    %113 = arith.select %110, %108, %112 : vector<40x64xi1>, vector<40x64xf32>
    %c0_81 = arith.constant 0 : index
    %c0_82 = arith.constant 0 : index
    %114 = vector.load %arg6[%c0_81, %c0_82] : memref<200x128xf32, #tpu.memory_space<vmem>>, vector<40x64xf32>
    tpu.vector_store %arg6[%c0_81, %c0_82], %113 {strides = array<i32>} : memref<200x128xf32, #tpu.memory_space<vmem>>, vector<40x64xf32>,
    %c0_83 = arith.constant 0 : index
    %c0_84 = arith.constant 0 : index
    %115 = tpu.strided_load %arg6[%c0_83, %c0_84] {strides = array<i32: 10, 1>} : memref<200x128xf32, #tpu.memory_space<vmem>>, vector<4x64xf32>
    %c1_85 = arith.constant 1 : index
    %c0_86 = arith.constant 0 : index
    %116 = tpu.strided_load %arg6[%c1_85, %c0_86] {strides = array<i32: 10, 1>} : memref<200x128xf32, #tpu.memory_space<vmem>>, vector<4x64xf32>
    %117 = arith.maximumf %115, %116 : vector<4x64xf32>
    %c2_87 = arith.constant 2 : index
    %c0_88 = arith.constant 0 : index
    %118 = tpu.strided_load %arg6[%c2_87, %c0_88] {strides = array<i32: 10, 1>} : memref<200x128xf32, #tpu.memory_space<vmem>>, vector<4x64xf32>
    %119 = arith.maximumf %117, %118 : vector<4x64xf32>
    %c3_89 = arith.constant 3 : index
    %c0_90 = arith.constant 0 : index
    %120 = tpu.strided_load %arg6[%c3_89, %c0_90] {strides = array<i32: 10, 1>} : memref<200x128xf32, #tpu.memory_space<vmem>>, vector<4x64xf32>
    %121 = arith.maximumf %119, %120 : vector<4x64xf32>
    %c4_91 = arith.constant 4 : index
    %c0_92 = arith.constant 0 : index
    %122 = tpu.strided_load %arg6[%c4_91, %c0_92] {strides = array<i32: 10, 1>} : memref<200x128xf32, #tpu.memory_space<vmem>>, vector<4x64xf32>
    %123 = arith.maximumf %121, %122 : vector<4x64xf32>
    %c5_93 = arith.constant 5 : index
    %c0_94 = arith.constant 0 : index
    %124 = tpu.strided_load %arg6[%c5_93, %c0_94] {strides = array<i32: 10, 1>} : memref<200x128xf32, #tpu.memory_space<vmem>>, vector<4x64xf32>
    %125 = arith.maximumf %123, %124 : vector<4x64xf32>
    %c6_95 = arith.constant 6 : index
    %c0_96 = arith.constant 0 : index
    %126 = tpu.strided_load %arg6[%c6_95, %c0_96] {strides = array<i32: 10, 1>} : memref<200x128xf32, #tpu.memory_space<vmem>>, vector<4x64xf32>
    %127 = arith.maximumf %125, %126 : vector<4x64xf32>
    %c7_97 = arith.constant 7 : index
    %c0_98 = arith.constant 0 : index
    %128 = tpu.strided_load %arg6[%c7_97, %c0_98] {strides = array<i32: 10, 1>} : memref<200x128xf32, #tpu.memory_space<vmem>>, vector<4x64xf32>
    %129 = arith.maximumf %127, %128 : vector<4x64xf32>
    %c8_99 = arith.constant 8 : index
    %c0_100 = arith.constant 0 : index
    %130 = tpu.strided_load %arg6[%c8_99, %c0_100] {strides = array<i32: 10, 1>} : memref<200x128xf32, #tpu.memory_space<vmem>>, vector<4x64xf32>
    %131 = arith.maximumf %129, %130 : vector<4x64xf32>
    %c9_101 = arith.constant 9 : index
    %c0_102 = arith.constant 0 : index
    %132 = tpu.strided_load %arg6[%c9_101, %c0_102] {strides = array<i32: 10, 1>} : memref<200x128xf32, #tpu.memory_space<vmem>>, vector<4x64xf32>
    %133 = arith.maximumf %131, %132 : vector<4x64xf32>
    %cst_103 = arith.constant dense<0xFF800000> : vector<64xf32>
    %134 = vector.multi_reduction <maximumf>, %133, %cst_103 [0] : vector<4x64xf32> to vector<64xf32>
    %135 = vector.shape_cast %134 : vector<64xf32> to vector<1x64xf32>
    %136 = vector.broadcast %135 : vector<1x64xf32> to vector<4x64xf32>
    %137 = arith.subf %133, %136 : vector<4x64xf32>
    %138 = math.exp %137 : vector<4x64xf32>
    %cst_104 = arith.constant dense<0.000000e+00> : vector<64xf32>
    %139 = vector.multi_reduction <add>, %138, %cst_104 [0] : vector<4x64xf32> to vector<64xf32>
    %140 = vector.shape_cast %139 : vector<64xf32> to vector<1x64xf32>
    %141 = tpu.reciprocal %140 : vector<1x64xf32> -> vector<1x64xf32>
    %142 = vector.broadcast %141 : vector<1x64xf32> to vector<4x64xf32>
    %143 = arith.mulf %138, %142 : vector<4x64xf32>
    %144 = vector.extract_strided_slice %143 {offsets = [0, 0], sizes = [1, 64], strides = [1, 1]} : vector<4x64xf32> to vector<1x64xf32>
    %c0_105 = arith.constant 0 : index
    %c0_106 = arith.constant 0 : index
    %145 = vector.load %arg12[%c0_105, %c0_106] : memref<2x256xf32, #tpu.memory_space<vmem>>, vector<1x64xf32>
    tpu.vector_store %arg12[%c0_105, %c0_106], %144 {strides = array<i32>} : memref<2x256xf32, #tpu.memory_space<vmem>>, vector<1x64xf32>,
    %146 = vector.extract_strided_slice %143 {offsets = [1, 0], sizes = [1, 64], strides = [1, 1]} : vector<4x64xf32> to vector<1x64xf32>
    %c0_107 = arith.constant 0 : index
    %c64 = arith.constant 64 : index
    %147 = vector.load %arg12[%c0_107, %c64] : memref<2x256xf32, #tpu.memory_space<vmem>>, vector<1x64xf32>
    tpu.vector_store %arg12[%c0_107, %c64], %146 {strides = array<i32>} : memref<2x256xf32, #tpu.memory_space<vmem>>, vector<1x64xf32>,
    %148 = vector.extract_strided_slice %143 {offsets = [2, 0], sizes = [1, 64], strides = [1, 1]} : vector<4x64xf32> to vector<1x64xf32>
    %c0_108 = arith.constant 0 : index
    %c128_109 = arith.constant 128 : index
    %149 = vector.load %arg12[%c0_108, %c128_109] : memref<2x256xf32, #tpu.memory_space<vmem>>, vector<1x64xf32>
    tpu.vector_store %arg12[%c0_108, %c128_109], %148 {strides = array<i32>} : memref<2x256xf32, #tpu.memory_space<vmem>>, vector<1x64xf32>,
    %150 = vector.extract_strided_slice %143 {offsets = [3, 0], sizes = [1, 64], strides = [1, 1]} : vector<4x64xf32> to vector<1x64xf32>
    %c0_110 = arith.constant 0 : index
    %c192 = arith.constant 192 : index
    %151 = vector.load %arg12[%c0_110, %c192] : memref<2x256xf32, #tpu.memory_space<vmem>>, vector<1x64xf32>
    tpu.vector_store %arg12[%c0_110, %c192], %150 {strides = array<i32>} : memref<2x256xf32, #tpu.memory_space<vmem>>, vector<1x64xf32>,
    %c0_111 = arith.constant 0 : index
    %c1_112 = arith.constant 1 : index
    %152 = vector.load %arg0[%c0_111, %c1_112] : memref<204x2xf32, #tpu.memory_space<vmem>>, vector<204x1xf32>
    %153 = vector.shape_cast %152 : vector<204x1xf32> to vector<204x1xf32>
    %154 = vector.broadcast %153 : vector<204x1xf32> to vector<204x128xf32>
    %c0_113 = arith.constant 0 : index
    %c0_114 = arith.constant 0 : index
    %155 = vector.load %arg5[%c0_113, %c0_114] : memref<204x128xf32, #tpu.memory_space<vmem>>, vector<204x128xf32>
    tpu.vector_store %arg5[%c0_113, %c0_114], %154 {strides = array<i32>} : memref<204x128xf32, #tpu.memory_space<vmem>>, vector<204x128xf32>,
    %c0_115 = arith.constant 0 : index
    %c0_116 = arith.constant 0 : index
    %156 = vector.load %arg5[%c0_115, %c0_116] : memref<204x128xf32, #tpu.memory_space<vmem>>, vector<200x128xf32>
    %c0_117 = arith.constant 0 : index
    %c0_118 = arith.constant 0 : index
    %157 = vector.load %arg2[%c0_117, %c0_118] : memref<504x128xf32, #tpu.memory_space<vmem>>, vector<1x128xf32>
    %158 = vector.broadcast %157 : vector<1x128xf32> to vector<200x128xf32>
    %159 = arith.mulf %156, %158 : vector<200x128xf32>
    %c1_119 = arith.constant 1 : index
    %c0_120 = arith.constant 0 : index
    %160 = vector.load %arg5[%c1_119, %c0_120] : memref<204x128xf32, #tpu.memory_space<vmem>>, vector<200x128xf32>
    %c1_121 = arith.constant 1 : index
    %c0_122 = arith.constant 0 : index
    %161 = vector.load %arg2[%c1_121, %c0_122] : memref<504x128xf32, #tpu.memory_space<vmem>>, vector<1x128xf32>
    %162 = vector.broadcast %161 : vector<1x128xf32> to vector<200x128xf32>
    %163 = arith.mulf %160, %162 : vector<200x128xf32>
    %164 = arith.addf %159, %163 : vector<200x128xf32>
    %c2_123 = arith.constant 2 : index
    %c0_124 = arith.constant 0 : index
    %165 = vector.load %arg5[%c2_123, %c0_124] : memref<204x128xf32, #tpu.memory_space<vmem>>, vector<200x128xf32>
    %c2_125 = arith.constant 2 : index
    %c0_126 = arith.constant 0 : index
    %166 = vector.load %arg2[%c2_125, %c0_126] : memref<504x128xf32, #tpu.memory_space<vmem>>, vector<1x128xf32>
    %167 = vector.broadcast %166 : vector<1x128xf32> to vector<200x128xf32>
    %168 = arith.mulf %165, %167 : vector<200x128xf32>
    %169 = arith.addf %164, %168 : vector<200x128xf32>
    %c3_127 = arith.constant 3 : index
    %c0_128 = arith.constant 0 : index
    %170 = vector.load %arg5[%c3_127, %c0_128] : memref<204x128xf32, #tpu.memory_space<vmem>>, vector<200x128xf32>
    %c3_129 = arith.constant 3 : index
    %c0_130 = arith.constant 0 : index
    %171 = vector.load %arg2[%c3_129, %c0_130] : memref<504x128xf32, #tpu.memory_space<vmem>>, vector<1x128xf32>
    %172 = vector.broadcast %171 : vector<1x128xf32> to vector<200x128xf32>
    %173 = arith.mulf %170, %172 : vector<200x128xf32>
    %174 = arith.addf %169, %173 : vector<200x128xf32>
    %c4_131 = arith.constant 4 : index
    %c0_132 = arith.constant 0 : index
    %175 = vector.load %arg5[%c4_131, %c0_132] : memref<204x128xf32, #tpu.memory_space<vmem>>, vector<200x128xf32>
    %c4_133 = arith.constant 4 : index
    %c0_134 = arith.constant 0 : index
    %176 = vector.load %arg2[%c4_133, %c0_134] : memref<504x128xf32, #tpu.memory_space<vmem>>, vector<1x128xf32>
    %177 = vector.broadcast %176 : vector<1x128xf32> to vector<200x128xf32>
    %178 = arith.mulf %175, %177 : vector<200x128xf32>
    %179 = arith.addf %174, %178 : vector<200x128xf32>
    %cst_135 = arith.constant dense<0.000000e+00> : vector<128xf32>
    %180 = vector.multi_reduction <add>, %179, %cst_135 [0] : vector<200x128xf32> to vector<128xf32>
    %181 = vector.shape_cast %180 : vector<128xf32> to vector<1x128xf32>
    %182 = arith.mulf %179, %179 : vector<200x128xf32>
    %cst_136 = arith.constant dense<0.000000e+00> : vector<128xf32>
    %183 = vector.multi_reduction <add>, %182, %cst_136 [0] : vector<200x128xf32> to vector<128xf32>
    %184 = vector.shape_cast %183 : vector<128xf32> to vector<1x128xf32>
    %cst_137 = arith.constant 5.000000e-03 : f32
    %185 = vector.broadcast %cst_137 : f32 to vector<1x128xf32>
    %186 = arith.mulf %181, %185 : vector<1x128xf32>
    %cst_138 = arith.constant 5.000000e-03 : f32
    %187 = vector.broadcast %cst_138 : f32 to vector<1x128xf32>
    %188 = arith.mulf %184, %187 : vector<1x128xf32>
    %189 = arith.mulf %186, %186 : vector<1x128xf32>
    %190 = arith.subf %188, %189 : vector<1x128xf32>
    %191 = vector.broadcast %186 : vector<1x128xf32> to vector<200x128xf32>
    %192 = arith.subf %179, %191 : vector<200x128xf32>
    %cst_139 = arith.constant 9.99999974E-6 : f32
    %193 = vector.broadcast %cst_139 : f32 to vector<1x128xf32>
    %194 = arith.addf %190, %193 : vector<1x128xf32>
    %195 = math.rsqrt %194 : vector<1x128xf32>
    %196 = vector.broadcast %195 : vector<1x128xf32> to vector<200x128xf32>
    %197 = arith.mulf %192, %196 : vector<200x128xf32>
    %cst_140 = arith.constant 0.000000e+00 : f32
    %198 = vector.broadcast %cst_140 : f32 to vector<200x128xf32>
    %199 = arith.cmpf ogt, %197, %198 : vector<200x128xf32>
    %200 = vector.broadcast %0 : vector<1x128xf32> to vector<200x128xf32>
    %201 = arith.mulf %200, %197 : vector<200x128xf32>
    %202 = arith.select %199, %197, %201 : vector<200x128xi1>, vector<200x128xf32>
    %c0_141 = arith.constant 0 : index
    %c0_142 = arith.constant 0 : index
    %203 = vector.load %arg7[%c0_141, %c0_142] : memref<200x128xf32, #tpu.memory_space<vmem>>, vector<200x128xf32>
    tpu.vector_store %arg7[%c0_141, %c0_142], %202 {strides = array<i32>} : memref<200x128xf32, #tpu.memory_space<vmem>>, vector<200x128xf32>,
    %c0_143 = arith.constant 0 : index
    %c0_144 = arith.constant 0 : index
    %204 = tpu.strided_load %arg7[%c0_143, %c0_144] {strides = array<i32: 5, 1>} : memref<200x128xf32, #tpu.memory_space<vmem>>, vector<40x128xf32>
    %c1_145 = arith.constant 1 : index
    %c0_146 = arith.constant 0 : index
    %205 = tpu.strided_load %arg7[%c1_145, %c0_146] {strides = array<i32: 5, 1>} : memref<200x128xf32, #tpu.memory_space<vmem>>, vector<40x128xf32>
    %206 = arith.maximumf %204, %205 : vector<40x128xf32>
    %c2_147 = arith.constant 2 : index
    %c0_148 = arith.constant 0 : index
    %207 = tpu.strided_load %arg7[%c2_147, %c0_148] {strides = array<i32: 5, 1>} : memref<200x128xf32, #tpu.memory_space<vmem>>, vector<40x128xf32>
    %208 = arith.maximumf %206, %207 : vector<40x128xf32>
    %c3_149 = arith.constant 3 : index
    %c0_150 = arith.constant 0 : index
    %209 = tpu.strided_load %arg7[%c3_149, %c0_150] {strides = array<i32: 5, 1>} : memref<200x128xf32, #tpu.memory_space<vmem>>, vector<40x128xf32>
    %210 = arith.maximumf %208, %209 : vector<40x128xf32>
    %c4_151 = arith.constant 4 : index
    %c0_152 = arith.constant 0 : index
    %211 = tpu.strided_load %arg7[%c4_151, %c0_152] {strides = array<i32: 5, 1>} : memref<200x128xf32, #tpu.memory_space<vmem>>, vector<40x128xf32>
    %212 = arith.maximumf %210, %211 : vector<40x128xf32>
    %c0_153 = arith.constant 0 : index
    %c0_154 = arith.constant 0 : index
    %213 = vector.load %arg9[%c0_153, %c0_154] : memref<50x128xf32, #tpu.memory_space<vmem>>, vector<5x128xf32>
    tpu.vector_store %arg9[%c0_153, %c0_154], %2 {strides = array<i32>} : memref<50x128xf32, #tpu.memory_space<vmem>>, vector<5x128xf32>,
    %c45_155 = arith.constant 45 : index
    %c0_156 = arith.constant 0 : index
    %214 = vector.load %arg9[%c45_155, %c0_156] : memref<50x128xf32, #tpu.memory_space<vmem>>, vector<5x128xf32>
    tpu.vector_store %arg9[%c45_155, %c0_156], %2 {strides = array<i32>} : memref<50x128xf32, #tpu.memory_space<vmem>>, vector<5x128xf32>,
    %c5_157 = arith.constant 5 : index
    %c0_158 = arith.constant 0 : index
    %215 = vector.load %arg9[%c5_157, %c0_158] : memref<50x128xf32, #tpu.memory_space<vmem>>, vector<40x128xf32>
    tpu.vector_store %arg9[%c5_157, %c0_158], %212 {strides = array<i32>} : memref<50x128xf32, #tpu.memory_space<vmem>>, vector<40x128xf32>,
    %c0_159 = arith.constant 0 : index
    %c0_160 = arith.constant 0 : index
    %216 = vector.load %arg9[%c0_159, %c0_160] : memref<50x128xf32, #tpu.memory_space<vmem>>, vector<41x128xf32>
    %c0_161 = arith.constant 0 : index
    %c0_162 = arith.constant 0 : index
    %217 = vector.load %arg11[%c0_161, %c0_162] : memref<41x1280xf32, #tpu.memory_space<vmem>>, vector<41x128xf32>
    tpu.vector_store %arg11[%c0_161, %c0_162], %216 {strides = array<i32>} : memref<41x1280xf32, #tpu.memory_space<vmem>>, vector<41x128xf32>,
    %c1_163 = arith.constant 1 : index
    %c0_164 = arith.constant 0 : index
    %218 = vector.load %arg9[%c1_163, %c0_164] : memref<50x128xf32, #tpu.memory_space<vmem>>, vector<41x128xf32>
    %c0_165 = arith.constant 0 : index
    %c128_166 = arith.constant 128 : index
    %219 = vector.load %arg11[%c0_165, %c128_166] : memref<41x1280xf32, #tpu.memory_space<vmem>>, vector<41x128xf32>
    tpu.vector_store %arg11[%c0_165, %c128_166], %218 {strides = array<i32>} : memref<41x1280xf32, #tpu.memory_space<vmem>>, vector<41x128xf32>,
    %c2_167 = arith.constant 2 : index
    %c0_168 = arith.constant 0 : index
    %220 = vector.load %arg9[%c2_167, %c0_168] : memref<50x128xf32, #tpu.memory_space<vmem>>, vector<41x128xf32>
    %c0_169 = arith.constant 0 : index
    %c256_170 = arith.constant 256 : index
    %221 = vector.load %arg11[%c0_169, %c256_170] : memref<41x1280xf32, #tpu.memory_space<vmem>>, vector<41x128xf32>
    tpu.vector_store %arg11[%c0_169, %c256_170], %220 {strides = array<i32>} : memref<41x1280xf32, #tpu.memory_space<vmem>>, vector<41x128xf32>,
    %c3_171 = arith.constant 3 : index
    %c0_172 = arith.constant 0 : index
    %222 = vector.load %arg9[%c3_171, %c0_172] : memref<50x128xf32, #tpu.memory_space<vmem>>, vector<41x128xf32>
    %c0_173 = arith.constant 0 : index
    %c384_174 = arith.constant 384 : index
    %223 = vector.load %arg11[%c0_173, %c384_174] : memref<41x1280xf32, #tpu.memory_space<vmem>>, vector<41x128xf32>
    tpu.vector_store %arg11[%c0_173, %c384_174], %222 {strides = array<i32>} : memref<41x1280xf32, #tpu.memory_space<vmem>>, vector<41x128xf32>,
    %c4_175 = arith.constant 4 : index
    %c0_176 = arith.constant 0 : index
    %224 = vector.load %arg9[%c4_175, %c0_176] : memref<50x128xf32, #tpu.memory_space<vmem>>, vector<41x128xf32>
    %c0_177 = arith.constant 0 : index
    %c512_178 = arith.constant 512 : index
    %225 = vector.load %arg11[%c0_177, %c512_178] : memref<41x1280xf32, #tpu.memory_space<vmem>>, vector<41x128xf32>
    tpu.vector_store %arg11[%c0_177, %c512_178], %224 {strides = array<i32>} : memref<41x1280xf32, #tpu.memory_space<vmem>>, vector<41x128xf32>,
    %c5_179 = arith.constant 5 : index
    %c0_180 = arith.constant 0 : index
    %226 = vector.load %arg9[%c5_179, %c0_180] : memref<50x128xf32, #tpu.memory_space<vmem>>, vector<41x128xf32>
    %c0_181 = arith.constant 0 : index
    %c640_182 = arith.constant 640 : index
    %227 = vector.load %arg11[%c0_181, %c640_182] : memref<41x1280xf32, #tpu.memory_space<vmem>>, vector<41x128xf32>
    tpu.vector_store %arg11[%c0_181, %c640_182], %226 {strides = array<i32>} : memref<41x1280xf32, #tpu.memory_space<vmem>>, vector<41x128xf32>,
    %c6_183 = arith.constant 6 : index
    %c0_184 = arith.constant 0 : index
    %228 = vector.load %arg9[%c6_183, %c0_184] : memref<50x128xf32, #tpu.memory_space<vmem>>, vector<41x128xf32>
    %c0_185 = arith.constant 0 : index
    %c768_186 = arith.constant 768 : index
    %229 = vector.load %arg11[%c0_185, %c768_186] : memref<41x1280xf32, #tpu.memory_space<vmem>>, vector<41x128xf32>
    tpu.vector_store %arg11[%c0_185, %c768_186], %228 {strides = array<i32>} : memref<41x1280xf32, #tpu.memory_space<vmem>>, vector<41x128xf32>,
    %c7_187 = arith.constant 7 : index
    %c0_188 = arith.constant 0 : index
    %230 = vector.load %arg9[%c7_187, %c0_188] : memref<50x128xf32, #tpu.memory_space<vmem>>, vector<41x128xf32>
    %c0_189 = arith.constant 0 : index
    %c896_190 = arith.constant 896 : index
    %231 = vector.load %arg11[%c0_189, %c896_190] : memref<41x1280xf32, #tpu.memory_space<vmem>>, vector<41x128xf32>
    tpu.vector_store %arg11[%c0_189, %c896_190], %230 {strides = array<i32>} : memref<41x1280xf32, #tpu.memory_space<vmem>>, vector<41x128xf32>,
    %c8_191 = arith.constant 8 : index
    %c0_192 = arith.constant 0 : index
    %232 = vector.load %arg9[%c8_191, %c0_192] : memref<50x128xf32, #tpu.memory_space<vmem>>, vector<41x128xf32>
    %c0_193 = arith.constant 0 : index
    %c1024_194 = arith.constant 1024 : index
    %233 = vector.load %arg11[%c0_193, %c1024_194] : memref<41x1280xf32, #tpu.memory_space<vmem>>, vector<41x128xf32>
    tpu.vector_store %arg11[%c0_193, %c1024_194], %232 {strides = array<i32>} : memref<41x1280xf32, #tpu.memory_space<vmem>>, vector<41x128xf32>,
    %c9_195 = arith.constant 9 : index
    %c0_196 = arith.constant 0 : index
    %234 = vector.load %arg9[%c9_195, %c0_196] : memref<50x128xf32, #tpu.memory_space<vmem>>, vector<41x128xf32>
    %c0_197 = arith.constant 0 : index
    %c1152_198 = arith.constant 1152 : index
    %235 = vector.load %arg11[%c0_197, %c1152_198] : memref<41x1280xf32, #tpu.memory_space<vmem>>, vector<41x128xf32>
    tpu.vector_store %arg11[%c0_197, %c1152_198], %234 {strides = array<i32>} : memref<41x1280xf32, #tpu.memory_space<vmem>>, vector<41x128xf32>,
    %c0_199 = arith.constant 0 : index
    %c0_200 = arith.constant 0 : index
    %236 = vector.load %arg11[%c0_199, %c0_200] : memref<41x1280xf32, #tpu.memory_space<vmem>>, vector<41x1280xf32>
    %c0_201 = arith.constant 0 : index
    %c0_202 = arith.constant 0 : index
    %237 = vector.load %arg1[%c0_201, %c0_202] : memref<1280x64xf32, #tpu.memory_space<vmem>>, vector<1280x64xf32>
    %cst_203 = arith.constant dense<0.000000e+00> : vector<41x64xf32>
    %238 = tpu.matmul %236, %237, %cst_203 {dimension_numbers = #tpu.dot_dimension_numbers<[1], [0], [0], [1], [0, 0, 1, 1], [], []>} : vector<41x1280xf32>, vector<1280x64xf32>, vector<41x64xf32> -> vector<41x64xf32>
    %cst_204 = arith.constant dense<0.000000e+00> : vector<64xf32>
    %239 = vector.multi_reduction <add>, %238, %cst_204 [0] : vector<41x64xf32> to vector<64xf32>
    %240 = vector.shape_cast %239 : vector<64xf32> to vector<1x64xf32>
    %241 = arith.mulf %238, %238 : vector<41x64xf32>
    %cst_205 = arith.constant dense<0.000000e+00> : vector<64xf32>
    %242 = vector.multi_reduction <add>, %241, %cst_205 [0] : vector<41x64xf32> to vector<64xf32>
    %243 = vector.shape_cast %242 : vector<64xf32> to vector<1x64xf32>
    %cst_206 = arith.constant 0.024390243 : f32
    %244 = vector.broadcast %cst_206 : f32 to vector<1x64xf32>
    %245 = arith.mulf %240, %244 : vector<1x64xf32>
    %cst_207 = arith.constant 0.024390243 : f32
    %246 = vector.broadcast %cst_207 : f32 to vector<1x64xf32>
    %247 = arith.mulf %243, %246 : vector<1x64xf32>
    %248 = arith.mulf %245, %245 : vector<1x64xf32>
    %249 = arith.subf %247, %248 : vector<1x64xf32>
    %250 = vector.extract_strided_slice %238 {offsets = [0, 0], sizes = [40, 64], strides = [1, 1]} : vector<41x64xf32> to vector<40x64xf32>
    %251 = vector.broadcast %245 : vector<1x64xf32> to vector<40x64xf32>
    %252 = arith.subf %250, %251 : vector<40x64xf32>
    %cst_208 = arith.constant 9.99999974E-6 : f32
    %253 = vector.broadcast %cst_208 : f32 to vector<1x64xf32>
    %254 = arith.addf %249, %253 : vector<1x64xf32>
    %255 = math.rsqrt %254 : vector<1x64xf32>
    %256 = vector.broadcast %255 : vector<1x64xf32> to vector<40x64xf32>
    %257 = arith.mulf %252, %256 : vector<40x64xf32>
    %cst_209 = arith.constant 0.000000e+00 : f32
    %258 = vector.broadcast %cst_209 : f32 to vector<40x64xf32>
    %259 = arith.cmpf ogt, %257, %258 : vector<40x64xf32>
    %260 = vector.broadcast %1 : vector<1x64xf32> to vector<40x64xf32>
    %261 = arith.mulf %260, %257 : vector<40x64xf32>
    %262 = arith.select %259, %257, %261 : vector<40x64xi1>, vector<40x64xf32>
    %c0_210 = arith.constant 0 : index
    %c0_211 = arith.constant 0 : index
    %263 = vector.load %arg7[%c0_210, %c0_211] : memref<200x128xf32, #tpu.memory_space<vmem>>, vector<40x64xf32>
    tpu.vector_store %arg7[%c0_210, %c0_211], %262 {strides = array<i32>} : memref<200x128xf32, #tpu.memory_space<vmem>>, vector<40x64xf32>,
    %c0_212 = arith.constant 0 : index
    %c0_213 = arith.constant 0 : index
    %264 = tpu.strided_load %arg7[%c0_212, %c0_213] {strides = array<i32: 10, 1>} : memref<200x128xf32, #tpu.memory_space<vmem>>, vector<4x64xf32>
    %c1_214 = arith.constant 1 : index
    %c0_215 = arith.constant 0 : index
    %265 = tpu.strided_load %arg7[%c1_214, %c0_215] {strides = array<i32: 10, 1>} : memref<200x128xf32, #tpu.memory_space<vmem>>, vector<4x64xf32>
    %266 = arith.maximumf %264, %265 : vector<4x64xf32>
    %c2_216 = arith.constant 2 : index
    %c0_217 = arith.constant 0 : index
    %267 = tpu.strided_load %arg7[%c2_216, %c0_217] {strides = array<i32: 10, 1>} : memref<200x128xf32, #tpu.memory_space<vmem>>, vector<4x64xf32>
    %268 = arith.maximumf %266, %267 : vector<4x64xf32>
    %c3_218 = arith.constant 3 : index
    %c0_219 = arith.constant 0 : index
    %269 = tpu.strided_load %arg7[%c3_218, %c0_219] {strides = array<i32: 10, 1>} : memref<200x128xf32, #tpu.memory_space<vmem>>, vector<4x64xf32>
    %270 = arith.maximumf %268, %269 : vector<4x64xf32>
    %c4_220 = arith.constant 4 : index
    %c0_221 = arith.constant 0 : index
    %271 = tpu.strided_load %arg7[%c4_220, %c0_221] {strides = array<i32: 10, 1>} : memref<200x128xf32, #tpu.memory_space<vmem>>, vector<4x64xf32>
    %272 = arith.maximumf %270, %271 : vector<4x64xf32>
    %c5_222 = arith.constant 5 : index
    %c0_223 = arith.constant 0 : index
    %273 = tpu.strided_load %arg7[%c5_222, %c0_223] {strides = array<i32: 10, 1>} : memref<200x128xf32, #tpu.memory_space<vmem>>, vector<4x64xf32>
    %274 = arith.maximumf %272, %273 : vector<4x64xf32>
    %c6_224 = arith.constant 6 : index
    %c0_225 = arith.constant 0 : index
    %275 = tpu.strided_load %arg7[%c6_224, %c0_225] {strides = array<i32: 10, 1>} : memref<200x128xf32, #tpu.memory_space<vmem>>, vector<4x64xf32>
    %276 = arith.maximumf %274, %275 : vector<4x64xf32>
    %c7_226 = arith.constant 7 : index
    %c0_227 = arith.constant 0 : index
    %277 = tpu.strided_load %arg7[%c7_226, %c0_227] {strides = array<i32: 10, 1>} : memref<200x128xf32, #tpu.memory_space<vmem>>, vector<4x64xf32>
    %278 = arith.maximumf %276, %277 : vector<4x64xf32>
    %c8_228 = arith.constant 8 : index
    %c0_229 = arith.constant 0 : index
    %279 = tpu.strided_load %arg7[%c8_228, %c0_229] {strides = array<i32: 10, 1>} : memref<200x128xf32, #tpu.memory_space<vmem>>, vector<4x64xf32>
    %280 = arith.maximumf %278, %279 : vector<4x64xf32>
    %c9_230 = arith.constant 9 : index
    %c0_231 = arith.constant 0 : index
    %281 = tpu.strided_load %arg7[%c9_230, %c0_231] {strides = array<i32: 10, 1>} : memref<200x128xf32, #tpu.memory_space<vmem>>, vector<4x64xf32>
    %282 = arith.maximumf %280, %281 : vector<4x64xf32>
    %cst_232 = arith.constant dense<0xFF800000> : vector<64xf32>
    %283 = vector.multi_reduction <maximumf>, %282, %cst_232 [0] : vector<4x64xf32> to vector<64xf32>
    %284 = vector.shape_cast %283 : vector<64xf32> to vector<1x64xf32>
    %285 = vector.broadcast %284 : vector<1x64xf32> to vector<4x64xf32>
    %286 = arith.subf %282, %285 : vector<4x64xf32>
    %287 = math.exp %286 : vector<4x64xf32>
    %cst_233 = arith.constant dense<0.000000e+00> : vector<64xf32>
    %288 = vector.multi_reduction <add>, %287, %cst_233 [0] : vector<4x64xf32> to vector<64xf32>
    %289 = vector.shape_cast %288 : vector<64xf32> to vector<1x64xf32>
    %290 = tpu.reciprocal %289 : vector<1x64xf32> -> vector<1x64xf32>
    %291 = vector.broadcast %290 : vector<1x64xf32> to vector<4x64xf32>
    %292 = arith.mulf %287, %291 : vector<4x64xf32>
    %293 = vector.extract_strided_slice %292 {offsets = [0, 0], sizes = [1, 64], strides = [1, 1]} : vector<4x64xf32> to vector<1x64xf32>
    %c1_234 = arith.constant 1 : index
    %c0_235 = arith.constant 0 : index
    %294 = vector.load %arg12[%c1_234, %c0_235] : memref<2x256xf32, #tpu.memory_space<vmem>>, vector<1x64xf32>
    tpu.vector_store %arg12[%c1_234, %c0_235], %293 {strides = array<i32>} : memref<2x256xf32, #tpu.memory_space<vmem>>, vector<1x64xf32>,
    %295 = vector.extract_strided_slice %292 {offsets = [1, 0], sizes = [1, 64], strides = [1, 1]} : vector<4x64xf32> to vector<1x64xf32>
    %c1_236 = arith.constant 1 : index
    %c64_237 = arith.constant 64 : index
    %296 = vector.load %arg12[%c1_236, %c64_237] : memref<2x256xf32, #tpu.memory_space<vmem>>, vector<1x64xf32>
    tpu.vector_store %arg12[%c1_236, %c64_237], %295 {strides = array<i32>} : memref<2x256xf32, #tpu.memory_space<vmem>>, vector<1x64xf32>,
    %297 = vector.extract_strided_slice %292 {offsets = [2, 0], sizes = [1, 64], strides = [1, 1]} : vector<4x64xf32> to vector<1x64xf32>
    %c1_238 = arith.constant 1 : index
    %c128_239 = arith.constant 128 : index
    %298 = vector.load %arg12[%c1_238, %c128_239] : memref<2x256xf32, #tpu.memory_space<vmem>>, vector<1x64xf32>
    tpu.vector_store %arg12[%c1_238, %c128_239], %297 {strides = array<i32>} : memref<2x256xf32, #tpu.memory_space<vmem>>, vector<1x64xf32>,
    %299 = vector.extract_strided_slice %292 {offsets = [3, 0], sizes = [1, 64], strides = [1, 1]} : vector<4x64xf32> to vector<1x64xf32>
    %c1_240 = arith.constant 1 : index
    %c192_241 = arith.constant 192 : index
    %300 = vector.load %arg12[%c1_240, %c192_241] : memref<2x256xf32, #tpu.memory_space<vmem>>, vector<1x64xf32>
    tpu.vector_store %arg12[%c1_240, %c192_241], %299 {strides = array<i32>} : memref<2x256xf32, #tpu.memory_space<vmem>>, vector<1x64xf32>,
    %c490 = arith.constant 490 : index
    %c0_242 = arith.constant 0 : index
    %301 = vector.load %arg2[%c490, %c0_242] : memref<504x128xf32, #tpu.memory_space<vmem>>, vector<1x128xf32>
    %c491 = arith.constant 491 : index
    %c0_243 = arith.constant 0 : index
    %302 = vector.load %arg2[%c491, %c0_243] : memref<504x128xf32, #tpu.memory_space<vmem>>, vector<1x128xf32>
    %c492 = arith.constant 492 : index
    %c0_244 = arith.constant 0 : index
    %303 = vector.load %arg2[%c492, %c0_244] : memref<504x128xf32, #tpu.memory_space<vmem>>, vector<1x64xf32>
    %c493 = arith.constant 493 : index
    %c0_245 = arith.constant 0 : index
    %304 = vector.load %arg2[%c493, %c0_245] : memref<504x128xf32, #tpu.memory_space<vmem>>, vector<1x64xf32>
    %c494 = arith.constant 494 : index
    %c0_246 = arith.constant 0 : index
    %305 = vector.load %arg2[%c494, %c0_246] : memref<504x128xf32, #tpu.memory_space<vmem>>, vector<1x32xf32>
    %c495 = arith.constant 495 : index
    %c0_247 = arith.constant 0 : index
    %306 = vector.load %arg2[%c495, %c0_247] : memref<504x128xf32, #tpu.memory_space<vmem>>, vector<1x32xf32>
    %c496 = arith.constant 496 : index
    %c0_248 = arith.constant 0 : index
    %307 = vector.load %arg2[%c496, %c0_248] : memref<504x128xf32, #tpu.memory_space<vmem>>, vector<1x1xf32>
    %c0_249 = arith.constant 0 : index
    %c0_250 = arith.constant 0 : index
    %308 = vector.load %arg12[%c0_249, %c0_250] : memref<2x256xf32, #tpu.memory_space<vmem>>, vector<2x256xf32>
    %c8_251 = arith.constant 8 : index
    %c0_252 = arith.constant 0 : index
    %309 = vector.load %arg2[%c8_251, %c0_252] : memref<504x128xf32, #tpu.memory_space<vmem>>, vector<256x128xf32>
    %cst_253 = arith.constant dense<0.000000e+00> : vector<2x128xf32>
    %310 = tpu.matmul %308, %309, %cst_253 {dimension_numbers = #tpu.dot_dimension_numbers<[1], [0], [0], [1], [0, 0, 1, 1], [], []>} : vector<2x256xf32>, vector<256x128xf32>, vector<2x128xf32> -> vector<2x128xf32>
    %311 = vector.broadcast %301 : vector<1x128xf32> to vector<2x128xf32>
    %312 = arith.addf %310, %311 : vector<2x128xf32>
    %cst_254 = arith.constant 0.000000e+00 : f32
    %313 = vector.broadcast %cst_254 : f32 to vector<2x128xf32>
    %314 = arith.cmpf ogt, %312, %313 : vector<2x128xf32>
    %315 = vector.broadcast %302 : vector<1x128xf32> to vector<2x128xf32>
    %316 = arith.mulf %315, %312 : vector<2x128xf32>
    %317 = arith.select %314, %312, %316 : vector<2x128xi1>, vector<2x128xf32>
    %c264 = arith.constant 264 : index
    %c0_255 = arith.constant 0 : index
    %318 = vector.load %arg2[%c264, %c0_255] : memref<504x128xf32, #tpu.memory_space<vmem>>, vector<128x64xf32>
    %cst_256 = arith.constant dense<0.000000e+00> : vector<2x64xf32>
    %319 = tpu.matmul %317, %318, %cst_256 {dimension_numbers = #tpu.dot_dimension_numbers<[1], [0], [0], [1], [0, 0, 1, 1], [], []>} : vector<2x128xf32>, vector<128x64xf32>, vector<2x64xf32> -> vector<2x64xf32>
    %320 = vector.broadcast %303 : vector<1x64xf32> to vector<2x64xf32>
    %321 = arith.addf %319, %320 : vector<2x64xf32>
    %cst_257 = arith.constant 0.000000e+00 : f32
    %322 = vector.broadcast %cst_257 : f32 to vector<2x64xf32>
    %323 = arith.cmpf ogt, %321, %322 : vector<2x64xf32>
    %324 = vector.broadcast %304 : vector<1x64xf32> to vector<2x64xf32>
    %325 = arith.mulf %324, %321 : vector<2x64xf32>
    %326 = arith.select %323, %321, %325 : vector<2x64xi1>, vector<2x64xf32>
    %c392 = arith.constant 392 : index
    %c0_258 = arith.constant 0 : index
    %327 = vector.load %arg2[%c392, %c0_258] : memref<504x128xf32, #tpu.memory_space<vmem>>, vector<64x32xf32>
    %cst_259 = arith.constant dense<0.000000e+00> : vector<2x32xf32>
    %328 = tpu.matmul %326, %327, %cst_259 {dimension_numbers = #tpu.dot_dimension_numbers<[1], [0], [0], [1], [0, 0, 1, 1], [], []>} : vector<2x64xf32>, vector<64x32xf32>, vector<2x32xf32> -> vector<2x32xf32>
    %329 = vector.broadcast %305 : vector<1x32xf32> to vector<2x32xf32>
    %330 = arith.addf %328, %329 : vector<2x32xf32>
    %cst_260 = arith.constant 0.000000e+00 : f32
    %331 = vector.broadcast %cst_260 : f32 to vector<2x32xf32>
    %332 = arith.cmpf ogt, %330, %331 : vector<2x32xf32>
    %333 = vector.broadcast %306 : vector<1x32xf32> to vector<2x32xf32>
    %334 = arith.mulf %333, %330 : vector<2x32xf32>
    %335 = arith.select %332, %330, %334 : vector<2x32xi1>, vector<2x32xf32>
    %c456 = arith.constant 456 : index
    %c0_261 = arith.constant 0 : index
    %336 = vector.load %arg2[%c456, %c0_261] : memref<504x128xf32, #tpu.memory_space<vmem>>, vector<32x1xf32>
    %cst_262 = arith.constant dense<0.000000e+00> : vector<2x1xf32>
    %337 = tpu.matmul %335, %336, %cst_262 {dimension_numbers = #tpu.dot_dimension_numbers<[1], [0], [0], [1], [0, 0, 1, 1], [], []>} : vector<2x32xf32>, vector<32x1xf32>, vector<2x1xf32> -> vector<2x1xf32>
    %338 = vector.broadcast %307 : vector<1x1xf32> to vector<2x1xf32>
    %339 = arith.addf %337, %338 : vector<2x1xf32>
    %c0_263 = arith.constant 0 : index
    %c0_264 = arith.constant 0 : index
    %340 = vector.load %arg3[%c0_263, %c0_264] : memref<2x1xf32, #tpu.memory_space<vmem>>, vector<2x1xf32>
    tpu.vector_store %arg3[%c0_263, %c0_264], %339 {strides = array<i32>} : memref<2x1xf32, #tpu.memory_space<vmem>>, vector<2x1xf32>,
    return
  }
}

</mosaic_0001>

<bundles_post_ra>
// kernel: rv_estimator_forward.1
= control target key start
LH: loop header
LB: loop body
LE: loop exit
PB: predicated region body
PF: predicated region fallthrough
CT: control target
= control target key end

     0   :  { %v3725_v0 = vmov 0   ;;  %v3726_v27 = vmov 1   ;;  %s3728_s17 = smov 64   ;;  %s6655_s0 = inlined_call_operand.vmem [shape: f32[204,2], index: 0, kind: input, shape index: {}]   ;;  %s6656_s2 = inlined_call_operand.vmem [shape: f32[504,128], index: 2, kind: input, shape index: {}]   ;;  %s6657_s1 = inlined_call_operand.vmem [shape: f32[1280,64], index: 1, kind: input, shape index: {}]   ;;  %s6658_s3 = inlined_call_operand.vmem [shape: f32[2,1], index: 3, kind: output, shape index: {}]  }
   0x1   :  { %3679 = vset.pattern.permute.xlu2 %v3725_v0  ;;  %3678 = vset.pattern.permute.xlu1 %v3725_v0  ;;  %v20_v1 = vld [vmem:[%s6655_s0 + $0x20] sm:$0xff]  ;;  %v18_v2 = vld [vmem:[%s6655_s0 + $0x10] sm:$0xff]  ;;  %v21_v4 = vld [vmem:[%s6655_s0 + $0x28] sm:$0xff] }
   0x2   :  { %v16_v3 = vld [vmem:[%s6655_s0] sm:$0xff]  ;;  %3677 = vset.pattern.permute.xlu0 %v3725_v0  ;;  %64 = vperm.xlu2 %3679, %v20_v1   ;;  %v19_v5 = vld [vmem:[%s6655_s0 + $0x18] sm:$0xff]  ;;  %v17_v6 = vld [vmem:[%s6655_s0 + $0x8] sm:$0xff] }
   0x3   :  { %54 = vperm.xlu1 %3678, %v18_v2   ;;  %44 = vperm.xlu0 %3677, %v16_v3   ;;  %v24_v7 = vld [vmem:[%s6655_s0 + $0x40] sm:$0xff]  ;;  %v23_v8 = vld [vmem:[%s6655_s0 + $0x38] sm:$0xff]  ;;  %v22_v9 = vld [vmem:[%s6655_s0 + $0x30] sm:$0xff] }
   0x4   :  { %v27_v10 = vld [vmem:[%s6655_s0 + $0x58] sm:$0xff]  ;;  %v26_v11 = vld [vmem:[%s6655_s0 + $0x50] sm:$0xff]  ;;  %v25_v12 = vld [vmem:[%s6655_s0 + $0x48] sm:$0xff] }
   0x5   :  { %v30_v13 = vld [vmem:[%s6655_s0 + $0x70] sm:$0xff]  ;;  %v29_v14 = vld [vmem:[%s6655_s0 + $0x68] sm:$0xff]  ;;  %v28_v15 = vld [vmem:[%s6655_s0 + $0x60] sm:$0xff] }
   0x6   :  { %v33_v16 = vld [vmem:[%s6655_s0 + $0x88] sm:$0xff]  ;;  %v32_v17 = vld [vmem:[%s6655_s0 + $0x80] sm:$0xff]  ;;  %v31_v18 = vld [vmem:[%s6655_s0 + $0x78] sm:$0xff] }
   0x7   :  { %v3806_v19 = vld [vmem:[%s6655_s0 + $0xa0] sm:$0xff]  ;;  %v3811_v20 = vld [vmem:[%s6655_s0 + $0x98] sm:$0xff]  ;;  %v34_v21 = vld [vmem:[%s6655_s0 + $0x90] sm:$0xff] }
   0x8   :  { %v3821_v22 = vld [vmem:[%s6655_s0 + $0xb8] sm:$0xff]  ;;  %v3826_v23 = vld [vmem:[%s6655_s0 + $0xb0] sm:$0xff]  ;;  %v3831_v24 = vld [vmem:[%s6655_s0 + $0xa8] sm:$0xff] }
   0x9   :  { %v41_v25 = vld [vmem:[%s6655_s0 + $0xc8] sm:$0xf]  ;;  %v3842_v26 = vld [vmem:[%s6655_s0 + $0xc0] sm:$0xff] }
   0xa   :  { %69 = vperm.xlu2 %3679, %v21_v4   ;;  %v3848_v31 = vld [vmem:[%s6656_s2 + $0x1] ss:$0 sm:$0xff]  ;;  %v3853_v33 = vld [vmem:[%s6656_s2] ss:$0 sm:$0xff]  ;;  %v3859_v35 = vld [vmem:[%s6656_s2 + $0x2] ss:$0 sm:$0xff] }
   0xb   :  { %59 = vperm.xlu1 %3678, %v19_v5   ;;  %49 = vperm.xlu0 %3677, %v17_v6   ;;  %v3865_v39 = vld [vmem:[%s6656_s2 + $0x3] ss:$0 sm:$0xff]  ;;  %v3871_v45 = vld [vmem:[%s6656_s2 + $0x4] ss:$0 sm:$0xff] }
  0x12   :  { %84 = vperm.xlu2 %3679, %v24_v7  }
  0x13   :  { %79 = vperm.xlu1 %3678, %v23_v8   ;;  %74 = vperm.xlu0 %3677, %v22_v9  }
  0x1a   :  { %99 = vperm.xlu2 %3679, %v27_v10  }
  0x1b   :  { %94 = vperm.xlu1 %3678, %v26_v11   ;;  %89 = vperm.xlu0 %3677, %v25_v12  }
  0x22   :  { %114 = vperm.xlu2 %3679, %v30_v13  }
  0x23   :  { %109 = vperm.xlu1 %3678, %v29_v14   ;;  %104 = vperm.xlu0 %3677, %v28_v15  }
  0x2a   :  { %129 = vperm.xlu2 %3679, %v33_v16  }
  0x2b   :  { %124 = vperm.xlu1 %3678, %v32_v17   ;;  %119 = vperm.xlu0 %3677, %v31_v18  }
  0x32   :  { %144 = vperm.xlu2 %3679, %v3806_v19  }
  0x33   :  { %139 = vperm.xlu1 %3678, %v3811_v20   ;;  %134 = vperm.xlu0 %3677, %v34_v21  }
  0x3a   :  { %159 = vperm.xlu2 %3679, %v3821_v22  }
  0x3b   :  { %154 = vperm.xlu1 %3678, %v3826_v23   ;;  %149 = vperm.xlu0 %3677, %v3831_v24  }
  0x42   :  { %3680 = vset.pattern.permute.xlu2 %v3726_v27 }
  0x43   :  { %169 = vperm.xlu1 %3678, %v41_v25   ;;  %164 = vperm.xlu0 %3677, %v3842_v26  }
  0x44   :  { %1771 = vperm.xlu2 %3680, %v16_v3  }
  0x4b   :  { %3682 = vset.pattern.permute.xlu1 %v3726_v27  ;;  %3681 = vset.pattern.permute.xlu0 %v3726_v27 }
  0x4c   :  { %1786 = vperm.xlu2 %3680, %v19_v5   ;;  %1781 = vperm.xlu1 %3682, %v18_v2  }
  0x4d   :  { %1776 = vperm.xlu0 %3681, %v17_v6  }
  0x54   :  { %1796 = vperm.xlu2 %3680, %v21_v4   ;;  %1791 = vperm.xlu1 %3682, %v20_v1  }
  0x55   :  { %1801 = vperm.xlu0 %3681, %v22_v9  }
  0x5c   :  { %1811 = vperm.xlu2 %3680, %v24_v7   ;;  %1806 = vperm.xlu1 %3682, %v23_v8   ;;  %v65_v28 = vpop.permute.xlu2 %64 }
  0x5d   :  { %1816 = vperm.xlu0 %3681, %v25_v12   ;;  %176 = vst [vmem:[#allocation2 + $0x20] sm:$0xff] %v65_v28  ;;  %v229_v34 = vmul.f32 %v3853_v33, %v65_v28 }
  0x64   :  { %1826 = vperm.xlu2 %3680, %v27_v10   ;;  %1821 = vperm.xlu1 %3682, %v26_v11   ;;  %v70_v29 = vpop.permute.xlu2 %69 }
  0x65   :  { %1831 = vperm.xlu0 %3681, %v28_v15   ;;  %177 = vst [vmem:[#allocation2 + $0x28] sm:$0xff] %v70_v29  ;;  %v3881_v55 = vmul.f32 %v3853_v33, %v70_v29 }
  0x6c   :  { %1841 = vperm.xlu2 %3680, %v30_v13   ;;  %1836 = vperm.xlu1 %3682, %v29_v14   ;;  %v85_v30 = vpop.permute.xlu2 %84  ;;  %v254_v32 = vld [vmem:[#allocation2 + $0x21] sm:$0xff] }
  0x6d   :  { %1846 = vperm.xlu0 %3681, %v31_v18   ;;  %180 = vst [vmem:[#allocation2 + $0x40] sm:$0xff] %v85_v30  ;;  %v281_v36 = vmul.f32 %v3848_v31, %v254_v32  ;;  %v331_v37 = vld [vmem:[#allocation2 + $0x22] sm:$0xff]  ;;  %v3884_v56 = vmul.f32 %v3853_v33, %v85_v30 }
  0x6e   :  { %v358_v41 = vmul.f32 %v3859_v35, %v331_v37  ;;  %v408_v44 = vld [vmem:[#allocation2 + $0x23] sm:$0xff] }
  0x6f   :  { %v306_v40 = vadd.f32 %v281_v36, %v229_v34  ;;  %v435_v47 = vmul.f32 %v3865_v39, %v408_v44  ;;  %v485_v48 = vld [vmem:[#allocation2 + $0x24] sm:$0xff]  ;;  %v1768_v30 = vld [vmem:[%s6655_s0 + $0xc8] sm:$0xf] }
  0x70   :  { %v512_v51 = vmul.f32 %v3871_v45, %v485_v48 }
  0x71   :  { %v383_v46 = vadd.f32 %v358_v41, %v306_v40 }
  0x73   :  { %v460_v50 = vadd.f32 %v435_v47, %v383_v46 }
  0x74   :  { %1856 = vperm.xlu2 %3680, %v33_v16   ;;  %1851 = vperm.xlu1 %3682, %v32_v17   ;;  %v100_v38 = vpop.permute.xlu2 %99 }
  0x75   :  { %1861 = vperm.xlu0 %3681, %v34_v21   ;;  %183 = vst [vmem:[#allocation2 + $0x58] sm:$0xff] %v100_v38  ;;  %v55_v42 = vpop.permute.xlu1 %54  ;;  %v45_v43 = vpop.permute.xlu0 %44  ;;  %v3878_v54 = vadd.f32 %v512_v51, %v460_v50  ;;  %v3887_v57 = vmul.f32 %v3853_v33, %v100_v38 }
  0x76   :  { %174 = vst [vmem:[#allocation2 + $0x10] sm:$0xff] %v55_v42  ;;  %v227_v60 = vmul.f32 %v3853_v33, %v55_v42  ;;  %v225_v61 = vmul.f32 %v3853_v33, %v45_v43 }
  0x77   :  { %172 = vst [vmem:[#allocation2] sm:$0xff] %v45_v43  ;;  %v3893_v59 = vmul.f32 %v3878_v54, %v3878_v54 }
  0x7c   :  { %1871 = vperm.xlu2 %3680, %v3806_v19   ;;  %1866 = vperm.xlu1 %3682, %v3811_v20   ;;  %v115_v49 = vpop.permute.xlu2 %114 }
  0x7d   :  { %1876 = vperm.xlu0 %3681, %v3831_v24   ;;  %186 = vst [vmem:[#allocation2 + $0x70] sm:$0xff] %v115_v49  ;;  %v60_v52 = vpop.permute.xlu1 %59  ;;  %v50_v53 = vpop.permute.xlu0 %49  ;;  %v3899_v3 = vmul.f32 %v3853_v33, %v115_v49 }
  0x7e   :  { %175 = vst [vmem:[#allocation2 + $0x18] sm:$0xff] %v60_v52  ;;  %v228_v4 = vmul.f32 %v3853_v33, %v60_v52  ;;  %v226_v13 = vmul.f32 %v3853_v33, %v50_v53 }
  0x7f   :  { %173 = vst [vmem:[#allocation2 + $0x8] sm:$0xff] %v50_v53 }
  0x84   :  { %1886 = vperm.xlu2 %3680, %v3821_v22   ;;  %1881 = vperm.xlu1 %3682, %v3826_v23   ;;  %v130_v58 = vpop.permute.xlu2 %129 }
  0x85   :  { %v252_v62 = vld [vmem:[#allocation2 + $0x11] sm:$0xff]  ;;  %v253_v63 = vld [vmem:[#allocation2 + $0x19] sm:$0xff]  ;;  %1891 = vperm.xlu0 %3681, %v3842_v26   ;;  %189 = vst [vmem:[#allocation2 + $0x88] sm:$0xff] %v130_v58  ;;  %v80_v1 = vpop.permute.xlu1 %79  ;;  %v75_v2 = vpop.permute.xlu0 %74  ;;  %v3907_v15 = vmul.f32 %v3853_v33, %v130_v58 }
  0x86   :  { %v329_v0 = vld [vmem:[#allocation2 + $0x12] sm:$0xff]  ;;  %v279_v5 = vmul.f32 %v3848_v31, %v252_v62  ;;  %v280_v6 = vmul.f32 %v3848_v31, %v253_v63  ;;  %v330_v7 = vld [vmem:[#allocation2 + $0x1a] sm:$0xff]  ;;  %179 = vst [vmem:[#allocation2 + $0x38] sm:$0xff] %v80_v1  ;;  %v232_v16 = vmul.f32 %v3853_v33, %v80_v1  ;;  %v251_v21 = vld [vmem:[#allocation2 + $0x9] sm:$0xff]  ;;  %v231_v29 = vmul.f32 %v3853_v33, %v75_v2 }
  0x87   :  { %v406_v8 = vld [vmem:[#allocation2 + $0x13] sm:$0xff]  ;;  %v407_v9 = vld [vmem:[#allocation2 + $0x1b] sm:$0xff]  ;;  %v356_v10 = vmul.f32 %v3859_v35, %v329_v0  ;;  %178 = vst [vmem:[#allocation2 + $0x30] sm:$0xff] %v75_v2  ;;  %v357_v19 = vmul.f32 %v3859_v35, %v330_v7  ;;  %v328_v23 = vld [vmem:[#allocation2 + $0xa] sm:$0xff]  ;;  %v278_v26 = vmul.f32 %v3848_v31, %v251_v21 }
  0x88   :  { %v483_v11 = vld [vmem:[#allocation2 + $0x14] sm:$0xff]  ;;  %v484_v12 = vld [vmem:[#allocation2 + $0x1c] sm:$0xff]  ;;  %v304_v17 = vadd.f32 %v279_v5, %v227_v60  ;;  %v305_v18 = vadd.f32 %v280_v6, %v228_v4  ;;  %v433_v20 = vmul.f32 %v3865_v39, %v406_v8  ;;  %v434_v24 = vmul.f32 %v3865_v39, %v407_v9  ;;  %v405_v28 = vld [vmem:[#allocation2 + $0xb] sm:$0xff] }
  0x89   :  { %v250_v14 = vld [vmem:[#allocation2 + $0x1] sm:$0xff]  ;;  %v510_v36 = vmul.f32 %v3871_v45, %v483_v11  ;;  %v511_v37 = vmul.f32 %v3871_v45, %v484_v12  ;;  %v482_v40 = vld [vmem:[#allocation2 + $0xc] sm:$0xff]  ;;  %v303_v42 = vadd.f32 %v278_v26, %v226_v13  ;;  %v355_v44 = vmul.f32 %v3859_v35, %v328_v23 }
  0x8a   :  { %v327_v22 = vld [vmem:[#allocation2 + $0x2] sm:$0xff]  ;;  %v277_v25 = vmul.f32 %v3848_v31, %v250_v14  ;;  %v381_v32 = vadd.f32 %v356_v10, %v304_v17  ;;  %v382_v34 = vadd.f32 %v357_v19, %v305_v18  ;;  %v432_v49 = vmul.f32 %v3865_v39, %v405_v28 }
  0x8b   :  { %v404_v27 = vld [vmem:[#allocation2 + $0x3] sm:$0xff]  ;;  %v354_v43 = vmul.f32 %v3859_v35, %v327_v22  ;;  %v380_v52 = vadd.f32 %v355_v44, %v303_v42  ;;  %v509_v58 = vmul.f32 %v3871_v45, %v482_v40 }
  0x8c   :  { %v481_v38 = vld [vmem:[#allocation2 + $0x4] sm:$0xff]  ;;  %v302_v41 = vadd.f32 %v277_v25, %v225_v61  ;;  %v458_v46 = vadd.f32 %v433_v20, %v381_v32  ;;  %v459_v47 = vadd.f32 %v434_v24, %v382_v34  ;;  %v431_v48 = vmul.f32 %v3865_v39, %v404_v27  ;;  %1896 = vperm.xlu1 %3682, %v1768_v30   ;;  %v145_v50 = vpop.permute.xlu2 %144 }
  0x8d   :  { %v508_v53 = vmul.f32 %v3871_v45, %v481_v38  ;;  %v257_v60 = vld [vmem:[#allocation2 + $0x39] sm:$0xff]  ;;  %192 = vst [vmem:[#allocation2 + $0xa0] sm:$0xff] %v145_v50  ;;  %v95_v63 = vpop.permute.xlu1 %94  ;;  %v3927_v0 = vpop.permute.xlu0 %89  ;;  %v3935_v8 = vmul.f32 %v3853_v33, %v145_v50  ;;  %v457_v10 = vadd.f32 %v432_v49, %v380_v52 }
  0x8e   :  { %v379_v51 = vadd.f32 %v354_v43, %v302_v41  ;;  %v334_v61 = vld [vmem:[#allocation2 + $0x3a] sm:$0xff]  ;;  %v3929_v1 = vadd.f32 %v510_v36, %v458_v46  ;;  %v3931_v2 = vadd.f32 %v511_v37, %v459_v47  ;;  %v284_v4 = vmul.f32 %v3848_v31, %v257_v60  ;;  %v255_v6 = vld [vmem:[#allocation2 + $0x29] sm:$0xff]  ;;  %v256_v7 = vld [vmem:[#allocation2 + $0x31] sm:$0xff]  ;;  %182 = vst [vmem:[#allocation2 + $0x50] sm:$0xff] %v95_v63 }
  0x8f   :  { %v411_v62 = vld [vmem:[#allocation2 + $0x3b] sm:$0xff]  ;;  %v361_v11 = vmul.f32 %v3859_v35, %v334_v61  ;;  %v332_v13 = vld [vmem:[#allocation2 + $0x2a] sm:$0xff]  ;;  %v333_v14 = vld [vmem:[#allocation2 + $0x32] sm:$0xff]  ;;  %181 = vst [vmem:[#allocation2 + $0x48] sm:$0xff] %v3927_v0  ;;  %v282_v20 = vmul.f32 %v3848_v31, %v255_v6  ;;  %v3948_v23 = vadd.f32 %v509_v58, %v457_v10  ;;  %v283_v24 = vmul.f32 %v3848_v31, %v256_v7 }
  0x90   :  { %v488_v5 = vld [vmem:[#allocation2 + $0x3c] sm:$0xff]  ;;  %v456_v9 = vadd.f32 %v431_v48, %v379_v51  ;;  %v438_v12 = vmul.f32 %v3865_v39, %v411_v62  ;;  %v590_v17 = vmul.f32 %v3929_v1, %v3929_v1  ;;  %v309_v18 = vadd.f32 %v284_v4, %v232_v16  ;;  %v409_v25 = vld [vmem:[#allocation2 + $0x2b] sm:$0xff]  ;;  %v410_v26 = vld [vmem:[#allocation2 + $0x33] sm:$0xff] }
  0x91   :  { %v515_v19 = vmul.f32 %v3871_v45, %v488_v5  ;;  %v591_v21 = vmul.f32 %v3931_v2, %v3931_v2  ;;  %v307_v28 = vadd.f32 %v282_v20, %v3881_v55  ;;  %v359_v16 = vmul.f32 %v3859_v35, %v332_v13  ;;  %v486_v32 = vld [vmem:[#allocation2 + $0x2c] sm:$0xff]  ;;  %v487_v43 = vld [vmem:[#allocation2 + $0x34] sm:$0xff] }
  0x92   :  { %v3946_v22 = vadd.f32 %v508_v53, %v456_v9  ;;  %v386_v27 = vadd.f32 %v361_v11, %v309_v18  ;;  %v360_v30 = vmul.f32 %v3859_v35, %v333_v14  ;;  %v589_v37 = vmul.f32 %v3948_v23, %v3948_v23 }
  0x93   :  { %v308_v38 = vadd.f32 %v283_v24, %v231_v29  ;;  %v384_v41 = vadd.f32 %v359_v16, %v307_v28  ;;  %v436_v42 = vmul.f32 %v3865_v39, %v409_v25  ;;  %v437_v55 = vmul.f32 %v3865_v39, %v410_v26 }
  0x94   :  { %v558_v34 = vadd.f32 %v3948_v23, %v3946_v22  ;;  %v588_v36 = vmul.f32 %v3946_v22, %v3946_v22  ;;  %v463_v40 = vadd.f32 %v438_v12, %v386_v27  ;;  %v3962_v44 = vpop.permute.xlu2 %159  ;;  %v513_v49 = vmul.f32 %v3871_v45, %v486_v32 }
  0x95   :  { %v385_v48 = vadd.f32 %v360_v30, %v308_v38  ;;  %v260_v50 = vld [vmem:[#allocation2 + $0x51] sm:$0xff]  ;;  %195 = vst [vmem:[#allocation2 + $0xb8] sm:$0xff] %v3962_v44  ;;  %v3967_v29 = vpop.permute.xlu1 %109  ;;  %v3969_v52 = vpop.permute.xlu0 %104  ;;  %v461_v58 = vadd.f32 %v436_v42, %v384_v41  ;;  %v235_v60 = vmul.f32 %v3853_v33, %v95_v63  ;;  %v514_v7 = vmul.f32 %v3871_v45, %v487_v43 }
  0x96   :  { %v559_v46 = vadd.f32 %v558_v34, %v3929_v1  ;;  %v613_v47 = vadd.f32 %v589_v37, %v588_v36  ;;  %v337_v51 = vld [vmem:[#allocation2 + $0x52] sm:$0xff]  ;;  %v3971_v53 = vadd.f32 %v515_v19, %v463_v40  ;;  %v287_v61 = vmul.f32 %v3848_v31, %v260_v50  ;;  %185 = vst [vmem:[#allocation2 + $0x68] sm:$0xff] %v3967_v29  ;;  %v258_v10 = vld [vmem:[#allocation2 + $0x41] sm:$0xff]  ;;  %v259_v14 = vld [vmem:[#allocation2 + $0x49] sm:$0xff] }
  0x97   :  { %v414_v62 = vld [vmem:[#allocation2 + $0x53] sm:$0xff]  ;;  %v462_v6 = vadd.f32 %v437_v55, %v385_v48  ;;  %184 = vst [vmem:[#allocation2 + $0x60] sm:$0xff] %v3969_v52  ;;  %v3981_v12 = vadd.f32 %v513_v49, %v461_v58  ;;  %v364_v13 = vmul.f32 %v3859_v35, %v337_v51  ;;  %v335_v24 = vld [vmem:[#allocation2 + $0x42] sm:$0xff]  ;;  %v285_v28 = vmul.f32 %v3848_v31, %v258_v10  ;;  %v336_v16 = vld [vmem:[#allocation2 + $0x4a] sm:$0xff] }
  0x98   :  { %v614_v4 = vadd.f32 %v613_v47, %v590_v17  ;;  %v560_v5 = vadd.f32 %v559_v46, %v3931_v2  ;;  %v491_v9 = vld [vmem:[#allocation2 + $0x54] sm:$0xff]  ;;  %v595_v11 = vmul.f32 %v3971_v53, %v3971_v53  ;;  %v312_v63 = vadd.f32 %v287_v61, %v235_v60  ;;  %v412_v36 = vld [vmem:[#allocation2 + $0x43] sm:$0xff]  ;;  %v413_v37 = vld [vmem:[#allocation2 + $0x4b] sm:$0xff] }
  0x99   :  { %v3985_v19 = vadd.f32 %v514_v7, %v462_v6  ;;  %v441_v20 = vmul.f32 %v3865_v39, %v414_v62  ;;  %v593_v25 = vmul.f32 %v3981_v12, %v3981_v12  ;;  %v518_v27 = vmul.f32 %v3871_v45, %v491_v9  ;;  %v489_v55 = vld [vmem:[#allocation2 + $0x44] sm:$0xff] }
  0x9a   :  { %v561_v17 = vadd.f32 %v560_v5, %v3878_v54  ;;  %v615_v18 = vadd.f32 %v614_v4, %v591_v21  ;;  %v389_v26 = vadd.f32 %v364_v13, %v312_v63  ;;  %v234_v21 = vmul.f32 %v3853_v33, %v3927_v0  ;;  %v490_v0 = vld [vmem:[#allocation2 + $0x4c] sm:$0xff] }
  0x9b   :  { %v286_v34 = vmul.f32 %v3848_v31, %v259_v14  ;;  %v594_v38 = vmul.f32 %v3985_v19, %v3985_v19  ;;  %v310_v41 = vadd.f32 %v285_v28, %v3884_v56  ;;  %v362_v42 = vmul.f32 %v3859_v35, %v335_v24 }
  0x9c   :  { %v616_v30 = vadd.f32 %v615_v18, %v3893_v59  ;;  %v562_v32 = vadd.f32 %v561_v17, %v3981_v12  ;;  %v466_v40 = vadd.f32 %v441_v20, %v389_v26  ;;  %v363_v47 = vmul.f32 %v3859_v35, %v336_v16 }
  0x9d   :  { %v311_v46 = vadd.f32 %v286_v34, %v234_v21  ;;  %v4003_v48 = vpop.permute.xlu1 %124  ;;  %v4005_v49 = vpop.permute.xlu0 %119  ;;  %v387_v51 = vadd.f32 %v362_v42, %v310_v41  ;;  %v439_v58 = vmul.f32 %v3865_v39, %v412_v36  ;;  %v440_v56 = vmul.f32 %v3865_v39, %v413_v37  ;;  %v263_v60 = vld [vmem:[#allocation2 + $0x69] sm:$0xff] }
  0x9e   :  { %v563_v59 = vadd.f32 %v562_v32, %v3985_v19  ;;  %v617_v43 = vadd.f32 %v616_v30, %v593_v25  ;;  %v4007_v50 = vadd.f32 %v518_v27, %v466_v40  ;;  %188 = vst [vmem:[#allocation2 + $0x80] sm:$0xff] %v4003_v48  ;;  %v4012_v61 = vpop.permute.xlu2 %1771  ;;  %v516_v6 = vmul.f32 %v3871_v45, %v489_v55  ;;  %v340_v7 = vld [vmem:[#allocation2 + $0x6a] sm:$0xff]  ;;  %v261_v17 = vld [vmem:[#allocation2 + $0x59] sm:$0xff]  ;;  %v262_v18 = vld [vmem:[#allocation2 + $0x61] sm:$0xff] }
  0x9f   :  { %v388_v5 = vadd.f32 %v363_v47, %v311_v46  ;;  %v417_v9 = vld [vmem:[#allocation2 + $0x6b] sm:$0xff]  ;;  %187 = vst [vmem:[#allocation2 + $0x78] sm:$0xff] %v4005_v49  ;;  %v464_v63 = vadd.f32 %v439_v58, %v387_v51  ;;  %v517_v13 = vmul.f32 %v3871_v45, %v490_v0  ;;  %v4024_v14 = vmul.f32 %v3853_v33, %v3962_v44  ;;  %v338_v28 = vld [vmem:[#allocation2 + $0x5a] sm:$0xff]  ;;  %v339_v21 = vld [vmem:[#allocation2 + $0x62] sm:$0xff] }
  0xa0   :  { %v618_v62 = vadd.f32 %v617_v43, %v594_v38  ;;  %v564_v4 = vadd.f32 %v563_v59, %v3971_v53  ;;  %v4019_v10 = vmul.f32 %v4007_v50, %v4007_v50  ;;  %1899 = vst [vmem:[#allocation3] sm:$0xff] %v4012_v61  ;;  %v238_v25 = vmul.f32 %v3853_v33, %v3967_v29  ;;  %v494_v27 = vld [vmem:[#allocation2 + $0x6c] sm:$0xff]  ;;  %v415_v37 = vld [vmem:[#allocation2 + $0x5b] sm:$0xff]  ;;  %v416_v55 = vld [vmem:[#allocation2 + $0x63] sm:$0xff] }
  0xa1   :  { %v465_v24 = vadd.f32 %v440_v56, %v388_v5  ;;  %v290_v26 = vmul.f32 %v3848_v31, %v263_v60  ;;  %v4030_v16 = vadd.f32 %v516_v6, %v464_v63  ;;  %v367_v30 = vmul.f32 %v3859_v35, %v340_v7  ;;  %v492_v47 = vld [vmem:[#allocation2 + $0x5c] sm:$0xff]  ;;  %v493_v0 = vld [vmem:[#allocation2 + $0x64] sm:$0xff] }
  0xa2   :  { %v619_v20 = vadd.f32 %v618_v62, %v595_v11  ;;  %v444_v44 = vmul.f32 %v3865_v39, %v417_v9  ;;  %v237_v32 = vmul.f32 %v3853_v33, %v3969_v52  ;;  %v288_v36 = vmul.f32 %v3848_v31, %v261_v17 }
  0xa3   :  { %v4036_v34 = vadd.f32 %v517_v13, %v465_v24  ;;  %v315_v11 = vadd.f32 %v290_v26, %v238_v25  ;;  %v289_v29 = vmul.f32 %v3848_v31, %v262_v18  ;;  %v565_v38 = vadd.f32 %v564_v4, %v4030_v16 }
  0xa4   :  { %v596_v40 = vmul.f32 %v4030_v16, %v4030_v16  ;;  %v521_v41 = vmul.f32 %v3871_v45, %v494_v27  ;;  %v365_v42 = vmul.f32 %v3859_v35, %v338_v28  ;;  %v313_v59 = vadd.f32 %v288_v36, %v3887_v57 }
  0xa5   :  { %v392_v52 = vadd.f32 %v367_v30, %v315_v11  ;;  %v314_v43 = vadd.f32 %v289_v29, %v237_v32  ;;  %v366_v46 = vmul.f32 %v3859_v35, %v339_v21  ;;  %v4047_v51 = vpop.permute.xlu1 %139  ;;  %v4049_v58 = vpop.permute.xlu0 %134  ;;  %v566_v56 = vadd.f32 %v565_v38, %v4036_v34  ;;  %v266_v5 = vld [vmem:[#allocation2 + $0x81] sm:$0xff] }
  0xa6   :  { %v597_v60 = vmul.f32 %v4036_v34, %v4036_v34  ;;  %v620_v62 = vadd.f32 %v619_v20, %v596_v40  ;;  %v442_v4 = vmul.f32 %v3865_v39, %v415_v37  ;;  %191 = vst [vmem:[#allocation2 + $0x98] sm:$0xff] %v4047_v51  ;;  %v4056_v57 = vpop.permute.xlu2 %1786  ;;  %v390_v7 = vadd.f32 %v365_v42, %v313_v59  ;;  %v343_v13 = vld [vmem:[#allocation2 + $0x82] sm:$0xff]  ;;  %v264_v32 = vld [vmem:[#allocation2 + $0x71] sm:$0xff]  ;;  %v265_v21 = vld [vmem:[#allocation2 + $0x79] sm:$0xff] }
  0xa7   :  { %v469_v6 = vadd.f32 %v444_v44, %v392_v52  ;;  %v391_v9 = vadd.f32 %v366_v46, %v314_v43  ;;  %v443_v63 = vmul.f32 %v3865_v39, %v416_v55  ;;  %v420_v17 = vld [vmem:[#allocation2 + $0x83] sm:$0xff]  ;;  %190 = vst [vmem:[#allocation2 + $0x90] sm:$0xff] %v4049_v58  ;;  %v519_v24 = vmul.f32 %v3871_v45, %v492_v47  ;;  %v342_v55 = vld [vmem:[#allocation2 + $0x7a] sm:$0xff] }
  0xa8   :  { %v621_v18 = vadd.f32 %v620_v62, %v597_v60  ;;  %v520_v20 = vmul.f32 %v3871_v45, %v493_v0  ;;  %v241_v25 = vmul.f32 %v3853_v33, %v4003_v48  ;;  %v497_v26 = vld [vmem:[#allocation2 + $0x84] sm:$0xff]  ;;  %1902 = vst [vmem:[#allocation3 + $0x18] sm:$0xff] %v4056_v57  ;;  %v467_v28 = vadd.f32 %v442_v4, %v390_v7  ;;  %v341_v48 = vld [vmem:[#allocation2 + $0x72] sm:$0xff]  ;;  %v419_v62 = vld [vmem:[#allocation2 + $0x7b] sm:$0xff] }
  0xa9   :  { %v4065_v27 = vadd.f32 %v521_v41, %v469_v6  ;;  %v468_v30 = vadd.f32 %v443_v63, %v391_v9  ;;  %v293_v44 = vmul.f32 %v3848_v31, %v266_v5  ;;  %v567_v11 = vadd.f32 %v566_v56, %v4007_v50  ;;  %v418_v46 = vld [vmem:[#allocation2 + $0x73] sm:$0xff] }
  0xaa   :  { %v622_v36 = vadd.f32 %v621_v18, %v4019_v10  ;;  %v370_v29 = vmul.f32 %v3859_v35, %v343_v13  ;;  %v447_v37 = vmul.f32 %v3865_v39, %v420_v17  ;;  %v4072_v38 = vadd.f32 %v519_v24, %v467_v28  ;;  %v495_v4 = vld [vmem:[#allocation2 + $0x74] sm:$0xff]  ;;  %v496_v13 = vld [vmem:[#allocation2 + $0x7c] sm:$0xff] }
  0xab   :  { %6686 = vst [vmem:[#allocation11_spill] sm:$0xff] %v4065_v27  ;;  %v4074_v40 = vadd.f32 %v520_v20, %v468_v30  ;;  %v318_v41 = vadd.f32 %v293_v44, %v241_v25  ;;  %v524_v42 = vmul.f32 %v3871_v45, %v497_v26  ;;  %v601_v52 = vmul.f32 %v4065_v27, %v4065_v27  ;;  %v4103_v26 = vld [vmem:[%s6656_s2] ss:$0 sm:$0xff] }
  0xac   :  { %v240_v59 = vmul.f32 %v3853_v33, %v4005_v49  ;;  %v291_v10 = vmul.f32 %v3848_v31, %v264_v32  ;;  %v292_v43 = vmul.f32 %v3848_v31, %v265_v21  ;;  %v568_v47 = vadd.f32 %v567_v11, %v4072_v38 }
  0xad   :  { %6687 = vst [vmem:[#allocation12_spill] sm:$0xff] %v4074_v40  ;;  %v599_v0 = vmul.f32 %v4072_v38, %v4072_v38  ;;  %v395_v56 = vadd.f32 %v370_v29, %v318_v41  ;;  %v368_v60 = vmul.f32 %v3859_v35, %v341_v48  ;;  %v4087_v5 = vpop.permute.xlu1 %154  ;;  %v4089_v6 = vpop.permute.xlu0 %149  ;;  %v600_v49 = vmul.f32 %v4074_v40, %v4074_v40  ;;  %v346_v21 = vld [vmem:[#allocation2 + $0x9a] sm:$0xff] }
  0xae   :  { %v316_v7 = vadd.f32 %v291_v10, %v3899_v3  ;;  %v317_v9 = vadd.f32 %v292_v43, %v240_v59  ;;  %v369_v63 = vmul.f32 %v3859_v35, %v342_v55  ;;  %194 = vst [vmem:[#allocation2 + $0xb0] sm:$0xff] %v4087_v5  ;;  %v4096_v17 = vpop.permute.xlu2 %1796  ;;  %v569_v18 = vadd.f32 %v568_v47, %v4074_v40  ;;  %v269_v3 = vld [vmem:[#allocation2 + $0x99] sm:$0xff]  ;;  %v268_v47 = vld [vmem:[#allocation2 + $0x91] sm:$0xff] }
  0xaf   :  { %v623_v24 = vadd.f32 %v622_v36, %v599_v0  ;;  %v472_v20 = vadd.f32 %v447_v37, %v395_v56  ;;  %v445_v25 = vmul.f32 %v3865_v39, %v418_v46  ;;  %193 = vst [vmem:[#allocation2 + $0xa8] sm:$0xff] %v4089_v6  ;;  %v446_v44 = vmul.f32 %v3865_v39, %v419_v62  ;;  %v423_v48 = vld [vmem:[#allocation2 + $0x9b] sm:$0xff]  ;;  %v267_v46 = vld [vmem:[#allocation2 + $0x89] sm:$0xff] }
  0xb0   :  { %v393_v28 = vadd.f32 %v368_v60, %v316_v7  ;;  %v394_v30 = vadd.f32 %v369_v63, %v317_v9  ;;  %v522_v32 = vmul.f32 %v3871_v45, %v495_v4  ;;  %1904 = vst [vmem:[#allocation3 + $0x28] sm:$0xff] %v4096_v17  ;;  %v570_v29 = vadd.f32 %v569_v18, %v4065_v27  ;;  %v500_v43 = vld [vmem:[#allocation2 + $0x9c] sm:$0xff]  ;;  %v344_v62 = vld [vmem:[#allocation2 + $0x8a] sm:$0xff]  ;;  %v345_v9 = vld [vmem:[#allocation2 + $0x92] sm:$0xff] }
  0xb1   :  { %v624_v11 = vadd.f32 %v623_v24, %v600_v49  ;;  %v4109_v36 = vadd.f32 %v524_v42, %v472_v20  ;;  %v523_v37 = vmul.f32 %v3871_v45, %v496_v13  ;;  %v244_v59 = vmul.f32 %v3853_v33, %v4047_v51  ;;  %v421_v18 = vld [vmem:[#allocation2 + $0x8b] sm:$0xff] }
  0xb2   :  { %v470_v41 = vadd.f32 %v445_v25, %v393_v28  ;;  %v471_v55 = vadd.f32 %v446_v44, %v394_v30  ;;  %v296_v10 = vmul.f32 %v3848_v31, %v269_v3  ;;  %v4120_v56 = vmul.f32 %v4103_v26, %v4012_v61  ;;  %v422_v44 = vld [vmem:[#allocation2 + $0x93] sm:$0xff] }
  0xb3   :  { %6688 = vst [vmem:[#allocation13_spill] sm:$0xff] %v4109_v36  ;;  %v604_v0 = vmul.f32 %v4109_v36, %v4109_v36  ;;  %v625_v42 = vadd.f32 %v624_v11, %v601_v52  ;;  %v373_v60 = vmul.f32 %v3859_v35, %v346_v21  ;;  %v450_v7 = vmul.f32 %v3865_v39, %v423_v48 }
  0xb4   :  { %v4123_v4 = vadd.f32 %v522_v32, %v470_v41  ;;  %v4125_v49 = vadd.f32 %v523_v37, %v471_v55  ;;  %v321_v51 = vadd.f32 %v296_v10, %v244_v59  ;;  %v527_v63 = vmul.f32 %v3871_v45, %v500_v43  ;;  %v498_v32 = vld [vmem:[#allocation2 + $0x8c] sm:$0xff] }
  0xb5   :  { %v243_v52 = vmul.f32 %v3853_v33, %v4049_v58  ;;  %v294_v13 = vmul.f32 %v3848_v31, %v267_v46  ;;  %v295_v61 = vmul.f32 %v3848_v31, %v268_v47  ;;  %v170_v24 = vpop.permute.xlu1 %169  ;;  %v4133_v20 = vpop.permute.xlu0 %164  ;;  %v371_v30 = vmul.f32 %v3859_v35, %v344_v62  ;;  %v272_v43 = vld [vmem:[#allocation2 + $0xb1] sm:$0xff] }
  0xb6   :  { %6689 = vst [vmem:[#allocation14_spill] sm:$0xff] %v4123_v4  ;;  %v571_v25 = vadd.f32 %v570_v29, %v4123_v4  ;;  %v602_v3 = vmul.f32 %v4123_v4, %v4123_v4  ;;  %v398_v28 = vadd.f32 %v373_v60, %v321_v51  ;;  %v4139_v58 = vpop.permute.xlu2 %1811  ;;  %v603_v21 = vmul.f32 %v4125_v49, %v4125_v49  ;;  %v499_v29 = vld [vmem:[#allocation2 + $0x94] sm:$0xff] }
  0xb7   :  { %6690 = vst [vmem:[#allocation15_spill] sm:$0xff] %v4125_v49  ;;  %v319_v11 = vadd.f32 %v294_v13, %v3907_v15  ;;  %v320_v37 = vadd.f32 %v295_v61, %v243_v52  ;;  %v372_v48 = vmul.f32 %v3859_v35, %v345_v9  ;;  %v448_v10 = vmul.f32 %v3865_v39, %v421_v18  ;;  %v349_v62 = vld [vmem:[#allocation2 + $0xb2] sm:$0xff] }
  0xb8   :  { %197 = vst [vmem:[#allocation2 + $0xc8] sm:$0xf] %v170_v24  ;;  %v572_v41 = vadd.f32 %v571_v25, %v4125_v49  ;;  %v626_v55 = vadd.f32 %v625_v42, %v602_v3  ;;  %v475_v59 = vadd.f32 %v450_v7, %v398_v28  ;;  %v449_v60 = vmul.f32 %v3865_v39, %v422_v44  ;;  %v426_v7 = vld [vmem:[#allocation2 + $0xb3] sm:$0xff]  ;;  %v270_v3 = vld [vmem:[#allocation2 + $0xa1] sm:$0xff]  ;;  %v271_v28 = vld [vmem:[#allocation2 + $0xa9] sm:$0xff] }
  0xb9   :  { %196 = vst [vmem:[#allocation2 + $0xc0] sm:$0xff] %v4133_v20  ;;  %v396_v46 = vadd.f32 %v371_v30, %v319_v11  ;;  %v397_v47 = vadd.f32 %v372_v48, %v320_v37  ;;  %v525_v15 = vmul.f32 %v3871_v45, %v498_v32  ;;  %v526_v42 = vmul.f32 %v3871_v45, %v499_v29  ;;  %v503_v25 = vld [vmem:[#allocation2 + $0xb4] sm:$0xff]  ;;  %v348_v29 = vld [vmem:[#allocation2 + $0xaa] sm:$0xff] }
  0xba   :  { %1907 = vst [vmem:[#allocation3 + $0x40] sm:$0xff] %v4139_v58  ;;  %v627_v51 = vadd.f32 %v626_v55, %v603_v21  ;;  %v4151_v9 = vadd.f32 %v527_v63, %v475_v59  ;;  %v573_v52 = vadd.f32 %v572_v41, %v4109_v36  ;;  %v247_v18 = vmul.f32 %v3853_v33, %v4087_v5  ;;  %v347_v21 = vld [vmem:[#allocation2 + $0xa2] sm:$0xff] }
  0xbb   :  { %v473_v13 = vadd.f32 %v448_v10, %v396_v46  ;;  %v474_v61 = vadd.f32 %v449_v60, %v397_v47  ;;  %v299_v24 = vmul.f32 %v3848_v31, %v272_v43  ;;  %v4162_v44 = vmul.f32 %v4103_v26, %v4056_v57  ;;  %v424_v59 = vld [vmem:[#allocation2 + $0xa3] sm:$0xff] }
  0xbc   :  { %6691 = vst [vmem:[#allocation16_spill] sm:$0xff] %v4151_v9  ;;  %v607_v30 = vmul.f32 %v4151_v9, %v4151_v9  ;;  %v628_v63 = vadd.f32 %v627_v51, %v604_v0  ;;  %v376_v32 = vmul.f32 %v3859_v35, %v349_v62  ;;  %v453_v48 = vmul.f32 %v3865_v39, %v426_v7  ;;  %v425_v62 = vld [vmem:[#allocation2 + $0xab] sm:$0xff] }
  0xbd   :  { %v4165_v11 = vadd.f32 %v525_v15, %v473_v13  ;;  %v4167_v37 = vadd.f32 %v526_v42, %v474_v61  ;;  %v324_v5 = vadd.f32 %v299_v24, %v247_v18  ;;  %v530_v41 = vmul.f32 %v3871_v45, %v503_v25  ;;  %v501_v51 = vld [vmem:[#allocation2 + $0xa4] sm:$0xff]  ;;  %v502_v61 = vld [vmem:[#allocation2 + $0xac] sm:$0xff] }
  0xbe   :  { %v246_v0 = vmul.f32 %v3853_v33, %v4089_v6  ;;  %v297_v55 = vmul.f32 %v3848_v31, %v270_v3  ;;  %v298_v57 = vmul.f32 %v3848_v31, %v271_v28  ;;  %v4175_v10 = vpop.permute.xlu2 %1826  ;;  %v4177_v43 = vpop.permute.xlu1 %1781  ;;  %v374_v15 = vmul.f32 %v3859_v35, %v347_v21 }
  0xbf   :  { %6692 = vst [vmem:[#allocation17_spill] sm:$0xff] %v4165_v11  ;;  %v574_v46 = vadd.f32 %v573_v52, %v4165_v11  ;;  %v605_v47 = vmul.f32 %v4165_v11, %v4165_v11  ;;  %v401_v60 = vadd.f32 %v376_v32, %v324_v5  ;;  %v4184_v6 = vpop.permute.xlu0 %1776  ;;  %v606_v42 = vmul.f32 %v4167_v37, %v4167_v37 }
  0xc0   :  { %6693 = vst [vmem:[#allocation18_spill] sm:$0xff] %v4167_v37  ;;  %v322_v7 = vadd.f32 %v297_v55, %v3935_v8  ;;  %v323_v13 = vadd.f32 %v298_v57, %v246_v0  ;;  %v375_v52 = vmul.f32 %v3859_v35, %v348_v29  ;;  %v451_v3 = vmul.f32 %v3865_v39, %v424_v59  ;;  %v273_v28 = vld [vmem:[#allocation2 + $0xb9] sm:$0xff]  ;;  %v274_v0 = vld [vmem:[#allocation2 + $0xc1] sm:$0xff] }
  0xc1   :  { %1910 = vst [vmem:[#allocation3 + $0x58] sm:$0xff] %v4175_v10  ;;  %v575_v18 = vadd.f32 %v574_v46, %v4167_v37  ;;  %v629_v24 = vadd.f32 %v628_v63, %v605_v47  ;;  %v478_v25 = vadd.f32 %v453_v48, %v401_v60  ;;  %v452_v5 = vmul.f32 %v3865_v39, %v425_v62  ;;  %v350_v48 = vld [vmem:[#allocation2 + $0xba] sm:$0xff] }
  0xc2   :  { %1901 = vst [vmem:[#allocation3 + $0x10] sm:$0xff] %v4177_v43  ;;  %v399_v32 = vadd.f32 %v374_v15, %v322_v7  ;;  %v400_v21 = vadd.f32 %v375_v52, %v323_v13  ;;  %v528_v8 = vmul.f32 %v3871_v45, %v501_v51  ;;  %v529_v63 = vmul.f32 %v3871_v45, %v502_v61  ;;  %v351_v15 = vld [vmem:[#allocation2 + $0xc2] sm:$0xff] }
  0xc3   :  { %1900 = vst [vmem:[#allocation3 + $0x8] sm:$0xff] %v4184_v6  ;;  %v630_v29 = vadd.f32 %v629_v24, %v606_v42  ;;  %v4196_v55 = vadd.f32 %v530_v41, %v478_v25  ;;  %v576_v57 = vadd.f32 %v575_v18, %v4151_v9  ;;  %v4202_v47 = vmul.f32 %v4103_v26, %v4096_v17  ;;  %v427_v62 = vld [vmem:[#allocation2 + $0xbb] sm:$0xff]  ;;  %v428_v51 = vld [vmem:[#allocation2 + $0xc3] sm:$0xff] }
  0xc4   :  { %v476_v46 = vadd.f32 %v451_v3, %v399_v32  ;;  %v477_v59 = vadd.f32 %v452_v5, %v400_v21  ;;  %v300_v60 = vmul.f32 %v3848_v31, %v273_v28  ;;  %v249_v7 = vmul.f32 %v3853_v33, %v4133_v20  ;;  %v504_v52 = vld [vmem:[#allocation2 + $0xbc] sm:$0xff]  ;;  %v505_v25 = vld [vmem:[#allocation2 + $0xc4] sm:$0xff]  ;;  %v4226_v20 = vld [vmem:[%s6656_s2 + $0x1] ss:$0 sm:$0xff] }
  0xc5   :  { %6694 = vst [vmem:[#allocation19_spill] sm:$0xff] %v4196_v55  ;;  %v610_v41 = vmul.f32 %v4196_v55, %v4196_v55  ;;  %v631_v42 = vadd.f32 %v630_v29, %v607_v30  ;;  %v301_v13 = vmul.f32 %v3848_v31, %v274_v0  ;;  %v377_v24 = vmul.f32 %v3859_v35, %v350_v48 }
  0xc6   :  { %v4210_v61 = vadd.f32 %v528_v8, %v476_v46  ;;  %v4212_v18 = vadd.f32 %v529_v63, %v477_v59  ;;  %v325_v17 = vadd.f32 %v300_v60, %v4024_v14  ;;  %v4216_v3 = vpop.permute.xlu2 %1841  ;;  %v4218_v28 = vpop.permute.xlu1 %1791  ;;  %v378_v32 = vmul.f32 %v3859_v35, %v351_v15  ;;  %v4246_v59 = vld [vmem:[%s6656_s2 + $0x2] ss:$0 sm:$0xff]  ;;  %v4251_v60 = vld [vmem:[%s6656_s2 + $0x3] ss:$0 sm:$0xff] }
  0xc7   :  { %v326_v30 = vadd.f32 %v301_v13, %v249_v7  ;;  %v454_v33 = vmul.f32 %v3865_v39, %v427_v62  ;;  %v455_v31 = vmul.f32 %v3865_v39, %v428_v51  ;;  %1913 = vst [vmem:[#allocation3 + $0x70] sm:$0xff] %v4216_v3  ;;  %v4229_v14 = vpop.permute.xlu0 %1801  ;;  %v531_v35 = vmul.f32 %v3871_v45, %v504_v52 }
  0xc8   :  { %6695 = vst [vmem:[#allocation20_spill] sm:$0xff] %v4210_v61  ;;  %v577_v21 = vadd.f32 %v576_v57, %v4210_v61  ;;  %v608_v5 = vmul.f32 %v4210_v61, %v4210_v61  ;;  %v402_v8 = vadd.f32 %v377_v24, %v325_v17  ;;  %v609_v63 = vmul.f32 %v4212_v18, %v4212_v18 }
  0xc9   :  { %6696 = vst [vmem:[#allocation21_spill] sm:$0xff] %v4212_v18  ;;  %v1979_v0 = vld [vmem:[#allocation3 + $0x11] sm:$0xff]  ;;  %v403_v48 = vadd.f32 %v378_v32, %v326_v30  ;;  %v532_v46 = vmul.f32 %v3871_v45, %v505_v25  ;;  %v4241_v57 = vmul.f32 %v4103_v26, %v4139_v58  ;;  %v4258_v58 = vld [vmem:[%s6656_s2 + $0x4] ss:$0 sm:$0xff]  ;;  %v1954_v7 = vmul.f32 %v4103_v26, %v4177_v43 }
  0xca   :  { %v2056_v29 = vld [vmem:[#allocation3 + $0x12] sm:$0xff]  ;;  %1903 = vst [vmem:[#allocation3 + $0x20] sm:$0xff] %v4218_v28  ;;  %v578_v62 = vadd.f32 %v577_v21, %v4212_v18  ;;  %v632_v45 = vadd.f32 %v631_v42, %v608_v5  ;;  %v479_v51 = vadd.f32 %v454_v33, %v402_v8  ;;  %v1977_v13 = vld [vmem:[#allocation3 + $0x1] sm:$0xff]  ;;  %v2006_v17 = vmul.f32 %v4226_v20, %v1979_v0  ;;  %v1978_v30 = vld [vmem:[#allocation3 + $0x9] sm:$0xff] }
  0xcb   :  { %v2133_v39 = vld [vmem:[#allocation3 + $0x13] sm:$0xff]  ;;  %1905 = vst [vmem:[#allocation3 + $0x30] sm:$0xff] %v4229_v14  ;;  %v480_v52 = vadd.f32 %v455_v31, %v403_v48  ;;  %v2083_v24 = vmul.f32 %v4246_v59, %v2056_v29  ;;  %v2054_v5 = vld [vmem:[#allocation3 + $0x2] sm:$0xff]  ;;  %v1953_v31 = vmul.f32 %v4103_v26, %v4184_v6  ;;  %v2004_v0 = vmul.f32 %v4226_v20, %v1977_v13  ;;  %v2055_v29 = vld [vmem:[#allocation3 + $0xa] sm:$0xff] }
  0xcc   :  { %v2210_v15 = vld [vmem:[#allocation3 + $0x14] sm:$0xff]  ;;  %v2160_v25 = vmul.f32 %v4251_v60, %v2133_v39  ;;  %v633_v32 = vadd.f32 %v632_v45, %v609_v63  ;;  %v579_v42 = vadd.f32 %v578_v62, %v4196_v55  ;;  %v4266_v33 = vadd.f32 %v531_v35, %v479_v51  ;;  %v2131_v62 = vld [vmem:[#allocation3 + $0x3] sm:$0xff]  ;;  %v2209_v55 = vld [vmem:[#allocation3 + $0xc] sm:$0xff] }
  0xcd   :  { %v2237_v21 = vmul.f32 %v4258_v58, %v2210_v15  ;;  %v4269_v8 = vadd.f32 %v532_v46, %v480_v52  ;;  %v2031_v43 = vadd.f32 %v2006_v17, %v1954_v7  ;;  %v2005_v35 = vmul.f32 %v4226_v20, %v1978_v30  ;;  %v2132_v15 = vld [vmem:[#allocation3 + $0xb] sm:$0xff] }
  0xce   :  { %v634_v48 = vadd.f32 %v633_v32, %v610_v41  ;;  %v580_v39 = vadd.f32 %v579_v42, %v4266_v33  ;;  %v611_v63 = vmul.f32 %v4266_v33, %v4266_v33  ;;  %v4278_v45 = vpop.permute.xlu2 %1856  ;;  %v4280_v46 = vpop.permute.xlu1 %1806  ;;  %v2029_v7 = vadd.f32 %v2004_v0, %v4120_v56  ;;  %v2208_v13 = vld [vmem:[#allocation3 + $0x4] sm:$0xff] }
  0xcf   :  { %v612_v6 = vmul.f32 %v4269_v8, %v4269_v8  ;;  %v2108_v51 = vadd.f32 %v2083_v24, %v2031_v43  ;;  %v2081_v41 = vmul.f32 %v4246_v59, %v2054_v5  ;;  %1916 = vst [vmem:[#allocation3 + $0x88] sm:$0xff] %v4278_v45  ;;  %v4287_v52 = vpop.permute.xlu0 %1816  ;;  %v2030_v32 = vadd.f32 %v2005_v35, %v1953_v31 }
  0xd0   :  { %v581_v17 = vadd.f32 %v580_v39, %v4269_v8  ;;  %v635_v30 = vadd.f32 %v634_v48, %v611_v63  ;;  %v2082_v42 = vmul.f32 %v4246_v59, %v2055_v29  ;;  %1906 = vst [vmem:[#allocation3 + $0x38] sm:$0xff] %v4280_v46  ;;  %v2158_v56 = vmul.f32 %v4251_v60, %v2131_v62 }
  0xd1   :  { %v2185_v18 = vadd.f32 %v2160_v25, %v2108_v51  ;;  %v2106_v24 = vadd.f32 %v2081_v41, %v2029_v7  ;;  %v2159_v5 = vmul.f32 %v4251_v60, %v2132_v15  ;;  %1908 = vst [vmem:[#allocation3 + $0x48] sm:$0xff] %v4287_v52  ;;  %v2235_v39 = vmul.f32 %v4258_v58, %v2208_v13  ;;  %v1980_v48 = vld [vmem:[#allocation3 + $0x19] sm:$0xff]  ;;  %v1981_v31 = vld [vmem:[#allocation3 + $0x21] sm:$0xff] }
  0xd2   :  { %v582_v43 = vrot.slane %v581_v17, 4  ;;  %v636_v0 = vadd.f32 %v635_v30, %v612_v6  ;;  %v2107_v61 = vadd.f32 %v2082_v42, %v2030_v32  ;;  %v4298_v29 = vmul.f32 %v4103_v26, %v4175_v10  ;;  %v2057_v62 = vld [vmem:[#allocation3 + $0x1a] sm:$0xff]  ;;  %v2058_v41 = vld [vmem:[#allocation3 + $0x22] sm:$0xff]  ;;  %v2059_v9 = vld [vmem:[#allocation3 + $0x2a] sm:$0xff] }
  0xd3   :  { %v4300_v63 = vadd.f32 %v2237_v21, %v2185_v18  ;;  %v2183_v25 = vadd.f32 %v2158_v56, %v2106_v24  ;;  %v2236_v35 = vmul.f32 %v4258_v58, %v2209_v55  ;;  %v1956_v6 = vmul.f32 %v4103_v26, %v4218_v28  ;;  %v2135_v42 = vld [vmem:[#allocation3 + $0x23] sm:$0xff] }
  0xd4   :  { %v583_v15 = vadd.f32 %v582_v43, %v581_v17  ;;  %v637_v51 = vrot.slane %v636_v0, 4  ;;  %v2184_v7 = vadd.f32 %v2159_v5, %v2107_v61  ;;  %v2007_v10 = vmul.f32 %v4226_v20, %v1980_v48  ;;  %v2134_v61 = vld [vmem:[#allocation3 + $0x1b] sm:$0xff] }
  0xd5   :  { %6697 = vst [vmem:[#allocation22_spill] sm:$0xff] %v4300_v63  ;;  %v2317_v13 = vmul.f32 %v4300_v63, %v4300_v63  ;;  %v4307_v30 = vadd.f32 %v2235_v39, %v2183_v25  ;;  %v2008_v18 = vmul.f32 %v4226_v20, %v1981_v31  ;;  %v2084_v17 = vmul.f32 %v4246_v59, %v2057_v62  ;;  %v2211_v48 = vld [vmem:[#allocation3 + $0x1c] sm:$0xff] }
  0xd6   :  { %v584_v21 = vrot.slane %v583_v15, 2  ;;  %v638_v32 = vadd.f32 %v637_v51, %v636_v0  ;;  %v4311_v55 = vadd.f32 %v2236_v35, %v2184_v7  ;;  %v4314_v24 = vpop.permute.xlu2 %1871  ;;  %v4316_v28 = vpop.permute.xlu1 %1821  ;;  %v2032_v5 = vadd.f32 %v2007_v10, %v4162_v44  ;;  %v2212_v51 = vld [vmem:[#allocation3 + $0x24] sm:$0xff] }
  0xd7   :  { %6698 = vst [vmem:[#allocation23_spill] sm:$0xff] %v4307_v30  ;;  %v2315_v56 = vmul.f32 %v4307_v30, %v4307_v30  ;;  %v2033_v43 = vadd.f32 %v2008_v18, %v1956_v6  ;;  %v2085_v39 = vmul.f32 %v4246_v59, %v2058_v41  ;;  %v4323_v0 = vpop.permute.xlu0 %1831  ;;  %v2161_v6 = vmul.f32 %v4251_v60, %v2134_v61 }
  0xd8   :  { %6699 = vst [vmem:[#allocation24_spill] sm:$0xff] %v4311_v55  ;;  %v585_v31 = vadd.f32 %v584_v21, %v583_v15  ;;  %v639_v25 = vrot.slane %v638_v32, 2  ;;  %v2285_v35 = vadd.f32 %v4311_v55, %v4307_v30  ;;  %v2316_v62 = vmul.f32 %v4311_v55, %v4311_v55  ;;  %v1982_v30 = vld [vmem:[#allocation3 + $0x29] sm:$0xff] }
  0xd9   :  { %1919 = vst [vmem:[#allocation3 + $0xa0] sm:$0xff] %v4314_v24  ;;  %v2109_v44 = vadd.f32 %v2084_v17, %v2032_v5  ;;  %v2110_v7 = vadd.f32 %v2085_v39, %v2033_v43  ;;  %v2162_v41 = vmul.f32 %v4251_v60, %v2135_v42  ;;  %v2238_v21 = vmul.f32 %v4258_v58, %v2211_v48  ;;  %v2136_v5 = vld [vmem:[#allocation3 + $0x2b] sm:$0xff] }
  0xda   :  { %1909 = vst [vmem:[#allocation3 + $0x50] sm:$0xff] %v4316_v28  ;;  %v586_v10 = vrot.slane %v585_v31, 1  ;;  %v640_v15 = vadd.f32 %v639_v25, %v638_v32  ;;  %v2340_v18 = vadd.f32 %v2316_v62, %v2315_v56  ;;  %v2239_v11 = vmul.f32 %v4258_v58, %v2212_v51  ;;  %v2213_v32 = vld [vmem:[#allocation3 + $0x2c] sm:$0xff] }
  0xdb   :  { %1911 = vst [vmem:[#allocation3 + $0x60] sm:$0xff] %v4323_v0  ;;  %v2186_v37 = vadd.f32 %v2161_v6, %v2109_v44  ;;  %v2187_v55 = vadd.f32 %v2162_v41, %v2110_v7  ;;  %v2286_v17 = vadd.f32 %v2285_v35, %v4300_v63  ;;  %v4338_v42 = vmul.f32 %v4103_v26, %v4216_v3  ;;  %v1984_v7 = vld [vmem:[#allocation3 + $0x39] sm:$0xff] }
  0xdc   :  { %v587_v43 = vadd.f32 %v586_v10, %v585_v31  ;;  %v641_v61 = vrot.slane %v640_v15, 1  ;;  %v2341_v39 = vadd.f32 %v2340_v18, %v2317_v13  ;;  %v2009_v25 = vmul.f32 %v4226_v20, %v1982_v30  ;;  %v2060_v18 = vld [vmem:[#allocation3 + $0x32] sm:$0xff] }
  0xdd   :  { %v4340_v56 = vadd.f32 %v2238_v21, %v2186_v37  ;;  %v4342_v48 = vadd.f32 %v2239_v11, %v2187_v55  ;;  %v2086_v62 = vmul.f32 %v4246_v59, %v2059_v9  ;;  %v1958_v31 = vmul.f32 %v4103_v26, %v4229_v14  ;;  %v1983_v55 = vld [vmem:[#allocation3 + $0x31] sm:$0xff] }
  0xde   :  { %v642_v51 = vadd.f32 %v641_v61, %v640_v15  ;;  %v4346_v44 = vmul.f32 0.005, %v587_v43  ;;  %v2163_v35 = vmul.f32 %v4251_v60, %v2136_v5  ;;  %v4351_v3 = vpop.permute.xlu2 %1886  ;;  %v4353_v13 = vpop.permute.xlu1 %1836  ;;  %v2034_v30 = vadd.f32 %v2009_v25, %v4202_v47  ;;  %v2061_v47 = vld [vmem:[#allocation3 + $0x3a] sm:$0xff] }
  0xdf   :  { %6700 = vst [vmem:[#allocation25_spill] sm:$0xff] %v4340_v56  ;;  %v2287_v37 = vadd.f32 %v2286_v17, %v4340_v56  ;;  %v2318_v11 = vmul.f32 %v4340_v56, %v4340_v56  ;;  %v2240_v9 = vmul.f32 %v4258_v58, %v2213_v32  ;;  %v4361_v14 = vpop.permute.xlu0 %1846  ;;  %v2319_v15 = vmul.f32 %v4342_v48, %v4342_v48  ;;  %v2137_v61 = vld [vmem:[#allocation3 + $0x33] sm:$0xff]  ;;  %v2138_v56 = vld [vmem:[#allocation3 + $0x3b] sm:$0xff] }
  0xe0   :  { %6701 = vst [vmem:[#allocation26_spill] sm:$0xff] %v4342_v48  ;;  %v644_v6 = vmul.f32 0.005, %v642_v51  ;;  %v645_v41 = vmul.f32 %v4346_v44, %v4346_v44  ;;  %v2111_v43 = vadd.f32 %v2086_v62, %v2034_v30  ;;  %v1959_v25 = vmul.f32 %v4103_v26, %v4280_v46  ;;  %v2214_v63 = vld [vmem:[#allocation3 + $0x34] sm:$0xff] }
  0xe1   :  { %1922 = vst [vmem:[#allocation3 + $0xb8] sm:$0xff] %v4351_v3  ;;  %v2288_v17 = vadd.f32 %v2287_v37, %v4342_v48  ;;  %v2342_v5 = vadd.f32 %v2341_v39, %v2318_v11  ;;  %v2010_v51 = vmul.f32 %v4226_v20, %v1983_v55  ;;  %v2011_v10 = vmul.f32 %v4226_v20, %v1984_v7  ;;  %v2215_v37 = vld [vmem:[#allocation3 + $0x3c] sm:$0xff] }
  0xe2   :  { %1912 = vst [vmem:[#allocation3 + $0x68] sm:$0xff] %v4353_v13  ;;  %v646_v32 = vsub.f32 %v644_v6, %v645_v41  ;;  %v2188_v36 = vadd.f32 %v2163_v35, %v2111_v43  ;;  %v4380_v21 = vmul.f32 %v4103_v26, %v4278_v45  ;;  %v2087_v39 = vmul.f32 %v4246_v59, %v2060_v18  ;;  %v1985_v6 = vld [vmem:[#allocation3 + $0x41] sm:$0xff]  ;;  %v1988_v4 = vld [vmem:[#allocation3 + $0x59] sm:$0xff] }
  0xe3   :  { %1914 = vst [vmem:[#allocation3 + $0x78] sm:$0xff] %v4361_v14  ;;  %v2088_v62 = vmul.f32 %v4246_v59, %v2061_v47  ;;  %v2035_v30 = vadd.f32 %v2010_v51, %v1958_v31  ;;  %v2036_v46 = vadd.f32 %v2011_v10, %v1959_v25  ;;  %v2164_v55 = vmul.f32 %v4251_v60, %v2137_v61  ;;  %v2062_v43 = vld [vmem:[#allocation3 + $0x42] sm:$0xff] }
  0xe4   :  { %v4384_v11 = vadd.f32 1e-05, %v646_v32  ;;  %v2343_v7 = vadd.f32 %v2342_v5, %v2319_v15  ;;  %v4387_v41 = vadd.f32 %v2240_v9, %v2188_v36  ;;  %v2165_v35 = vmul.f32 %v4251_v60, %v2138_v56  ;;  %v2139_v48 = vld [vmem:[#allocation3 + $0x43] sm:$0xff] }
  0xe5   :  { %v2241_v45 = vmul.f32 %v4258_v58, %v2214_v63  ;;  %v2112_v18 = vadd.f32 %v2087_v39, %v2035_v30  ;;  %v2113_v47 = vadd.f32 %v2088_v62, %v2036_v46  ;;  %v2242_v32 = vmul.f32 %v4258_v58, %v2215_v37  ;;  %v2216_v31 = vld [vmem:[#allocation3 + $0x44] sm:$0xff]  ;;  %v2064_v37 = vld [vmem:[#allocation3 + $0x52] sm:$0xff] }
  0xe6   :  { %6702 = vst [vmem:[#allocation27_spill] sm:$0xff] %v4387_v41  ;;  %3702 = vrsqrt.f32 %v4384_v11  ;;  %v4393_v10 = vpop.permute.xlu1 %1851  ;;  %v2289_v61 = vadd.f32 %v2288_v17, %v4387_v41  ;;  %v2320_v36 = vmul.f32 %v4387_v41, %v4387_v41  ;;  %v1961_v56 = vmul.f32 %v4103_v26, %v4287_v52  ;;  %v1986_v9 = vld [vmem:[#allocation3 + $0x49] sm:$0xff]  ;;  %v1987_v17 = vld [vmem:[#allocation3 + $0x51] sm:$0xff] }
  0xe7   :  { %v2012_v63 = vmul.f32 %v4226_v20, %v1985_v6  ;;  %1915 = vst [vmem:[#allocation3 + $0x80] sm:$0xff] %v4393_v10  ;;  %v4402_v15 = vpop.permute.xlu0 %1861  ;;  %v2189_v5 = vadd.f32 %v2164_v55, %v2112_v18  ;;  %v2190_v25 = vadd.f32 %v2165_v35, %v2113_v47  ;;  %v2089_v51 = vmul.f32 %v4246_v59, %v2062_v43  ;;  %v2063_v62 = vld [vmem:[#allocation3 + $0x4a] sm:$0xff] }
  0xe8   :  { %v2166_v39 = vmul.f32 %v4251_v60, %v2139_v48  ;;  %1917 = vst [vmem:[#allocation3 + $0x90] sm:$0xff] %v4402_v15  ;;  %v2344_v30 = vadd.f32 %v2343_v7, %v2320_v36  ;;  %v2243_v46 = vmul.f32 %v4258_v58, %v2216_v31  ;;  %v4411_v6 = vmul.f32 %v4103_v26, %v4314_v24  ;;  %v2140_v31 = vld [vmem:[#allocation3 + $0x4b] sm:$0xff] }
  0xe9   :  { %v2037_v52 = vadd.f32 %v2012_v63, %v4241_v57  ;;  %v4413_v55 = vadd.f32 %v2241_v45, %v2189_v5  ;;  %v4415_v35 = vadd.f32 %v2242_v32, %v2190_v25  ;;  %v1962_v48 = vmul.f32 %v4103_v26, %v4316_v28  ;;  %v2141_v63 = vld [vmem:[#allocation3 + $0x53] sm:$0xff] }
  0xea   :  { %v2013_v43 = vmul.f32 %v4226_v20, %v1986_v9  ;;  %v2014_v7 = vmul.f32 %v4226_v20, %v1987_v17  ;;  %v2090_v57 = vmul.f32 %v4246_v59, %v2063_v62  ;;  %v2091_v47 = vmul.f32 %v4246_v59, %v2064_v37  ;;  %v2218_v17 = vld [vmem:[#allocation3 + $0x54] sm:$0xff] }
  0xeb   :  { %6703 = vst [vmem:[#allocation28_spill] sm:$0xff] %v4413_v55  ;;  %v2114_v18 = vadd.f32 %v2089_v51, %v2037_v52  ;;  %v2290_v24 = vadd.f32 %v2289_v61, %v4413_v55  ;;  %v2321_v45 = vmul.f32 %v4413_v55, %v4413_v55  ;;  %v2322_v28 = vmul.f32 %v4415_v35, %v4415_v35  ;;  %v2217_v51 = vld [vmem:[#allocation3 + $0x4c] sm:$0xff] }
  0xec   :  { %6704 = vst [vmem:[#allocation29_spill] sm:$0xff] %v4415_v35  ;;  %v4423_v36 = vpop.eup %3702  ;;  %v2038_v32 = vadd.f32 %v2013_v43, %v1961_v56  ;;  %vm679_vm0 = vweird.f32 %v4384_v11  ;;  %v2039_v25 = vadd.f32 %v2014_v7, %v1962_v48  ;;  %v2167_v52 = vmul.f32 %v4251_v60, %v2140_v31  ;;  %v2142_v31 = vld [vmem:[#allocation3 + $0x5b] sm:$0xff] }
  0xed   :  { %v674_v9 = vmul.f32 %v4423_v36, %v4384_v11  ;;  %vm680_vm1 = vweird.f32 %v4423_v36  ;;  %v2191_v5 = vadd.f32 %v2166_v39, %v2114_v18  ;;  %v2291_v61 = vadd.f32 %v2290_v24, %v4415_v35  ;;  %v2065_v39 = vld [vmem:[#allocation3 + $0x5a] sm:$0xff] }
  0xee   :  { %v2345_v62 = vadd.f32 %v2344_v30, %v2321_v45  ;;  %v2115_v37 = vadd.f32 %v2090_v57, %v2038_v32  ;;  %v4436_v55 = vpop.permute.xlu1 %1866  ;;  %v2116_v41 = vadd.f32 %v2091_v47, %v2039_v25  ;;  %v2168_v49 = vmul.f32 %v4251_v60, %v2141_v63  ;;  %v2219_v32 = vld [vmem:[#allocation3 + $0x5c] sm:$0xff]  ;;  %vm681_vm2 = vmor %vm679_vm0, %vm680_vm1 }
  0xef   :  { %v675_v56 = vmul.f32 %v4423_v36, %v674_v9  ;;  %v4439_v43 = vadd.f32 %v2243_v46, %v2191_v5  ;;  %1918 = vst [vmem:[#allocation3 + $0x98] sm:$0xff] %v4436_v55  ;;  %v4443_v48 = vpop.permute.xlu0 %1876  ;;  %v2244_v7 = vmul.f32 %v4258_v58, %v2217_v51  ;;  %v2245_v57 = vmul.f32 %v4258_v58, %v2218_v17  ;;  %v1989_v25 = vld [vmem:[#allocation3 + $0x61] sm:$0xff]  ;;  %v1992_v40 = vld [vmem:[#allocation3 + $0x79] sm:$0xff] }
  0xf0   :  { %v2346_v18 = vadd.f32 %v2345_v62, %v2322_v28  ;;  %v2192_v30 = vadd.f32 %v2167_v52, %v2115_v37  ;;  %1920 = vst [vmem:[#allocation3 + $0xa8] sm:$0xff] %v4443_v48  ;;  %v2193_v45 = vadd.f32 %v2168_v49, %v2116_v41  ;;  %v1964_v28 = vmul.f32 %v4103_v26, %v4323_v0  ;;  %v1080_v51 = vld [vmem:[%s6657_s1 + $0x78] sm:$0xff]  ;;  %v1079_v37 = vld [vmem:[%s6657_s1 + $0x70] sm:$0xff] }
  0xf1   :  { %6705 = vst [vmem:[#allocation30_spill] sm:$0xff] %v4439_v43  ;;  %v676_v46 = vmul.f32 0.5, %v675_v56  ;;  %v2292_v47 = vadd.f32 %v2291_v61, %v4439_v43  ;;  %v2323_v24 = vmul.f32 %v4439_v43, %v4439_v43  ;;  %v2015_v9 = vmul.f32 %v4226_v20, %v1988_v4  ;;  %v1096_v17 = vld [vmem:[%s6657_s1 + $0xf8] sm:$0xff]  ;;  %1225 = vmatpush.msra.mxu0 %v1080_v51  ;;  %v2221_v43 = vld [vmem:[#allocation3 + $0x6c] sm:$0xff] }
  0xf2   :  { %v4451_v63 = vadd.f32 %v2244_v7, %v2192_v30  ;;  %v2092_v5 = vmul.f32 %v4246_v59, %v2065_v39  ;;  %v4463_v61 = vadd.f32 %v2245_v57, %v2193_v45  ;;  %v2169_v62 = vmul.f32 %v4251_v60, %v2142_v31  ;;  %1260 = vmatpush.msra.mxu1 %v1096_v17  ;;  %v1112_v4 = vld [vmem:[%s6657_s1 + $0x178] sm:$0xff]  ;;  %v1990_v30 = vld [vmem:[#allocation3 + $0x69] sm:$0xff] }
  0xf3   :  { %v677_v49 = vsub.f32 1.5, %v676_v46  ;;  %v2347_v41 = vadd.f32 %v2346_v18, %v2323_v24  ;;  %v1128_v0 = vld [vmem:[%s6657_s1 + $0x1f8] sm:$0xff]  ;;  %v2040_v39 = vadd.f32 %v2015_v9, %v4298_v29  ;;  %v2246_v18 = vmul.f32 %v4258_v58, %v2219_v32  ;;  %v2067_v57 = vld [vmem:[#allocation3 + $0x6a] sm:$0xff]  ;;  %1295 = vmatpush.msra.mxu2 %v1112_v4  ;;  %1226 = vmatpush.msra.mxu0 %v1079_v37  ;;  %v1127_v37 = vld [vmem:[%s6657_s1 + $0x1f0] sm:$0xff] }
  0xf4   :  { %6706 = vst [vmem:[#allocation31_spill] sm:$0xff] %v4451_v63  ;;  %v2293_v52 = vadd.f32 %v2292_v47, %v4451_v63  ;;  %v2324_v56 = vmul.f32 %v4451_v63, %v4451_v63  ;;  %v2066_v7 = vld [vmem:[#allocation3 + $0x62] sm:$0xff]  ;;  %v4483_v31 = vld [vmem:[%s6656_s2 + $0x1e8] ss:$0 sm:$0xff]  ;;  %v2325_v47 = vmul.f32 %v4463_v61, %v4463_v61  ;;  %v4490_v24 = vmul.f32 %v4103_v26, %v4351_v3  ;;  %v1095_v3 = vld [vmem:[%s6657_s1 + $0xf0] sm:$0xff] }
  0xf5   :  { %6707 = vst [vmem:[#allocation32_spill] sm:$0xff] %v4463_v61  ;;  %v678_v46 = vmul.f32 %v4423_v36, %v677_v49  ;;  %v1965_v29 = vmul.f32 %v4103_v26, %v4353_v13  ;;  %v2143_v45 = vld [vmem:[#allocation3 + $0x63] sm:$0xff]  ;;  %1330 = vmatpush.msra.mxu3 %v1128_v0  ;;  %v2117_v51 = vadd.f32 %v2092_v5, %v2040_v39  ;;  %v2144_v49 = vld [vmem:[#allocation3 + $0x6b] sm:$0xff] }
  0xf6   :  { %v2294_v32 = vadd.f32 %v2293_v52, %v4463_v61  ;;  %v2348_v9 = vadd.f32 %v2347_v41, %v2324_v56  ;;  %v2016_v17 = vmul.f32 %v4226_v20, %v1989_v25  ;;  %v4500_v4 = vpop.permute.xlu1 %1881  ;;  %v2017_v11 = vmul.f32 %v4226_v20, %v1990_v30  ;;  %v1111_v25 = vld [vmem:[%s6657_s1 + $0x170] sm:$0xff]  ;;  %1261 = vmatpush.msra.mxu1 %v1095_v3 }
  0xf7   :  { %v4506_v13 = vsel %vm681_vm2, %v4423_v36, %v678_v46  ;;  %v2093_v0 = vmul.f32 %v4246_v59, %v2066_v7  ;;  %v2094_v41 = vmul.f32 %v4246_v59, %v2067_v57  ;;  %1921 = vst [vmem:[#allocation3 + $0xb0] sm:$0xff] %v4500_v4  ;;  %v4512_v5 = vpop.permute.xlu0 %1891  ;;  %v6708_v36 = vsub.f32 %v4266_v33, %v4346_v44  ;;  %v2220_v57 = vld [vmem:[#allocation3 + $0x64] sm:$0xff]  ;;  %v1078_v46 = vld [vmem:[%s6657_s1 + $0x68] sm:$0xff] }
  0xf8   :  { %v6709_v56 = vsub.f32 %v4269_v8, %v4346_v44  ;;  %v2349_v30 = vadd.f32 %v2348_v9, %v2325_v47  ;;  %v2194_v7 = vadd.f32 %v2169_v62, %v2117_v51  ;;  %1923 = vst [vmem:[#allocation3 + $0xc0] sm:$0xff] %v4512_v5  ;;  %v2041_v61 = vadd.f32 %v2016_v17, %v1964_v28  ;;  %v1094_v8 = vld [vmem:[%s6657_s1 + $0xe8] sm:$0xff] }
  0xf9   :  { %v706_v52 = vmul.f32 %v4506_v13, %v6708_v36  ;;  %v2042_v63 = vadd.f32 %v2017_v11, %v1965_v29  ;;  %v2170_v33 = vmul.f32 %v4251_v60, %v2143_v45  ;;  %v2171_v36 = vmul.f32 %v4251_v60, %v2144_v49  ;;  %v1991_v9 = vld [vmem:[#allocation3 + $0x71] sm:$0xff]  ;;  %1296 = vmatpush.msra.mxu2 %v1111_v25  ;;  %v1993_v25 = vld [vmem:[#allocation3 + $0x81] sm:$0xff] }
  0xfa   :  { %v707_v39 = vmul.f32 %v4506_v13, %v6709_v56  ;;  %1331 = vmatpush.msra.mxu3 %v1127_v37  ;;  %v4539_v28 = vadd.f32 %v2246_v18, %v2194_v7  ;;  %v2118_v29 = vadd.f32 %v2093_v0, %v2041_v61  ;;  %v2247_v51 = vmul.f32 %v4258_v58, %v2220_v57  ;;  %v2068_v17 = vld [vmem:[#allocation3 + $0x72] sm:$0xff]  ;;  %v2069_v37 = vld [vmem:[#allocation3 + $0x7a] sm:$0xff]  ;;  %v2070_v7 = vld [vmem:[#allocation3 + $0x82] sm:$0xff] }
  0xfb   :  { %vm731_vm3 = vcmp.gt.f32.partialorder %v706_v52, 0.0  ;;  %v757_v62 = vmul.f32 %v4483_v31, %v706_v52  ;;  %v2119_v45 = vadd.f32 %v2094_v41, %v2042_v63  ;;  %v2145_v49 = vld [vmem:[#allocation3 + $0x73] sm:$0xff]  ;;  %1227 = vmatpush.msra.mxu0 %v1078_v46  ;;  %v2248_v35 = vmul.f32 %v4258_v58, %v2221_v43  ;;  %1262 = vmatpush.msra.mxu1 %v1094_v8  ;;  %v1077_v57 = vld [vmem:[%s6657_s1 + $0x60] sm:$0xff] }
  0xfc   :  { %vm732_vm4 = vcmp.gt.f32.partialorder %v707_v39, 0.0  ;;  %v758_v47 = vmul.f32 %v4483_v31, %v707_v39  ;;  %v2222_v3 = vld [vmem:[#allocation3 + $0x74] sm:$0xff]  ;;  %v1967_v27 = vmul.f32 %v4103_v26, %v4361_v14  ;;  %v2295_v63 = vadd.f32 %v2294_v32, %v4539_v28 }
  0xfd   :  { %v782_v11 = vsel %vm731_vm3, %v706_v52, %v757_v62  ;;  %v1110_v61 = vld [vmem:[%s6657_s1 + $0x168] sm:$0xff]  ;;  %v2326_v18 = vmul.f32 %v4539_v28, %v4539_v28  ;;  %v2195_v0 = vadd.f32 %v2170_v33, %v2118_v29  ;;  %v2196_v41 = vadd.f32 %v2171_v36, %v2119_v45  ;;  %v2146_v62 = vld [vmem:[#allocation3 + $0x7b] sm:$0xff]  ;;  %1228 = vmatpush.msra.mxu0 %v1077_v57 }
  0xfe   :  { %v783_v56 = vsel %vm732_vm4, %v707_v39, %v758_v47  ;;  %807 = vst [vmem:[#allocation4 + $0xb8] sm:$0xff] %v782_v11  ;;  %v1126_v14 = vld [vmem:[%s6657_s1 + $0x1e8] sm:$0xff]  ;;  %v2018_v43 = vmul.f32 %v4226_v20, %v1991_v9  ;;  %v2095_v52 = vmul.f32 %v4246_v59, %v2068_v17  ;;  %v2172_v39 = vmul.f32 %v4251_v60, %v2145_v49  ;;  %v1093_v47 = vld [vmem:[%s6657_s1 + $0xe0] sm:$0xff] }
  0xff   :  { %808 = vst [vmem:[#allocation4 + $0xc0] sm:$0xff] %v783_v56  ;;  %v2249_v32 = vmul.f32 %v4258_v58, %v2222_v3  ;;  %v2350_v46 = vadd.f32 %v2349_v30, %v2326_v18  ;;  %v4561_v33 = vadd.f32 %v2247_v51, %v2195_v0  ;;  %v4563_v36 = vadd.f32 %v2248_v35, %v2196_v41  ;;  %v2147_v51 = vld [vmem:[#allocation3 + $0x83] sm:$0xff]  ;;  %v1897_v41 = vpop.permute.xlu1 %1896 }
 0x100   :  { %v1968_v8 = vmul.f32 %v4103_v26, %v4393_v10  ;;  %1297 = vmatpush.msra.mxu2 %v1110_v61  ;;  %v2043_v9 = vadd.f32 %v2018_v43, %v4338_v42  ;;  %v2019_v29 = vmul.f32 %v4226_v20, %v1992_v40  ;;  %v2020_v45 = vmul.f32 %v4226_v20, %v1993_v25  ;;  %v2223_v35 = vld [vmem:[#allocation3 + $0x7c] sm:$0xff]  ;;  %v1109_v26 = vld [vmem:[%s6657_s1 + $0x160] sm:$0xff] }
 0x101   :  { %v2096_v30 = vmul.f32 %v4246_v59, %v2069_v37  ;;  %1332 = vmatpush.msra.mxu3 %v1126_v14  ;;  %v2296_v10 = vadd.f32 %v2295_v63, %v4561_v33  ;;  %v2327_v17 = vmul.f32 %v4561_v33, %v4561_v33  ;;  %v2328_v42 = vmul.f32 %v4563_v36, %v4563_v36  ;;  %v2224_v49 = vld [vmem:[#allocation3 + $0x84] sm:$0xff] }
 0x102   :  { %v2097_v40 = vmul.f32 %v4246_v59, %v2070_v7  ;;  %v1125_v3 = vld [vmem:[%s6657_s1 + $0x1e0] sm:$0xff]  ;;  %v2120_v11 = vadd.f32 %v2095_v52, %v2043_v9  ;;  %v2044_v56 = vadd.f32 %v2019_v29, %v1967_v27  ;;  %v2045_v61 = vadd.f32 %v2020_v45, %v1968_v8  ;;  %1263 = vmatpush.msra.mxu1 %v1093_v47  ;;  %v1076_v27 = vld [vmem:[%s6657_s1 + $0x58] sm:$0xff]  ;;  %v1995_v9 = vld [vmem:[#allocation3 + $0x91] sm:$0xff] }
 0x103   :  { %v2173_v18 = vmul.f32 %v4251_v60, %v2146_v62  ;;  %v1994_v63 = vld [vmem:[#allocation3 + $0x89] sm:$0xff]  ;;  %v2297_v25 = vadd.f32 %v2296_v10, %v4563_v36  ;;  %v2351_v37 = vadd.f32 %v2350_v46, %v2327_v17  ;;  %v2174_v14 = vmul.f32 %v4251_v60, %v2147_v51  ;;  %1298 = vmatpush.msra.mxu2 %v1109_v26  ;;  %v1092_v46 = vld [vmem:[%s6657_s1 + $0xd8] sm:$0xff]  ;;  %v4600_v45 = vld [vmem:[%s6656_s2] ss:$0 sm:$0xff] }
 0x104   :  { %v2071_v0 = vld [vmem:[#allocation3 + $0x8a] sm:$0xff]  ;;  %v2250_v43 = vmul.f32 %v4258_v58, %v2223_v35  ;;  %v2197_v52 = vadd.f32 %v2172_v39, %v2120_v11  ;;  %v2121_v57 = vadd.f32 %v2096_v30, %v2044_v56  ;;  %v2122_v8 = vadd.f32 %v2097_v40, %v2045_v61  ;;  %1333 = vmatpush.msra.mxu3 %v1125_v3  ;;  %v1108_v35 = vld [vmem:[%s6657_s1 + $0x158] sm:$0xff]  ;;  %v1075_v61 = vld [vmem:[%s6657_s1 + $0x50] sm:$0xff] }
 0x105   :  { %v2148_v7 = vld [vmem:[#allocation3 + $0x8b] sm:$0xff]  ;;  %v2251_v62 = vmul.f32 %v4258_v58, %v2224_v49  ;;  %v2352_v29 = vadd.f32 %v2351_v37, %v2328_v42  ;;  %v1970_v39 = vmul.f32 %v4600_v45, %v4402_v15  ;;  %v2021_v30 = vmul.f32 %v4226_v20, %v1994_v63  ;;  %1924 = vst [vmem:[#allocation3 + $0xc8] sm:$0xf] %v1897_v41  ;;  %v1996_v40 = vld [vmem:[#allocation3 + $0x99] sm:$0xff] }
 0x106   :  { %v2225_v47 = vld [vmem:[#allocation3 + $0x8c] sm:$0xff]  ;;  %v2098_v51 = vmul.f32 %v4246_v59, %v2071_v0  ;;  %v4609_v26 = vadd.f32 %v2249_v32, %v2197_v52  ;;  %v2198_v10 = vadd.f32 %v2173_v18, %v2121_v57  ;;  %v2199_v17 = vadd.f32 %v2174_v14, %v2122_v8  ;;  %1229 = vmatpush.msra.mxu0 %v1076_v27  ;;  %v1124_v15 = vld [vmem:[%s6657_s1 + $0x1d8] sm:$0xff] }
 0x107   :  { %v2175_v42 = vmul.f32 %v4251_v60, %v2148_v7  ;;  %v2072_v49 = vld [vmem:[#allocation3 + $0x92] sm:$0xff]  ;;  %v2046_v3 = vadd.f32 %v2021_v30, %v4380_v21  ;;  %v2252_v11 = vmul.f32 %v4258_v58, %v2225_v47  ;;  %v1971_v56 = vmul.f32 %v4600_v45, %v4436_v55  ;;  %1264 = vmatpush.msra.mxu1 %v1092_v46  ;;  %v2073_v41 = vld [vmem:[#allocation3 + $0x9a] sm:$0xff] }
 0x108   :  { %v2022_v32 = vmul.f32 %v4226_v20, %v1995_v9  ;;  %v2298_v18 = vadd.f32 %v2297_v25, %v4609_v26  ;;  %v2329_v63 = vmul.f32 %v4609_v26, %v4609_v26  ;;  %v4626_v0 = vadd.f32 %v2250_v43, %v2198_v10  ;;  %1299 = vmatpush.msra.mxu2 %v1108_v35  ;;  %v1091_v55 = vld [vmem:[%s6657_s1 + $0xd0] sm:$0xff]  ;;  %v1997_v10 = vld [vmem:[#allocation3 + $0xa1] sm:$0xff] }
 0x109   :  { %v4628_v21 = vadd.f32 %v2251_v62, %v2199_v17  ;;  %v2123_v37 = vadd.f32 %v2098_v51, %v2046_v3  ;;  %v2023_v14 = vmul.f32 %v4226_v20, %v1996_v40  ;;  %v2099_v27 = vmul.f32 %v4246_v59, %v2072_v49  ;;  %v2149_v25 = vld [vmem:[#allocation3 + $0x93] sm:$0xff]  ;;  %v2150_v52 = vld [vmem:[#allocation3 + $0x9b] sm:$0xff]  ;;  %1334 = vmatpush.msra.mxu3 %v1124_v15 }
 0x10a   :  { %v2047_v7 = vadd.f32 %v2022_v32, %v1970_v39  ;;  %v1107_v43 = vld [vmem:[%s6657_s1 + $0x150] sm:$0xff]  ;;  %v2353_v57 = vadd.f32 %v2352_v29, %v2329_v63  ;;  %v2299_v8 = vadd.f32 %v2298_v18, %v4626_v0  ;;  %v2330_v62 = vmul.f32 %v4626_v0, %v4626_v0  ;;  %1230 = vmatpush.msra.mxu0 %v1075_v61  ;;  %v1074_v17 = vld [vmem:[%s6657_s1 + $0x48] sm:$0xff]  ;;  %v2074_v32 = vld [vmem:[#allocation3 + $0xa2] sm:$0xff] }
 0x10b   :  { %v2331_v47 = vmul.f32 %v4628_v21, %v4628_v21  ;;  %v2226_v9 = vld [vmem:[#allocation3 + $0x94] sm:$0xff]  ;;  %v2227_v46 = vld [vmem:[#allocation3 + $0x9c] sm:$0xff]  ;;  %v2200_v30 = vadd.f32 %v2175_v42, %v2123_v37  ;;  %v2048_v51 = vadd.f32 %v2023_v14, %v1971_v56  ;;  %v2100_v35 = vmul.f32 %v4246_v59, %v2073_v41  ;;  %1265 = vmatpush.msra.mxu1 %v1091_v55  ;;  %v2228_v55 = vld [vmem:[#allocation3 + $0xa4] sm:$0xff] }
 0x10c   :  { %v1123_v39 = vld [vmem:[%s6657_s1 + $0x1d0] sm:$0xff]  ;;  %v2124_v29 = vadd.f32 %v2099_v27, %v2047_v7  ;;  %v2300_v40 = vadd.f32 %v2299_v8, %v4628_v21  ;;  %v2354_v49 = vadd.f32 %v2353_v57, %v2330_v62  ;;  %v2176_v15 = vmul.f32 %v4251_v60, %v2149_v25  ;;  %1300 = vmatpush.msra.mxu2 %v1107_v43  ;;  %v1090_v42 = vld [vmem:[%s6657_s1 + $0xc8] sm:$0xff]  ;;  %v2151_v41 = vld [vmem:[#allocation3 + $0xa3] sm:$0xff] }
 0x10d   :  { %v2177_v3 = vmul.f32 %v4251_v60, %v2150_v52  ;;  %v4656_v56 = vadd.f32 %v2252_v11, %v2200_v30  ;;  %v2125_v61 = vadd.f32 %v2100_v35, %v2048_v51  ;;  %v2253_v18 = vmul.f32 %v4258_v58, %v2226_v9  ;;  %1335 = vmatpush.msra.mxu3 %v1123_v39  ;;  %v1106_v37 = vld [vmem:[%s6657_s1 + $0x148] sm:$0xff] }
 0x10e   :  { %v2254_v63 = vmul.f32 %v4258_v58, %v2227_v46  ;;  %v2355_v14 = vadd.f32 %v2354_v49, %v2331_v47  ;;  %v2201_v7 = vadd.f32 %v2176_v15, %v2124_v29  ;;  %v1973_v27 = vmul.f32 %v4600_v45, %v4443_v48  ;;  %v1998_v25 = vld [vmem:[#allocation3 + $0xa9] sm:$0xff]  ;;  %1231 = vmatpush.msra.mxu0 %v1074_v17  ;;  %v1999_v47 = vld [vmem:[#allocation3 + $0xb1] sm:$0xff] }
 0x10f   :  { %v2024_v11 = vmul.f32 %v4226_v20, %v1997_v10  ;;  %v1122_v52 = vld [vmem:[%s6657_s1 + $0x1c8] sm:$0xff]  ;;  %v2301_v43 = vadd.f32 %v2300_v40, %v4656_v56  ;;  %v2332_v57 = vmul.f32 %v4656_v56, %v4656_v56  ;;  %v2202_v8 = vadd.f32 %v2177_v3, %v2125_v61  ;;  %1266 = vmatpush.msra.mxu1 %v1090_v42  ;;  %v1073_v48 = vld [vmem:[%s6657_s1 + $0x40] sm:$0xff] }
 0x110   :  { %v2101_v62 = vmul.f32 %v4246_v59, %v2074_v32  ;;  %v4676_v9 = vadd.f32 %v2253_v18, %v2201_v7  ;;  %v2178_v39 = vmul.f32 %v4251_v60, %v2151_v41  ;;  %v2255_v30 = vmul.f32 %v4258_v58, %v2228_v55  ;;  %v2075_v51 = vld [vmem:[#allocation3 + $0xaa] sm:$0xff]  ;;  %v2076_v35 = vld [vmem:[#allocation3 + $0xb2] sm:$0xff]  ;;  %1301 = vmatpush.msra.mxu2 %v1106_v37 }
 0x111   :  { %v2049_v46 = vadd.f32 %v2024_v11, %v4411_v6  ;;  %v1089_v29 = vld [vmem:[%s6657_s1 + $0xc0] sm:$0xff]  ;;  %v2356_v10 = vadd.f32 %v2355_v14, %v2332_v57  ;;  %v4684_v17 = vadd.f32 %v2254_v63, %v2202_v8  ;;  %v1974_v40 = vmul.f32 %v4600_v45, %v4500_v4  ;;  %1336 = vmatpush.msra.mxu3 %v1122_v52  ;;  %v2153_v18 = vld [vmem:[#allocation3 + $0xb3] sm:$0xff] }
 0x112   :  { %v2025_v49 = vmul.f32 %v4226_v20, %v1998_v25  ;;  %v2152_v6 = vld [vmem:[#allocation3 + $0xab] sm:$0xff]  ;;  %v2302_v3 = vadd.f32 %v2301_v43, %v4676_v9  ;;  %v2333_v32 = vmul.f32 %v4676_v9, %v4676_v9  ;;  %v2026_v61 = vmul.f32 %v4226_v20, %v1999_v47  ;;  %1232 = vmatpush.msra.mxu0 %v1073_v48  ;;  %v2230_v7 = vld [vmem:[#allocation3 + $0xb4] sm:$0xff]  ;;  %v1072_v20 = vld [vmem:[%s6657_s1 + $0x38] sm:$0xff] }
 0x113   :  { %v1105_v15 = vld [vmem:[%s6657_s1 + $0x140] sm:$0xff]  ;;  %v2126_v42 = vadd.f32 %v2101_v62, %v2049_v46  ;;  %v2334_v41 = vmul.f32 %v4684_v17, %v4684_v17  ;;  %v2102_v37 = vmul.f32 %v4246_v59, %v2075_v51  ;;  %v2103_v14 = vmul.f32 %v4246_v59, %v2076_v35  ;;  %1267 = vmatpush.msra.mxu1 %v1089_v29  ;;  %v2000_v57 = vld [vmem:[#allocation3 + $0xb9] sm:$0xff] }
 0x114   :  { %v2229_v63 = vld [vmem:[#allocation3 + $0xac] sm:$0xff]  ;;  %v2050_v55 = vadd.f32 %v2025_v49, %v1973_v27  ;;  %v2303_v11 = vadd.f32 %v2302_v3, %v4684_v17  ;;  %v2357_v25 = vadd.f32 %v2356_v10, %v2333_v32  ;;  %v2051_v43 = vadd.f32 %v2026_v61, %v1974_v40  ;;  %v2077_v8 = vld [vmem:[#allocation3 + $0xba] sm:$0xff]  ;;  %1302 = vmatpush.msra.mxu2 %v1105_v15  ;;  %v3719_v3 = vld [vmem:[%s6656_s2 + $0x1] ss:$0 sm:$0xff] }
 0x115   :  { %v1121_v4 = vld [vmem:[%s6657_s1 + $0x1c0] sm:$0xff]  ;;  %v2203_v52 = vadd.f32 %v2178_v39, %v2126_v42  ;;  %v1088_v27 = vld [vmem:[%s6657_s1 + $0xb8] sm:$0xff]  ;;  %v2179_v59 = vmul.f32 %v4251_v60, %v2152_v6  ;;  %v2180_v47 = vmul.f32 %v4251_v60, %v2153_v18  ;;  %v2256_v48 = vmul.f32 %v4258_v58, %v2229_v63  ;;  %1233 = vmatpush.msra.mxu0 %v1072_v20  ;;  %v1071_v18 = vld [vmem:[%s6657_s1 + $0x30] sm:$0xff] }
 0x116   :  { %v2127_v62 = vadd.f32 %v2102_v37, %v2050_v55  ;;  %v2154_v46 = vld [vmem:[#allocation3 + $0xbb] sm:$0xff]  ;;  %1337 = vmatpush.msra.mxu3 %v1121_v4  ;;  %v2358_v51 = vadd.f32 %v2357_v25, %v2334_v41  ;;  %v2128_v29 = vadd.f32 %v2103_v14, %v2051_v43  ;;  %v2257_v10 = vmul.f32 %v4258_v58, %v2230_v7  ;;  %v3720_v58 = vld [vmem:[%s6656_s2 + $0x2] ss:$0 sm:$0xff]  ;;  %v3721_v4 = vld [vmem:[%s6656_s2 + $0x3] ss:$0 sm:$0xff] }
 0x117   :  { %v1104_v39 = vld [vmem:[%s6657_s1 + $0x138] sm:$0xff]  ;;  %v4716_v35 = vadd.f32 %v2255_v30, %v2203_v52  ;;  %v1976_v15 = vmul.f32 %v4600_v45, %v4512_v5  ;;  %v2027_v30 = vmul.f32 %v3719_v3, %v2000_v57  ;;  %v2104_v32 = vmul.f32 %v3720_v58, %v2077_v8  ;;  %1268 = vmatpush.msra.mxu1 %v1088_v27  ;;  %v1087_v55 = vld [vmem:[%s6657_s1 + $0xb0] sm:$0xff]  ;;  %v3722_v7 = vld [vmem:[%s6656_s2 + $0x4] ss:$0 sm:$0xff] }
 0x118   :  { %v2231_v40 = vld [vmem:[#allocation3 + $0xbc] sm:$0xff]  ;;  %v2204_v6 = vadd.f32 %v2179_v59, %v2127_v62  ;;  %v2205_v45 = vadd.f32 %v2180_v47, %v2128_v29  ;;  %v2181_v41 = vmul.f32 %v3721_v4, %v2154_v46  ;;  %1303 = vmatpush.msra.mxu2 %v1104_v39  ;;  %v2232_v25 = vld [vmem:[#allocation3 + $0xc4] sm:$0xff]  ;;  %1234 = vmatpush.msra.mxu0 %v1071_v18  ;;  %v1070_v62 = vld [vmem:[%s6657_s1 + $0x28] sm:$0xff] }
 0x119   :  { %v2001_v49 = vld [vmem:[#allocation3 + $0xc1] sm:$0xff]  ;;  %v2304_v63 = vadd.f32 %v2303_v11, %v4716_v35  ;;  %v2335_v5 = vmul.f32 %v4716_v35, %v4716_v35  ;;  %v2052_v14 = vadd.f32 %v2027_v30, %v4490_v24  ;;  %v2258_v20 = vmul.f32 %v3722_v7, %v2231_v40  ;;  %v1103_v52 = vld [vmem:[%s6657_s1 + $0x130] sm:$0xff]  ;;  %1269 = vmatpush.msra.mxu1 %v1087_v55  ;;  %v1086_v39 = vld [vmem:[%s6657_s1 + $0xa8] sm:$0xff] }
 0x11a   :  { %v1120_v60 = vld [vmem:[%s6657_s1 + $0x1b8] sm:$0xff]  ;;  %v4742_v37 = vadd.f32 %v2256_v48, %v2204_v6  ;;  %v2028_v11 = vmul.f32 %v3719_v3, %v2001_v49  ;;  %v1119_v43 = vld [vmem:[%s6657_s1 + $0x1b0] sm:$0xff]  ;;  %v4754_v8 = vadd.f32 %v2257_v10, %v2205_v45  ;;  %v2259_v10 = vmul.f32 %v3722_v7, %v2232_v25  ;;  %1304 = vmatpush.msra.mxu2 %v1103_v52  ;;  %v1118_v40 = vld [vmem:[%s6657_s1 + $0x1a8] sm:$0xff] }
 0x11b   :  { %v2078_v42 = vld [vmem:[#allocation3 + $0xc2] sm:$0xff]  ;;  %1338 = vmatpush.msra.mxu3 %v1120_v60  ;;  %v2359_v57 = vadd.f32 %v2358_v51, %v2335_v5  ;;  %v2129_v48 = vadd.f32 %v2104_v32, %v2052_v14  ;;  %v1102_v51 = vld [vmem:[%s6657_s1 + $0x128] sm:$0xff]  ;;  %v647_v60 = vsub.f32 %v3946_v22, %v4346_v44  ;;  %1235 = vmatpush.msra.mxu0 %v1070_v62  ;;  %v1083_v52 = vld [vmem:[%s6657_s1 + $0x90] sm:$0xff] }
 0x11c   :  { %v2155_v61 = vld [vmem:[#allocation3 + $0xc3] sm:$0xff]  ;;  %v2105_v24 = vmul.f32 %v3720_v58, %v2078_v42  ;;  %v2305_v59 = vadd.f32 %v2304_v63, %v4742_v37  ;;  %v2336_v47 = vmul.f32 %v4742_v37, %v4742_v37  ;;  %v2053_v46 = vadd.f32 %v2028_v11, %v1976_v15  ;;  %1270 = vmatpush.msra.mxu1 %v1086_v39  ;;  %v1098_v39 = vld [vmem:[%s6657_s1 + $0x108] sm:$0xff] }
 0x11d   :  { %v2182_v27 = vmul.f32 %v3721_v4, %v2155_v61  ;;  %v2337_v29 = vmul.f32 %v4754_v8, %v4754_v8  ;;  %1339 = vmatpush.msra.mxu3 %v1119_v43  ;;  %v1069_v49 = vld [vmem:[%s6657_s1 + $0x20] sm:$0xff]  ;;  %v2206_v3 = vadd.f32 %v2181_v41, %v2129_v48  ;;  %1305 = vmatpush.msra.mxu2 %v1102_v51  ;;  %v1068_v42 = vld [vmem:[%s6657_s1 + $0x18] sm:$0xff]  ;;  %v1115_v43 = vld [vmem:[%s6657_s1 + $0x190] sm:$0xff] }
 0x11e   :  { %v2306_v6 = vadd.f32 %v2305_v59, %v4754_v8  ;;  %v2360_v15 = vadd.f32 %v2359_v57, %v2336_v47  ;;  %v2130_v30 = vadd.f32 %v2105_v24, %v2053_v46  ;;  %v1085_v58 = vld [vmem:[%s6657_s1 + $0xa0] sm:$0xff]  ;;  %v648_v61 = vsub.f32 %v3948_v23, %v4346_v44  ;;  %1236 = vmatpush.msra.mxu0 %v1069_v49  ;;  %v1084_v41 = vld [vmem:[%s6657_s1 + $0x98] sm:$0xff]  ;;  %v1066_v57 = vld [vmem:[%s6657_s1 + $0x8] sm:$0xff] }
 0x11f   :  { %v1101_v32 = vld [vmem:[%s6657_s1 + $0x120] sm:$0xff]  ;;  %v649_v18 = vsub.f32 %v3929_v1, %v4346_v44  ;;  %v650_v63 = vsub.f32 %v3931_v2, %v4346_v44  ;;  %v4797_v45 = vadd.f32 %v2258_v20, %v2206_v3  ;;  %1340 = vmatpush.msra.mxu3 %v1118_v40  ;;  %v1100_v23 = vld [vmem:[%s6657_s1 + $0x118] sm:$0xff]  ;;  %1271 = vmatpush.msra.mxu1 %v1085_v58  ;;  %v1067_v2 = vld [vmem:[%s6657_s1 + $0x10] sm:$0xff] }
 0x120   :  { %v1117_v22 = vld [vmem:[%s6657_s1 + $0x1a0] sm:$0xff]  ;;  %v2361_v5 = vadd.f32 %v2360_v15, %v2337_v29  ;;  %v2207_v4 = vadd.f32 %v2182_v27, %v2130_v30  ;;  %1306 = vmatpush.msra.mxu2 %v1101_v32  ;;  %v1116_v1 = vld [vmem:[%s6657_s1 + $0x198] sm:$0xff]  ;;  %v651_v55 = vsub.f32 %v3878_v54, %v4346_v44  ;;  %v683_v14 = vmul.f32 %v4506_v13, %v647_v60  ;;  %v1099_v54 = vld [vmem:[%s6657_s1 + $0x110] sm:$0xff] }
 0x121   :  { %v684_v7 = vmul.f32 %v4506_v13, %v648_v61  ;;  %v2307_v20 = vadd.f32 %v2306_v6, %v4797_v45  ;;  %v2338_v11 = vmul.f32 %v4797_v45, %v4797_v45  ;;  %1341 = vmatpush.msra.mxu3 %v1117_v22  ;;  %1237 = vmatpush.msra.mxu0 %v1068_v42  ;;  %v1082_v46 = vld [vmem:[%s6657_s1 + $0x88] sm:$0xff]  ;;  %v1065_v29 = vld [vmem:[%s6657_s1] sm:$0xff] }
 0x122   :  { %v4818_v25 = vadd.f32 %v2259_v10, %v2207_v4  ;;  %1272 = vmatpush.msra.mxu1 %v1084_v41  ;;  %1307 = vmatpush.msra.mxu2 %v1100_v23  ;;  %v685_v24 = vmul.f32 %v4506_v13, %v649_v18  ;;  %v686_v27 = vmul.f32 %v4506_v13, %v650_v63  ;;  %vm708_vm5 = vcmp.gt.f32.partialorder %v683_v14, 0.0  ;;  %v1114_v51 = vld [vmem:[%s6657_s1 + $0x188] sm:$0xff]  ;;  %v1081_v60 = vld [vmem:[%s6657_s1 + $0x80] sm:$0xff] }
 0x123   :  { %v687_v62 = vmul.f32 %v4506_v13, %v651_v55  ;;  %v2362_v59 = vadd.f32 %v2361_v5, %v2338_v11  ;;  %1342 = vmatpush.msra.mxu3 %v1116_v1  ;;  %1238 = vmatpush.msra.mxu0 %v1067_v2  ;;  %vm709_vm6 = vcmp.gt.f32.partialorder %v684_v7, 0.0  ;;  %v734_v10 = vmul.f32 %v4483_v31, %v683_v14  ;;  %v1097_v6 = vld [vmem:[%s6657_s1 + $0x100] sm:$0xff] }
 0x124   :  { %v2308_v47 = vadd.f32 %v2307_v20, %v4818_v25  ;;  %v2339_v48 = vmul.f32 %v4818_v25, %v4818_v25  ;;  %1273 = vmatpush.msra.mxu1 %v1083_v52  ;;  %1308 = vmatpush.msra.mxu2 %v1099_v54  ;;  %vm710_vm7 = vcmp.gt.f32.partialorder %v685_v24, 0.0  ;;  %vm711_vm8 = vcmp.gt.f32.partialorder %v686_v27, 0.0  ;;  %v1113_v30 = vld [vmem:[%s6657_s1 + $0x180] sm:$0xff] }
 0x125   :  { %vm712_vm9 = vcmp.gt.f32.partialorder %v687_v62, 0.0  ;;  %1343 = vmatpush.msra.mxu3 %v1115_v43  ;;  %1239 = vmatpush.msra.mxu0 %v1066_v57  ;;  %v735_v15 = vmul.f32 %v4483_v31, %v684_v7  ;;  %v736_v3 = vmul.f32 %v4483_v31, %v685_v24  ;;  %v737_v58 = vmul.f32 %v4483_v31, %v686_v27 }
 0x126   :  { %v2309_v40 = vrot.slane %v2308_v47, 4  ;;  %v2363_v49 = vadd.f32 %v2362_v59, %v2339_v48  ;;  %1274 = vmatpush.msra.mxu1 %v1082_v46  ;;  %1309 = vmatpush.msra.mxu2 %v1098_v39  ;;  %v738_v32 = vmul.f32 %v4483_v31, %v687_v62  ;;  %v759_v22 = vsel %vm708_vm5, %v683_v14, %v734_v10  ;;  %v1176_v48 = vld [vmem:[%s6657_s1 + $0x378] sm:$0xff] }
 0x127   :  { %1344 = vmatpush.msra.mxu3 %v1114_v51  ;;  %1240 = vmatpush.msra.mxu0 %v1065_v29  ;;  %v760_v18 = vsel %vm709_vm6, %v684_v7, %v735_v15  ;;  %v761_v63 = vsel %vm710_vm7, %v685_v24, %v736_v3  ;;  %v762_v5 = vsel %vm711_vm8, %v686_v27, %v737_v58  ;;  %v3727_v57 = vmov 0.0   ;;  %v1144_v46 = vld [vmem:[%s6657_s1 + $0x278] sm:$0xff]  ;;  %v1143_v3 = vld [vmem:[%s6657_s1 + $0x270] sm:$0xff] }
 0x128   :  { %v2310_v42 = vadd.f32 %v2309_v40, %v2308_v47  ;;  %v2364_v61 = vrot.slane %v2363_v49, 4  ;;  %1275 = vmatpush.msra.mxu1 %v1081_v60  ;;  %1310 = vmatpush.msra.mxu2 %v1097_v6  ;;  %v763_v4 = vsel %vm712_vm9, %v687_v62, %v738_v32  ;;  %784 = vst [vmem:[#allocation4] sm:$0xff] %v759_v22  ;;  %v1192_v39 = vld [vmem:[%s6657_s1 + $0x3f8] sm:$0xff]  ;;  %v1175_v6 = vld [vmem:[%s6657_s1 + $0x370] sm:$0xff]  ;;  %v1174_v32 = vld [vmem:[%s6657_s1 + $0x368] sm:$0xff] }
 0x129   :  { %v652_v41 = vsub.f32 %v3981_v12, %v4346_v44  ;;  %1345 = vmatpush.msra.mxu3 %v1113_v30  ;;  %785 = vst [vmem:[#allocation4 + $0x8] sm:$0xff] %v760_v18  ;;  %v653_v2 = vsub.f32 %v3985_v19, %v4346_v44  ;;  %v654_v55 = vsub.f32 %v3971_v53, %v4346_v44  ;;  %v1160_v15 = vld [vmem:[%s6657_s1 + $0x2f8] sm:$0xff]  ;;  %v1191_v58 = vld [vmem:[%s6657_s1 + $0x3f0] sm:$0xff] }
 0x12a   :  { %v2311_v23 = vrot.slane %v2310_v42, 2  ;;  %v2365_v1 = vadd.f32 %v2364_v61, %v2363_v49  ;;  %786 = vst [vmem:[#allocation4 + $0x10] sm:$0xff] %v761_v63  ;;  %v655_v14 = vsub.f32 %v4030_v16, %v4346_v44  ;;  %v656_v7 = vsub.f32 %v4036_v34, %v4346_v44  ;;  %1435 = vmatpush.msrb.mxu2 %v1176_v48  ;;  %v1159_v22 = vld [vmem:[%s6657_s1 + $0x2f0] sm:$0xff]  ;;  %v1157_v48 = vld [vmem:[%s6657_s1 + $0x2e0] sm:$0xff] }
 0x12b   :  { %v688_v20 = vmul.f32 %v4506_v13, %v652_v41  ;;  %787 = vst [vmem:[#allocation4 + $0x18] sm:$0xff] %v762_v5  ;;  %v689_v52 = vmul.f32 %v4506_v13, %v653_v2  ;;  %v690_v54 = vmul.f32 %v4506_v13, %v654_v55  ;;  %v657_v40 = vsub.f32 %v4007_v50, %v4346_v44  ;;  %v6712_v2 = vld [vmem:[#allocation14_spill] sm:$0xff] }
 0x12c   :  { %v2312_v12 = vadd.f32 %v2311_v23, %v2310_v42  ;;  %v2366_v11 = vrot.slane %v2365_v1, 2  ;;  %788 = vst [vmem:[#allocation4 + $0x20] sm:$0xff] %v763_v4  ;;  %v691_v19 = vmul.f32 %v4506_v13, %v655_v14  ;;  %v692_v53 = vmul.f32 %v4506_v13, %v656_v7  ;;  %1365 = vmatpush.msrb.mxu0 %v1144_v46  ;;  %v6711_v23 = vld [vmem:[#allocation11_spill] sm:$0xff]  ;;  %v1140_v46 = vld [vmem:[%s6657_s1 + $0x258] sm:$0xff] }
 0x12d   :  { %vm713_vm10 = vcmp.gt.f32.partialorder %v688_v20, 0.0  ;;  %878 = vst [vmem:[#allocation6] sm:$0x1f] %v3727_v57  ;;  %vm714_vm11 = vcmp.gt.f32.partialorder %v689_v52, 0.0  ;;  %vm715_vm12 = vcmp.gt.f32.partialorder %v690_v54, 0.0  ;;  %v739_v34 = vmul.f32 %v4483_v31, %v688_v20  ;;  %1470 = vmatpush.msrb.mxu3 %v1192_v39  ;;  %1400 = vmatpush.msrb.mxu1 %v1160_v15 }
 0x12e   :  { %v2313_v43 = vrot.slane %v2312_v12, 1  ;;  %v2367_v16 = vadd.f32 %v2366_v11, %v2365_v1  ;;  %879 = vst [vmem:[#allocation6 + $0x2d] sm:$0x1f] %v3727_v57  ;;  %vm716_vm13 = vcmp.gt.f32.partialorder %v691_v19, 0.0  ;;  %vm717_vm14 = vcmp.gt.f32.partialorder %v692_v53, 0.0  ;;  %1436 = vmatpush.msrb.mxu2 %v1175_v6  ;;  %1366 = vmatpush.msrb.mxu0 %v1143_v3 }
 0x12f   :  { %v740_v24 = vmul.f32 %v4483_v31, %v689_v52  ;;  %2604 = vst [vmem:[#allocation7] sm:$0x1f] %v3727_v57  ;;  %v741_v59 = vmul.f32 %v4483_v31, %v690_v54  ;;  %v742_v47 = vmul.f32 %v4483_v31, %v691_v19  ;;  %v743_v51 = vmul.f32 %v4483_v31, %v692_v53 }
 0x130   :  { %v2314_v27 = vadd.f32 %v2313_v43, %v2312_v12  ;;  %v2368_v62 = vrot.slane %v2367_v16, 1  ;;  %2605 = vst [vmem:[#allocation7 + $0x2d] sm:$0x1f] %v3727_v57  ;;  %v764_v29 = vsel %vm713_vm10, %v688_v20, %v739_v34  ;;  %v658_v50 = vsub.f32 %v4072_v38, %v4346_v44  ;;  %v6710_v38 = vld [vmem:[#allocation12_spill] sm:$0xff]  ;;  %1471 = vmatpush.msrb.mxu3 %v1191_v58  ;;  %v1158_v34 = vld [vmem:[%s6657_s1 + $0x2e8] sm:$0xff] }
 0x131   :  { %v765_v10 = vsel %vm714_vm11, %v689_v52, %v740_v24  ;;  %v766_v30 = vsel %vm715_vm12, %v690_v54, %v741_v59  ;;  %v767_v42 = vsel %vm716_vm13, %v691_v19, %v742_v47  ;;  %v768_v61 = vsel %vm717_vm14, %v692_v53, %v743_v51  ;;  %789 = vst [vmem:[#allocation4 + $0x28] sm:$0xff] %v764_v29  ;;  %v1142_v54 = vld [vmem:[%s6657_s1 + $0x268] sm:$0xff]  ;;  %v1173_v53 = vld [vmem:[%s6657_s1 + $0x360] sm:$0xff]  ;;  %v1172_v47 = vld [vmem:[%s6657_s1 + $0x358] sm:$0xff] }
 0x132   :  { %v2369_v49 = vadd.f32 %v2368_v62, %v2367_v16  ;;  %v4902_v60 = vmul.f32 0.005, %v2314_v27  ;;  %v659_v18 = vsub.f32 %v6710_v38, %v4346_v44  ;;  %v660_v1 = vsub.f32 %v6711_v23, %v4346_v44  ;;  %1401 = vmatpush.msrb.mxu1 %v1159_v22  ;;  %1437 = vmatpush.msrb.mxu2 %v1174_v32  ;;  %v1190_v19 = vld [vmem:[%s6657_s1 + $0x3e8] sm:$0xff]  ;;  %v1141_v24 = vld [vmem:[%s6657_s1 + $0x260] sm:$0xff] }
 0x133   :  { %v809_v4 = vld [vmem:[#allocation4] ss:$5 sm:$0xff]  ;;  %v819_v41 = vld [vmem:[#allocation4 + $0x1] ss:$5 sm:$0xff]  ;;  %v661_v55 = vsub.f32 %v6712_v2, %v4346_v44  ;;  %v693_v20 = vmul.f32 %v4506_v13, %v657_v40  ;;  %v694_v12 = vmul.f32 %v4506_v13, %v658_v50  ;;  %790 = vst [vmem:[#allocation4 + $0x30] sm:$0xff] %v765_v10  ;;  %1367 = vmatpush.msrb.mxu0 %v1142_v54 }
 0x134   :  { %v2371_v63 = vmul.f32 0.005, %v2369_v49  ;;  %v2372_v5 = vmul.f32 %v4902_v60, %v4902_v60  ;;  %v828_v14 = vmax.f32 %v809_v4, %v819_v41  ;;  %v834_v7 = vld [vmem:[#allocation4 + $0x2] ss:$5 sm:$0xff]  ;;  %v849_v52 = vld [vmem:[#allocation4 + $0x3] ss:$5 sm:$0xff]  ;;  %v695_v43 = vmul.f32 %v4506_v13, %v659_v18  ;;  %1472 = vmatpush.msrb.mxu3 %v1190_v19  ;;  %1438 = vmatpush.msrb.mxu2 %v1173_v53 }
 0x135   :  { %v696_v16 = vmul.f32 %v4506_v13, %v660_v1  ;;  %791 = vst [vmem:[#allocation4 + $0x38] sm:$0xff] %v766_v30  ;;  %v1189_v27 = vld [vmem:[%s6657_s1 + $0x3e0] sm:$0xff]  ;;  %v697_v62 = vmul.f32 %v4506_v13, %v661_v55  ;;  %vm718_vm15 = vcmp.gt.f32.partialorder %v693_v20, 0.0  ;;  %1402 = vmatpush.msrb.mxu1 %v1158_v34  ;;  %v744_v39 = vmul.f32 %v4483_v31, %v693_v20  ;;  %v1188_v10 = vld [vmem:[%s6657_s1 + $0x3d8] sm:$0xff]  ;;  %v1171_v40 = vld [vmem:[%s6657_s1 + $0x350] sm:$0xff] }
 0x136   :  { %v2373_v11 = vsub.f32 %v2371_v63, %v2372_v5  ;;  %v843_v57 = vmax.f32 %v828_v14, %v834_v7  ;;  %792 = vst [vmem:[#allocation4 + $0x40] sm:$0xff] %v767_v42  ;;  %v745_v51 = vmul.f32 %v4483_v31, %v694_v12  ;;  %1368 = vmatpush.msrb.mxu0 %v1141_v24  ;;  %vm719_vm0 = vcmp.gt.f32.partialorder %v694_v12, 0.0  ;;  %v864_v49 = vld [vmem:[#allocation4 + $0x4] ss:$5 sm:$0xff] }
 0x137   :  { %793 = vst [vmem:[#allocation4 + $0x48] sm:$0xff] %v768_v61  ;;  %1473 = vmatpush.msrb.mxu3 %v1189_v27  ;;  %vm720_vm1 = vcmp.gt.f32.partialorder %v695_v43, 0.0  ;;  %1439 = vmatpush.msrb.mxu2 %v1172_v47  ;;  %v746_v6 = vmul.f32 %v4483_v31, %v695_v43  ;;  %v747_v15 = vmul.f32 %v4483_v31, %v696_v16  ;;  %vm721_vm2 = vcmp.gt.f32.partialorder %v696_v16, 0.0  ;;  %v6713_v42 = vld [vmem:[#allocation15_spill] sm:$0xff]  ;;  %v6715_v41 = vld [vmem:[#allocation17_spill] sm:$0xff]  ;;  %v6717_v53 = vld [vmem:[#allocation16_spill] sm:$0xff] }
 0x138   :  { %v4958_v59 = vadd.f32 1e-05, %v2373_v11  ;;  %v858_v29 = vmax.f32 %v843_v57, %v849_v52  ;;  %1403 = vmatpush.msrb.mxu1 %v1157_v48  ;;  %1369 = vmatpush.msrb.mxu0 %v1140_v46  ;;  %v748_v30 = vmul.f32 %v4483_v31, %v697_v62  ;;  %v769_v50 = vsel %vm718_vm15, %v693_v20, %v744_v39  ;;  %v6714_v31 = vld [vmem:[#allocation13_spill] sm:$0xff]  ;;  %v6716_v20 = vld [vmem:[#allocation18_spill] sm:$0xff]  ;;  %v1139_v54 = vld [vmem:[%s6657_s1 + $0x250] sm:$0xff] }
 0x139   :  { %1474 = vmatpush.msrb.mxu3 %v1188_v10  ;;  %1440 = vmatpush.msrb.mxu2 %v1171_v40  ;;  %vm722_vm3 = vcmp.gt.f32.partialorder %v697_v62, 0.0  ;;  %v770_v58 = vsel %vm719_vm0, %v694_v12, %v745_v51  ;;  %v771_v32 = vsel %vm720_vm1, %v695_v43, %v746_v6  ;;  %794 = vst [vmem:[#allocation4 + $0x50] sm:$0xff] %v769_v50  ;;  %v1156_v7 = vld [vmem:[%s6657_s1 + $0x2d8] sm:$0xff]  ;;  %v1187_v19 = vld [vmem:[%s6657_s1 + $0x3d0] sm:$0xff]  ;;  %v1138_v48 = vld [vmem:[%s6657_s1 + $0x248] sm:$0xff] }
 0x13a   :  { %3704 = vrsqrt.f32 %v4958_v59  ;;  %v4980_v3 = vmax.f32 %v858_v29, %v864_v49  ;;  %v772_v22 = vsel %vm721_vm2, %v696_v16, %v747_v15  ;;  %795 = vst [vmem:[#allocation4 + $0x58] sm:$0xff] %v770_v58  ;;  %v662_v61 = vsub.f32 %v6713_v42, %v4346_v44  ;;  %1404 = vmatpush.msrb.mxu1 %v1156_v7  ;;  %v6718_v57 = vld [vmem:[#allocation20_spill] sm:$0xff]  ;;  %v5034_v49 = vld [vmem:[%s6656_s2 + $0x1e8] ss:$0 sm:$0xff] }
 0x13b   :  { %v773_v38 = vsel %vm722_vm3, %v697_v62, %v748_v30  ;;  %796 = vst [vmem:[#allocation4 + $0x60] sm:$0xff] %v771_v32  ;;  %v663_v18 = vsub.f32 %v6714_v31, %v4346_v44  ;;  %v664_v23 = vsub.f32 %v6715_v41, %v4346_v44  ;;  %v665_v12 = vsub.f32 %v6716_v20, %v4346_v44  ;;  %v1170_v62 = vld [vmem:[%s6657_s1 + $0x348] sm:$0xff]  ;;  %v1155_v47 = vld [vmem:[%s6657_s1 + $0x2d0] sm:$0xff]  ;;  %v1185_v31 = vld [vmem:[%s6657_s1 + $0x3c0] sm:$0xff] }
 0x13c   :  { %880 = vst [vmem:[#allocation6 + $0x5] sm:$0xff] %v4980_v3  ;;  %v4996_v1 = vmul.f32 %v4506_v13, %v662_v61  ;;  %v666_v43 = vsub.f32 %v6717_v53, %v4346_v44  ;;  %v667_v34 = vsub.f32 %v6718_v57, %v4346_v44  ;;  %1370 = vmatpush.msrb.mxu0 %v1139_v54  ;;  %v1186_v32 = vld [vmem:[%s6657_s1 + $0x3c8] sm:$0xff]  ;;  %vm2406_vm5 = vweird.f32 %v4958_v59 }
 0x13d   :  { %797 = vst [vmem:[#allocation4 + $0x68] sm:$0xff] %v772_v22  ;;  %v5006_v11 = vmul.f32 %v4506_v13, %v663_v18  ;;  %v700_v16 = vmul.f32 %v4506_v13, %v664_v23  ;;  %1475 = vmatpush.msrb.mxu3 %v1187_v19  ;;  %v701_v46 = vmul.f32 %v4506_v13, %v665_v12  ;;  %v1169_v22 = vld [vmem:[%s6657_s1 + $0x340] sm:$0xff]  ;;  %v1154_v61 = vld [vmem:[%s6657_s1 + $0x2c8] sm:$0xff] }
 0x13e   :  { %v811_v5 = vld [vmem:[#allocation4 + $0x28] ss:$5 sm:$0xff]  ;;  %v821_v4 = vld [vmem:[#allocation4 + $0x29] ss:$5 sm:$0xff]  ;;  %798 = vst [vmem:[#allocation4 + $0x70] sm:$0xff] %v773_v38  ;;  %1441 = vmatpush.msrb.mxu2 %v1170_v62  ;;  %1405 = vmatpush.msrb.mxu1 %v1155_v47  ;;  %v702_v40 = vmul.f32 %v4506_v13, %v666_v43  ;;  %v749_v6 = vmul.f32 %v5034_v49, %v4996_v1  ;;  %vm723_vm4 = vcmp.gt.f32.partialorder %v4996_v1, 0.0 }
 0x13f   :  { %v829_v55 = vmax.f32 %v811_v5, %v821_v4  ;;  %v836_v14 = vld [vmem:[#allocation4 + $0x2a] ss:$5 sm:$0xff]  ;;  %v851_v52 = vld [vmem:[#allocation4 + $0x2b] ss:$5 sm:$0xff]  ;;  %v703_v15 = vmul.f32 %v4506_v13, %v667_v34  ;;  %v750_v42 = vmul.f32 %v5034_v49, %v5006_v11  ;;  %vm724_vm7 = vcmp.gt.f32.partialorder %v5006_v11, 0.0  ;;  %1371 = vmatpush.msrb.mxu0 %v1138_v48  ;;  %1476 = vmatpush.msrb.mxu3 %v1186_v32 }
 0x140   :  { %v4991_v63 = vpop.eup %3704  ;;  %v866_v10 = vld [vmem:[#allocation4 + $0x2c] ss:$5 sm:$0xff]  ;;  %v751_v18 = vmul.f32 %v5034_v49, %v700_v16  ;;  %vm725_vm8 = vcmp.gt.f32.partialorder %v700_v16, 0.0  ;;  %v752_v41 = vmul.f32 %v5034_v49, %v701_v46  ;;  %1442 = vmatpush.msrb.mxu2 %v1169_v22  ;;  %1406 = vmatpush.msrb.mxu1 %v1154_v61  ;;  %vm726_vm9 = vcmp.gt.f32.partialorder %v701_v46, 0.0 }
 0x141   :  { %v2401_v2 = vmul.f32 %v4991_v63, %v4958_v59  ;;  %v844_v27 = vmax.f32 %v829_v55, %v836_v14  ;;  %vm2407_vm6 = vweird.f32 %v4991_v63  ;;  %v1137_v38 = vld [vmem:[%s6657_s1 + $0x240] sm:$0xff]  ;;  %vm727_vm10 = vcmp.gt.f32.partialorder %v702_v40, 0.0  ;;  %1477 = vmatpush.msrb.mxu3 %v1185_v31  ;;  %v1166_v32 = vld [vmem:[%s6657_s1 + $0x328] sm:$0xff]  ;;  %v1151_v61 = vld [vmem:[%s6657_s1 + $0x2b0] sm:$0xff] }
 0x142   :  { %v753_v23 = vmul.f32 %v5034_v49, %v702_v40  ;;  %1372 = vmatpush.msrb.mxu0 %v1137_v38  ;;  %v775_v20 = vsel %vm724_vm7, %v5006_v11, %v750_v42  ;;  %v754_v12 = vmul.f32 %v5034_v49, %v703_v15  ;;  %vm2408_vm11 = vmor %vm2406_vm5, %vm2407_vm6  ;;  %v776_v54 = vsel %vm725_vm8, %v700_v16, %v751_v18  ;;  %v6719_v43 = vld [vmem:[#allocation21_spill] sm:$0xff] }
 0x143   :  { %v2402_v24 = vmul.f32 %v4991_v63, %v2401_v2  ;;  %v885_v39 = vld [vmem:[#allocation6] sm:$0xff]  ;;  %v859_v58 = vmax.f32 %v844_v27, %v851_v52  ;;  %v774_v2 = vsel %vm723_vm4, %v4996_v1, %v749_v6  ;;  %v2398_v52 = vsub.f32 %v4818_v25, %v4902_v60  ;;  %v6720_v25 = vld [vmem:[#allocation19_spill] sm:$0xff]  ;;  %800 = vst [vmem:[#allocation4 + $0x80] sm:$0xff] %v775_v20  ;;  %v1153_v62 = vld [vmem:[%s6657_s1 + $0x2c0] sm:$0xff] }
 0x144   :  { %v897_v51 = vld [vmem:[#allocation6 + $0x1] sm:$0xff]  ;;  %1241 = vmatmul.f32.vlgmr.msra.gmra.mxu0 %v885_v39  ;;  %vm728_vm12 = vcmp.gt.f32.partialorder %v703_v15, 0.0  ;;  %v777_v11 = vsel %vm726_vm9, %v701_v46, %v752_v41  ;;  %799 = vst [vmem:[#allocation4 + $0x78] sm:$0xff] %v774_v2  ;;  %v668_v57 = vsub.f32 %v6719_v43, %v4346_v44  ;;  %v669_v34 = vsub.f32 %v6720_v25, %v4346_v44  ;;  %v1135_v6 = vld [vmem:[%s6657_s1 + $0x230] sm:$0xff]  ;;  %v1182_v41 = vld [vmem:[%s6657_s1 + $0x3a8] sm:$0xff] }
 0x145   :  { %v909_v29 = vld [vmem:[#allocation6 + $0x2] sm:$0xff]  ;;  %v2403_v30 = vmul.f32 0.5, %v2402_v24  ;;  %1276 = vmatmul.f32.vlgmr.msra.gmra.mxu1 %v897_v51  ;;  %v5061_v4 = vmax.f32 %v859_v58, %v866_v10  ;;  %v778_v16 = vsel %vm727_vm10, %v702_v40, %v753_v23  ;;  %801 = vst [vmem:[#allocation4 + $0x88] sm:$0xff] %v776_v54  ;;  %v779_v46 = vsel %vm728_vm12, %v703_v15, %v754_v12  ;;  %v1167_v10 = vld [vmem:[%s6657_s1 + $0x330] sm:$0xff] }
 0x146   :  { %v921_v50 = vld [vmem:[#allocation6 + $0x3] sm:$0xff]  ;;  %1311 = vmatmul.f32.vlgmr.msra.gmra.mxu2 %v909_v29  ;;  %v704_v47 = vmul.f32 %v4506_v13, %v668_v57  ;;  %v705_v48 = vmul.f32 %v4506_v13, %v669_v34  ;;  %802 = vst [vmem:[#allocation4 + $0x90] sm:$0xff] %v777_v11  ;;  %1407 = vmatpush.msrb.mxu1 %v1153_v62  ;;  %v1183_v15 = vld [vmem:[%s6657_s1 + $0x3b0] sm:$0xff] }
 0x147   :  { %1346 = vmatmul.f32.vlgmr.msra.gmra.mxu3 %v921_v50  ;;  %v2404_v5 = vsub.f32 1.5, %v2403_v30  ;;  %881 = vst [vmem:[#allocation6 + $0xd] sm:$0xff] %v5061_v4  ;;  %v813_v14 = vld [vmem:[#allocation4 + $0x50] ss:$5 sm:$0xff]  ;;  %v823_v7 = vld [vmem:[#allocation4 + $0x51] ss:$5 sm:$0xff] }
 0x148   :  { %v830_v1 = vmax.f32 %v813_v14, %v823_v7  ;;  %v838_v53 = vld [vmem:[#allocation4 + $0x52] ss:$5 sm:$0xff]  ;;  %v853_v27 = vld [vmem:[#allocation4 + $0x53] ss:$5 sm:$0xff]  ;;  %803 = vst [vmem:[#allocation4 + $0x98] sm:$0xff] %v778_v16  ;;  %v755_v38 = vmul.f32 %v5034_v49, %v704_v47  ;;  %vm729_vm14 = vcmp.gt.f32.partialorder %v704_v47, 0.0  ;;  %v756_v18 = vmul.f32 %v5034_v49, %v705_v48 }
 0x149   :  { %v2405_v55 = vmul.f32 %v4991_v63, %v2404_v5  ;;  %v1136_v44 = vld [vmem:[%s6657_s1 + $0x238] sm:$0xff]  ;;  %804 = vst [vmem:[#allocation4 + $0xa0] sm:$0xff] %v779_v46  ;;  %vm730_vm15 = vcmp.gt.f32.partialorder %v705_v48, 0.0  ;;  %v1134_v5 = vld [vmem:[%s6657_s1 + $0x228] sm:$0xff]  ;;  %v1165_v23 = vld [vmem:[%s6657_s1 + $0x320] sm:$0xff] }
 0x14a   :  { %v845_v24 = vmax.f32 %v830_v1, %v838_v53  ;;  %v1184_v29 = vld [vmem:[%s6657_s1 + $0x3b8] sm:$0xff]  ;;  %1373 = vmatpush.msrb.mxu0 %v1136_v44  ;;  %v780_v2 = vsel %vm729_vm14, %v704_v47, %v755_v38  ;;  %v1133_v14 = vld [vmem:[%s6657_s1 + $0x220] sm:$0xff]  ;;  %v1163_v34 = vld [vmem:[%s6657_s1 + $0x310] sm:$0xff] }
 0x14b   :  { %v5082_v19 = vsel %vm2408_vm11, %v4991_v63, %v2405_v55  ;;  %v1168_v63 = vld [vmem:[%s6657_s1 + $0x338] sm:$0xff]  ;;  %1478 = vmatpush.msrb.mxu3 %v1184_v29  ;;  %v1150_v55 = vld [vmem:[%s6657_s1 + $0x2a8] sm:$0xff]  ;;  %v1181_v7 = vld [vmem:[%s6657_s1 + $0x3a0] sm:$0xff]  ;;  %805 = vst [vmem:[#allocation4 + $0xa8] sm:$0xff] %v780_v2 }
 0x14c   :  { %v2434_v59 = vmul.f32 %v5082_v19, %v2398_v52  ;;  %v860_v51 = vmax.f32 %v845_v24, %v853_v27  ;;  %1443 = vmatpush.msrb.mxu2 %v1168_v63  ;;  %v1152_v13 = vld [vmem:[%s6657_s1 + $0x2b8] sm:$0xff]  ;;  %1374 = vmatpush.msrb.mxu0 %v1135_v6  ;;  %v781_v52 = vsel %vm730_vm15, %v705_v48, %v756_v18  ;;  %v1149_v11 = vld [vmem:[%s6657_s1 + $0x2a0] sm:$0xff]  ;;  %v1147_v38 = vld [vmem:[%s6657_s1 + $0x290] sm:$0xff] }
 0x14d   :  { %v868_v40 = vld [vmem:[#allocation4 + $0x54] ss:$5 sm:$0xff]  ;;  %1408 = vmatpush.msrb.mxu1 %v1152_v13  ;;  %1479 = vmatpush.msrb.mxu3 %v1183_v15  ;;  %806 = vst [vmem:[#allocation4 + $0xb0] sm:$0xff] %v781_v52 }
 0x14e   :  { %vm2459_vm13 = vcmp.gt.f32.partialorder %v2434_v59, 0.0  ;;  %v2484_v39 = vmul.f32 %v5034_v49, %v2434_v59  ;;  %v886_v50 = vld [vmem:[#allocation6 + $0x8] sm:$0xff]  ;;  %1444 = vmatpush.msrb.mxu2 %v1167_v10  ;;  %v5126_v31 = vmax.f32 %v860_v51, %v868_v40  ;;  %1375 = vmatpush.msrb.mxu0 %v1134_v5  ;;  %v1164_v1 = vld [vmem:[%s6657_s1 + $0x318] sm:$0xff]  ;;  %v1130_v18 = vld [vmem:[%s6657_s1 + $0x208] sm:$0xff] }
 0x14f   :  { %v898_v58 = vld [vmem:[#allocation6 + $0x9] sm:$0xff]  ;;  %1244 = vmatmul.f32.gmra.mxu0 %v886_v50  ;;  %1409 = vmatpush.msrb.mxu1 %v1151_v61  ;;  %v1132_v43 = vld [vmem:[%s6657_s1 + $0x218] sm:$0xff]  ;;  %v1131_v50 = vld [vmem:[%s6657_s1 + $0x210] sm:$0xff] }
 0x150   :  { %v2509_v30 = vsel %vm2459_vm13, %v2434_v59, %v2484_v39  ;;  %1279 = vmatmul.f32.gmra.mxu1 %v898_v58  ;;  %v910_v22 = vld [vmem:[#allocation6 + $0xa] sm:$0xff]  ;;  %1445 = vmatpush.msrb.mxu2 %v1166_v32  ;;  %882 = vst [vmem:[#allocation6 + $0x15] sm:$0xff] %v5126_v31  ;;  %v1180_v57 = vld [vmem:[%s6657_s1 + $0x398] sm:$0xff] }
 0x151   :  { %2534 = vst [vmem:[#allocation5 + $0xc0] sm:$0xff] %v2509_v30  ;;  %v922_v42 = vld [vmem:[#allocation6 + $0xb] sm:$0xff]  ;;  %1314 = vmatmul.f32.gmra.mxu2 %v910_v22  ;;  %1480 = vmatpush.msrb.mxu3 %v1182_v41  ;;  %v1148_v40 = vld [vmem:[%s6657_s1 + $0x298] sm:$0xff]  ;;  %v1179_v22 = vld [vmem:[%s6657_s1 + $0x390] sm:$0xff] }
 0x152   :  { %1349 = vmatmul.f32.gmra.mxu3 %v922_v42  ;;  %v815_v20 = vld [vmem:[#allocation4 + $0x78] ss:$5 sm:$0xff]  ;;  %v825_v12 = vld [vmem:[#allocation4 + $0x79] ss:$5 sm:$0xff]  ;;  %1446 = vmatpush.msrb.mxu2 %v1165_v23 }
 0x153   :  { %1410 = vmatpush.msrb.mxu1 %v1150_v55  ;;  %v831_v54 = vmax.f32 %v815_v20, %v825_v12  ;;  %v840_v53 = vld [vmem:[#allocation4 + $0x7a] ss:$5 sm:$0xff]  ;;  %1376 = vmatpush.msrb.mxu0 %v1133_v14  ;;  %v855_v27 = vld [vmem:[#allocation4 + $0x7b] ss:$5 sm:$0xff] }
 0x154   :  { %1481 = vmatpush.msrb.mxu3 %v1181_v7  ;;  %1447 = vmatpush.msrb.mxu2 %v1164_v1  ;;  %v5163_v59 = vld [vmem:[#allocation6 + $0x4] sm:$0xff]  ;;  %v5169_v63 = vld [vmem:[#allocation6 + $0xc] sm:$0xff] }
 0x155   :  { %v846_v25 = vmax.f32 %v831_v54, %v840_v53  ;;  %1411 = vmatpush.msrb.mxu1 %v1149_v11  ;;  %1377 = vmatpush.msrb.mxu0 %v1132_v43  ;;  %v5165_v24 = vld [vmem:[#allocation6 + $0x6] sm:$0xff]  ;;  %v1162_v42 = vld [vmem:[%s6657_s1 + $0x308] sm:$0xff] }
 0x156   :  { %1482 = vmatpush.msrb.mxu3 %v1180_v57  ;;  %1448 = vmatpush.msrb.mxu2 %v1163_v34  ;;  %v5167_v16 = vld [vmem:[#allocation6 + $0x7] sm:$0xff]  ;;  %v1178_v5 = vld [vmem:[%s6657_s1 + $0x388] sm:$0xff] }
 0x157   :  { %v861_v62 = vmax.f32 %v846_v25, %v855_v27  ;;  %v870_v44 = vld [vmem:[#allocation4 + $0x7c] ss:$5 sm:$0xff]  ;;  %v817_v10 = vld [vmem:[#allocation4 + $0xa0] ss:$5 sm:$0xff]  ;;  %1412 = vmatpush.msrb.mxu1 %v1148_v40  ;;  %1378 = vmatpush.msrb.mxu0 %v1131_v50  ;;  %v872_v20 = vld [vmem:[#allocation4 + $0xa4] ss:$5 sm:$0xff] }
 0x158   :  { %v887_v47 = vld [vmem:[#allocation6 + $0x10] sm:$0xff]  ;;  %1483 = vmatpush.msrb.mxu3 %v1179_v22  ;;  %1449 = vmatpush.msrb.mxu2 %v1162_v42  ;;  %v1161_v23 = vld [vmem:[%s6657_s1 + $0x300] sm:$0xff]  ;;  %v2806_v52 = vld [vmem:[%s6657_s1 + $0x78] sm:$0xff] }
 0x159   :  { %v899_v48 = vld [vmem:[#allocation6 + $0x11] sm:$0xff]  ;;  %1247 = vmatmul.f32.gmra.mxu0 %v887_v47  ;;  %v5171_v51 = vmax.f32 %v861_v62, %v870_v44  ;;  %1413 = vmatpush.msrb.mxu1 %v1147_v38  ;;  %v1129_v2 = vld [vmem:[%s6657_s1 + $0x200] sm:$0xff]  ;;  %v1208_v1 = vld [vmem:[%s6657_s1 + $0x478] sm:$0xff] }
 0x15a   :  { %v911_v46 = vld [vmem:[#allocation6 + $0x12] sm:$0xff]  ;;  %1282 = vmatmul.f32.gmra.mxu1 %v899_v48  ;;  %1379 = vmatpush.msrb.mxu0 %v1130_v18  ;;  %v1145_v14 = vld [vmem:[%s6657_s1 + $0x280] sm:$0xff]  ;;  %v2822_v54 = vld [vmem:[%s6657_s1 + $0xf8] sm:$0xff] }
 0x15b   :  { %v923_v39 = vld [vmem:[#allocation6 + $0x13] sm:$0xff]  ;;  %1317 = vmatmul.f32.gmra.mxu2 %v911_v46  ;;  %883 = vst [vmem:[#allocation6 + $0x1d] sm:$0xff] %v5171_v51  ;;  %1484 = vmatpush.msrb.mxu3 %v1178_v5  ;;  %v1177_v7 = vld [vmem:[%s6657_s1 + $0x380] sm:$0xff]  ;;  %v1224_v34 = vld [vmem:[%s6657_s1 + $0x4f8] sm:$0xff] }
 0x15c   :  { %1352 = vmatmul.f32.gmra.mxu3 %v923_v39  ;;  %v5173_v29 = vld [vmem:[#allocation6 + $0xe] sm:$0xff]  ;;  %1450 = vmatpush.msrb.mxu2 %v1161_v23  ;;  %v2805_v25 = vld [vmem:[%s6657_s1 + $0x70] sm:$0xff]  ;;  %v2802_v23 = vld [vmem:[%s6657_s1 + $0x58] sm:$0xff] }
 0x15d   :  { %v827_v13 = vld [vmem:[#allocation4 + $0xa1] ss:$5 sm:$0xff]  ;;  %v842_v30 = vld [vmem:[#allocation4 + $0xa2] ss:$5 sm:$0xff]  ;;  %1380 = vmatpush.msrb.mxu0 %v1129_v2  ;;  %1485 = vmatpush.msrb.mxu3 %v1177_v7 }
 0x15e   :  { %v5178_v6 = vld [vmem:[#allocation6 + $0xf] sm:$0xff]  ;;  %v832_v15 = vmax.f32 %v817_v10, %v827_v13  ;;  %2951 = vmatpush.msra.mxu2 %v2806_v52  ;;  %v1207_v27 = vld [vmem:[%s6657_s1 + $0x470] sm:$0xff] }
 0x15f   :  { %v5183_v58 = vld [vmem:[#allocation6 + $0x14] sm:$0xff]  ;;  %1505 = vmatpush.msra.mxu0 %v1208_v1  ;;  %2986 = vmatpush.msra.mxu3 %v2822_v54  ;;  %v2803_v38 = vld [vmem:[%s6657_s1 + $0x60] sm:$0xff]  ;;  %v1220_v54 = vld [vmem:[%s6657_s1 + $0x4d8] sm:$0xff] }
 0x160   :  { %v857_v32 = vld [vmem:[#allocation4 + $0xa3] ss:$5 sm:$0xff]  ;;  %v847_v61 = vmax.f32 %v832_v15, %v842_v30  ;;  %2952 = vmatpush.msra.mxu2 %v2805_v25 }
 0x161   :  { %v1146_v41 = vld [vmem:[%s6657_s1 + $0x288] sm:$0xff]  ;;  %v2821_v62 = vld [vmem:[%s6657_s1 + $0xf0] sm:$0xff]  ;;  %1506 = vmatpush.msra.mxu0 %v1207_v27  ;;  %v1205_v5 = vld [vmem:[%s6657_s1 + $0x460] sm:$0xff] }
 0x162   :  { %v862_v55 = vmax.f32 %v847_v61, %v857_v32  ;;  %1414 = vmatpush.msrb.mxu1 %v1146_v41  ;;  %v888_v53 = vld [vmem:[#allocation6 + $0x18] sm:$0xff]  ;;  %v2804_v44 = vld [vmem:[%s6657_s1 + $0x68] sm:$0xff]  ;;  %2987 = vmatpush.msra.mxu3 %v2821_v62  ;;  %v2819_v41 = vld [vmem:[%s6657_s1 + $0xe0] sm:$0xff] }
 0x163   :  { %v900_v11 = vld [vmem:[#allocation6 + $0x19] sm:$0xff]  ;;  %1250 = vmatmul.f32.gmra.mxu0 %v888_v53  ;;  %2953 = vmatpush.msra.mxu2 %v2804_v44  ;;  %v1206_v22 = vld [vmem:[%s6657_s1 + $0x468] sm:$0xff]  ;;  %v1221_v2 = vld [vmem:[%s6657_s1 + $0x4e0] sm:$0xff] }
 0x164   :  { %v5216_v12 = vmax.f32 %v862_v55, %v872_v20  ;;  %1415 = vmatpush.msrb.mxu1 %v1145_v14  ;;  %v912_v43 = vld [vmem:[#allocation6 + $0x1a] sm:$0xff]  ;;  %v2820_v61 = vld [vmem:[%s6657_s1 + $0xe8] sm:$0xff]  ;;  %1507 = vmatpush.msra.mxu0 %v1206_v22  ;;  %v2799_v27 = vld [vmem:[%s6657_s1 + $0x40] sm:$0xff] }
 0x165   :  { %1285 = vmatmul.f32.gmra.mxu1 %v900_v11  ;;  %v924_v57 = vld [vmem:[#allocation6 + $0x1b] sm:$0xff]  ;;  %1320 = vmatmul.f32.gmra.mxu2 %v912_v43  ;;  %v1222_v18 = vld [vmem:[%s6657_s1 + $0x4e8] sm:$0xff]  ;;  %v1201_v44 = vld [vmem:[%s6657_s1 + $0x440] sm:$0xff] }
 0x166   :  { %884 = vst [vmem:[#allocation6 + $0x25] sm:$0xff] %v5216_v12  ;;  %1355 = vmatmul.f32.gmra.mxu3 %v924_v57  ;;  %v1223_v47 = vld [vmem:[%s6657_s1 + $0x4f0] sm:$0xff]  ;;  %1540 = vmatpush.msra.mxu1 %v1224_v34  ;;  %v1204_v55 = vld [vmem:[%s6657_s1 + $0x458] sm:$0xff]  ;;  %v2800_v43 = vld [vmem:[%s6657_s1 + $0x48] sm:$0xff] }
 0x167   :  { %v5246_v48 = vld [vmem:[#allocation6 + $0x16] sm:$0xff]  ;;  %2988 = vmatpush.msra.mxu3 %v2820_v61  ;;  %2954 = vmatpush.msra.mxu2 %v2803_v38  ;;  %v2818_v14 = vld [vmem:[%s6657_s1 + $0xd8] sm:$0xff]  ;;  %v2815_v22 = vld [vmem:[%s6657_s1 + $0xc0] sm:$0xff] }
 0x168   :  { %v5248_v46 = vld [vmem:[#allocation6 + $0x17] sm:$0xff]  ;;  %1541 = vmatpush.msra.mxu1 %v1223_v47  ;;  %1508 = vmatpush.msra.mxu0 %v1205_v5  ;;  %v2798_v5 = vld [vmem:[%s6657_s1 + $0x38] sm:$0xff] }
 0x169   :  { %v5250_v39 = vld [vmem:[#allocation6 + $0x1c] sm:$0xff]  ;;  %2989 = vmatpush.msra.mxu3 %v2819_v41  ;;  %2955 = vmatpush.msra.mxu2 %v2802_v23  ;;  %v1202_v25 = vld [vmem:[%s6657_s1 + $0x448] sm:$0xff]  ;;  %v1217_v41 = vld [vmem:[%s6657_s1 + $0x4c0] sm:$0xff] }
 0x16a   :  { %1542 = vmatpush.msra.mxu1 %v1222_v18  ;;  %v2801_v7 = vld [vmem:[%s6657_s1 + $0x50] sm:$0xff]  ;;  %1509 = vmatpush.msra.mxu0 %v1204_v55  ;;  %v2816_v34 = vld [vmem:[%s6657_s1 + $0xc8] sm:$0xff]  ;;  %v1200_v23 = vld [vmem:[%s6657_s1 + $0x438] sm:$0xff] }
 0x16b   :  { %2990 = vmatpush.msra.mxu3 %v2818_v14  ;;  %v1203_v53 = vld [vmem:[%s6657_s1 + $0x450] sm:$0xff]  ;;  %2956 = vmatpush.msra.mxu2 %v2801_v7  ;;  %v1216_v14 = vld [vmem:[%s6657_s1 + $0x4b8] sm:$0xff] }
 0x16c   :  { %1543 = vmatpush.msra.mxu1 %v1221_v2  ;;  %v2817_v11 = vld [vmem:[%s6657_s1 + $0xd0] sm:$0xff]  ;;  %1510 = vmatpush.msra.mxu0 %v1203_v53  ;;  %v2814_v2 = vld [vmem:[%s6657_s1 + $0xb8] sm:$0xff] }
 0x16d   :  { %v889_v10 = vld [vmem:[#allocation6 + $0x20] sm:$0xff]  ;;  %v890_v30 = vld [vmem:[#allocation6 + $0x28] sm:$0x1]  ;;  %v902_v50 = vld [vmem:[#allocation6 + $0x29] sm:$0x1]  ;;  %2991 = vmatpush.msra.mxu3 %v2817_v11  ;;  %2957 = vmatpush.msra.mxu2 %v2800_v43 }
 0x16e   :  { %v901_v13 = vld [vmem:[#allocation6 + $0x21] sm:$0xff]  ;;  %1253 = vmatmul.f32.gmra.mxu0 %v889_v10  ;;  %v914_v32 = vld [vmem:[#allocation6 + $0x2a] sm:$0x1]  ;;  %v926_v42 = vld [vmem:[#allocation6 + $0x2b] sm:$0x1]  ;;  %1544 = vmatpush.msra.mxu1 %v1220_v54 }
 0x16f   :  { %v913_v40 = vld [vmem:[#allocation6 + $0x22] sm:$0xff]  ;;  %1288 = vmatmul.f32.gmra.mxu1 %v901_v13  ;;  %896 = vst [vmem:[#allocation8 + $0x128] sm:$0x1] %v890_v30  ;;  %v1219_v57 = vld [vmem:[%s6657_s1 + $0x4d0] sm:$0xff]  ;;  %1511 = vmatpush.msra.mxu0 %v1202_v25  ;;  %v1218_v13 = vld [vmem:[%s6657_s1 + $0x4c8] sm:$0xff] }
 0x170   :  { %v925_v15 = vld [vmem:[#allocation6 + $0x23] sm:$0xff]  ;;  %1323 = vmatmul.f32.gmra.mxu2 %v913_v40  ;;  %908 = vst [vmem:[#allocation8 + $0x68] sm:$0x1] %v902_v50  ;;  %1545 = vmatpush.msra.mxu1 %v1219_v57  ;;  %v938_v40 = vld [vmem:[#allocation6 + $0x2c] sm:$0x1]  ;;  %v5334_v38 = vld [vmem:[#allocation6 + $0x11] sm:$0xff] }
 0x171   :  { %1358 = vmatmul.f32.gmra.mxu3 %v925_v15  ;;  %v5285_v20 = vld [vmem:[#allocation6 + $0x1e] sm:$0xff]  ;;  %920 = vst [vmem:[#allocation8 + $0x90] sm:$0x1] %v914_v32  ;;  %v5315_v62 = vld [vmem:[#allocation6 + $0x26] sm:$0xff]  ;;  %2958 = vmatpush.msra.mxu2 %v2799_v27  ;;  %v2796_v11 = vld [vmem:[%s6657_s1 + $0x28] sm:$0xff] }
 0x172   :  { %v5287_v52 = vld [vmem:[#allocation6 + $0x1f] sm:$0xff]  ;;  %932 = vst [vmem:[#allocation8 + $0x190] sm:$0x1] %v926_v42  ;;  %v5320_v47 = vld [vmem:[#allocation6 + $0x27] sm:$0xff]  ;;  %2992 = vmatpush.msra.mxu3 %v2816_v34  ;;  %1512 = vmatpush.msra.mxu0 %v1201_v44  ;;  %v5332_v42 = vld [vmem:[#allocation6 + $0x10] sm:$0xff] }
 0x173   :  { %v5289_v1 = vld [vmem:[#allocation6 + $0x24] sm:$0xff]  ;;  %1546 = vmatpush.msra.mxu1 %v1218_v13  ;;  %944 = vst [vmem:[#allocation8 + $0x178] sm:$0x1] %v938_v40  ;;  %v5336_v18 = vld [vmem:[#allocation6 + $0x18] sm:$0xff]  ;;  %2959 = vmatpush.msra.mxu2 %v2798_v5  ;;  %v6723_v40 = vld [vmem:[#allocation22_spill] sm:$0xff] }
 0x174   :  { %v5325_v30 = vld [vmem:[#allocation6 + $0x8] sm:$0xff]  ;;  %2993 = vmatpush.msra.mxu3 %v2815_v22  ;;  %v2797_v55 = vld [vmem:[%s6657_s1 + $0x30] sm:$0xff]  ;;  %1513 = vmatpush.msra.mxu0 %v1200_v23  ;;  %v5367_v43 = vld [vmem:[#allocation6 + $0x20] sm:$0xff] }
 0x175   :  { %v5327_v50 = vld [vmem:[#allocation6 + $0x9] sm:$0xff]  ;;  %1547 = vmatpush.msra.mxu1 %v1217_v41  ;;  %v1199_v7 = vld [vmem:[%s6657_s1 + $0x430] sm:$0xff]  ;;  %2960 = vmatpush.msra.mxu2 %v2797_v55  ;;  %v5372_v25 = vld [vmem:[#allocation6 + $0x21] sm:$0xff] }
 0x176   :  { %v1055_v10 = vld [vmem:[#allocation8 + $0x128] sm:$0x1]  ;;  %v5362_v53 = vld [vmem:[#allocation6 + $0x19] sm:$0xff]  ;;  %2994 = vmatpush.msra.mxu3 %v2814_v2  ;;  %1514 = vmatpush.msra.mxu0 %v1199_v7  ;;  %v5375_v34 = vld [vmem:[#allocation6 + $0x28] sm:$0xff] }
 0x177   :  { %1256 = vmatmul.f32.gmra.mxu0 %v1055_v10  ;;  %v1056_v15 = vld [vmem:[#allocation8 + $0x68] sm:$0x1]  ;;  %1548 = vmatpush.msra.mxu1 %v1216_v14  ;;  %v6722_v10 = vld [vmem:[#allocation24_spill] sm:$0xff]  ;;  %v1198_v23 = vld [vmem:[%s6657_s1 + $0x428] sm:$0xff] }
 0x178   :  { %1291 = vmatmul.f32.gmra.mxu1 %v1056_v15  ;;  %v1057_v32 = vld [vmem:[#allocation8 + $0x90] sm:$0x1]  ;;  %v2813_v54 = vld [vmem:[%s6657_s1 + $0xb0] sm:$0xff]  ;;  %2961 = vmatpush.msra.mxu2 %v2796_v11  ;;  %v2375_v13 = vsub.f32 %v6722_v10, %v4902_v60  ;;  %v2376_v15 = vsub.f32 %v6723_v40, %v4902_v60  ;;  %v2795_v2 = vld [vmem:[%s6657_s1 + $0x20] sm:$0xff] }
 0x179   :  { %1326 = vmatmul.f32.gmra.mxu2 %v1057_v32  ;;  %v1058_v61 = vld [vmem:[#allocation8 + $0x190] sm:$0x1]  ;;  %v1215_v57 = vld [vmem:[%s6657_s1 + $0x4b0] sm:$0xff]  ;;  %2995 = vmatpush.msra.mxu3 %v2813_v54  ;;  %v5384_v32 = vld [vmem:[#allocation6 + $0x29] sm:$0xff] }
 0x17a   :  { %1361 = vmatmul.f32.gmra.mxu3 %v1058_v61  ;;  %v6721_v27 = vld [vmem:[#allocation23_spill] sm:$0xff]  ;;  %6724 = vst [vmem:[#allocation12_spill] sm:$0xff] %v5384_v32  ;;  %1549 = vmatpush.msra.mxu1 %v1215_v57  ;;  %v6728_v55 = vld [vmem:[#allocation28_spill] sm:$0xff]  ;;  %v6729_v7 = vld [vmem:[#allocation29_spill] sm:$0xff] }
 0x17b   :  { %v2374_v44 = vsub.f32 %v6721_v27, %v4902_v60  ;;  %v6727_v5 = vld [vmem:[#allocation27_spill] sm:$0xff]  ;;  %v2380_v14 = vsub.f32 %v6728_v55, %v4902_v60  ;;  %1515 = vmatpush.msra.mxu0 %v1198_v23  ;;  %v1197_v27 = vld [vmem:[%s6657_s1 + $0x420] sm:$0xff]  ;;  %2962 = vmatpush.msra.mxu2 %v2795_v2  ;;  %v1196_v2 = vld [vmem:[%s6657_s1 + $0x418] sm:$0xff] }
 0x17c   :  { %v2379_v41 = vsub.f32 %v6727_v5, %v4902_v60  ;;  %v1214_v57 = vld [vmem:[%s6657_s1 + $0x4a8] sm:$0xff]  ;;  %v2811_v10 = vld [vmem:[%s6657_s1 + $0xa0] sm:$0xff]  ;;  %v2793_v54 = vld [vmem:[%s6657_s1 + $0x10] sm:$0xff]  ;;  %v2411_v5 = vmul.f32 %v5082_v19, %v2375_v13 }
 0x17d   :  { %v6731_v40 = vld [vmem:[#allocation31_spill] sm:$0xff]  ;;  %1550 = vmatpush.msra.mxu1 %v1214_v57  ;;  %v1213_v11 = vld [vmem:[%s6657_s1 + $0x4a0] sm:$0xff]  ;;  %1516 = vmatpush.msra.mxu0 %v1197_v27  ;;  %v2810_v57 = vld [vmem:[%s6657_s1 + $0x98] sm:$0xff]  ;;  %v2412_v27 = vmul.f32 %v5082_v19, %v2376_v15  ;;  %v2416_v32 = vmul.f32 %v5082_v19, %v2380_v14 }
 0x17e   :  { %v950_v23 = vld [vmem:[#allocation6 + $0x2d] sm:$0x1]  ;;  %v2461_v15 = vmul.f32 %v5034_v49, %v2411_v5  ;;  %vm2436_vm1 = vcmp.gt.f32.partialorder %v2411_v5, 0.0 }
 0x17f   :  { %1381 = vmatmul.f32.vlgmr.msrb.gmra.mxu0 %v5163_v59  ;;  %v6725_v59 = vld [vmem:[#allocation25_spill] sm:$0xff]  ;;  %1551 = vmatpush.msra.mxu1 %v1213_v11  ;;  %956 = vst [vmem:[#allocation8 + $0x78] sm:$0x1] %v950_v23  ;;  %v974_v11 = vld [vmem:[#allocation6 + $0x2f] sm:$0x1]  ;;  %vm2437_vm2 = vcmp.gt.f32.partialorder %v2412_v27, 0.0 }
 0x180   :  { %1416 = vmatmul.f32.vlgmr.msrb.gmra.mxu1 %v4980_v3  ;;  %v2377_v22 = vsub.f32 %v6725_v59, %v4902_v60  ;;  %v6726_v3 = vld [vmem:[#allocation26_spill] sm:$0xff]  ;;  %1517 = vmatpush.msra.mxu0 %v1196_v2  ;;  %980 = vst [vmem:[#allocation8 + $0xc0] sm:$0x1] %v974_v11  ;;  %vm2441_vm6 = vcmp.gt.f32.partialorder %v2416_v32, 0.0 }
 0x181   :  { %1451 = vmatmul.f32.vlgmr.msrb.gmra.mxu2 %v5165_v24  ;;  %v2378_v61 = vsub.f32 %v6726_v3, %v4902_v60  ;;  %v2812_v24 = vld [vmem:[%s6657_s1 + $0xa8] sm:$0xff]  ;;  %v6732_v3 = vld [vmem:[#allocation32_spill] sm:$0xff]  ;;  %v2791_v2 = vld [vmem:[%s6657_s1] sm:$0xff] }
 0x182   :  { %1486 = vmatmul.f32.vlgmr.msrb.gmra.mxu3 %v5167_v16  ;;  %v6730_v16 = vld [vmem:[#allocation30_spill] sm:$0xff] }
 0x183   :  { %2996 = vmatpush.msra.mxu3 %v2812_v24  ;;  %v2794_v24 = vld [vmem:[%s6657_s1 + $0x18] sm:$0xff]  ;;  %v2414_v59 = vmul.f32 %v5082_v19, %v2378_v61  ;;  %v1194_v61 = vld [vmem:[%s6657_s1 + $0x408] sm:$0xff]  ;;  %v6734_v55 = vsub.f32 %v6730_v16, %v4902_v60  ;;  %v2466_v16 = vmul.f32 %v5034_v49, %v2416_v32 }
 0x184   :  { %2963 = vmatpush.msra.mxu2 %v2794_v24  ;;  %v2413_v24 = vmul.f32 %v5082_v19, %v2377_v22  ;;  %v1211_v22 = vld [vmem:[%s6657_s1 + $0x490] sm:$0xff]  ;;  %v1210_v23 = vld [vmem:[%s6657_s1 + $0x488] sm:$0xff] }
 0x185   :  { %2997 = vmatpush.msra.mxu3 %v2811_v10  ;;  %v5472_v10 = vmul.f32 %v5082_v19, %v2379_v41  ;;  %v2462_v41 = vmul.f32 %v5034_v49, %v2412_v27  ;;  %vm2439_vm4 = vcmp.gt.f32.partialorder %v2414_v59, 0.0  ;;  %v2418_v14 = vmul.f32 %v5082_v19, %v6734_v55 }
 0x186   :  { %2964 = vmatpush.msra.mxu2 %v2793_v54  ;;  %vm2438_vm3 = vcmp.gt.f32.partialorder %v2413_v24, 0.0  ;;  %v2808_v54 = vld [vmem:[%s6657_s1 + $0x88] sm:$0xff]  ;;  %v2463_v11 = vmul.f32 %v5034_v49, %v2413_v24 }
 0x187   :  { %1384 = vmatmul.f32.gmra.mxu0 %v5169_v63  ;;  %2998 = vmatpush.msra.mxu3 %v2810_v57  ;;  %v962_v63 = vld [vmem:[#allocation6 + $0x2e] sm:$0x1]  ;;  %v2410_v57 = vmul.f32 %v5082_v19, %v2374_v44  ;;  %v2809_v44 = vld [vmem:[%s6657_s1 + $0x90] sm:$0xff]  ;;  %vm2440_vm5 = vcmp.gt.f32.partialorder %v5472_v10, 0.0  ;;  %vm2443_vm8 = vcmp.gt.f32.partialorder %v2418_v14, 0.0 }
 0x188   :  { %1419 = vmatmul.f32.gmra.mxu1 %v5061_v4  ;;  %968 = vst [vmem:[#allocation8] sm:$0x1] %v962_v63  ;;  %v1212_v4 = vld [vmem:[%s6657_s1 + $0x498] sm:$0xff]  ;;  %v2464_v63 = vmul.f32 %v5034_v49, %v2414_v59 }
 0x189   :  { %1454 = vmatmul.f32.gmra.mxu2 %v5173_v29  ;;  %v1195_v29 = vld [vmem:[%s6657_s1 + $0x410] sm:$0xff]  ;;  %vm2435_vm0 = vcmp.gt.f32.partialorder %v2410_v57, 0.0  ;;  %v2460_v13 = vmul.f32 %v5034_v49, %v2410_v57  ;;  %1552 = vmatpush.msra.mxu1 %v1212_v4 }
 0x18a   :  { %1489 = vmatmul.f32.gmra.mxu3 %v5178_v6  ;;  %1518 = vmatpush.msra.mxu0 %v1195_v29  ;;  %v2792_v6 = vld [vmem:[%s6657_s1 + $0x8] sm:$0xff]  ;;  %v1193_v29 = vld [vmem:[%s6657_s1 + $0x400] sm:$0xff] }
 0x18b   :  { %2999 = vmatpush.msra.mxu3 %v2809_v44  ;;  %2965 = vmatpush.msra.mxu2 %v2792_v6  ;;  %v2485_v4 = vsel %vm2435_vm0, %v2410_v57, %v2460_v13  ;;  %v2486_v44 = vsel %vm2436_vm1, %v2411_v5, %v2461_v15  ;;  %v2487_v6 = vsel %vm2437_vm2, %v2412_v27, %v2462_v41  ;;  %v1209_v57 = vld [vmem:[%s6657_s1 + $0x480] sm:$0xff] }
 0x18c   :  { %1553 = vmatpush.msra.mxu1 %v1211_v22  ;;  %1519 = vmatpush.msra.mxu0 %v1194_v61  ;;  %2510 = vst [vmem:[#allocation5] sm:$0xff] %v2485_v4  ;;  %v2488_v13 = vsel %vm2438_vm3, %v2413_v24, %v2463_v11  ;;  %v2489_v22 = vsel %vm2439_vm4, %v2414_v59, %v2464_v63  ;;  %v2870_v24 = vld [vmem:[%s6657_s1 + $0x278] sm:$0xff]  ;;  %v2869_v11 = vld [vmem:[%s6657_s1 + $0x270] sm:$0xff] }
 0x18d   :  { %3000 = vmatpush.msra.mxu3 %v2808_v54  ;;  %2966 = vmatpush.msra.mxu2 %v2791_v2  ;;  %2511 = vst [vmem:[#allocation5 + $0x8] sm:$0xff] %v2486_v44  ;;  %v6733_v5 = vsub.f32 %v6729_v7, %v4902_v60  ;;  %v6735_v15 = vsub.f32 %v6731_v40, %v4902_v60  ;;  %v2838_v61 = vld [vmem:[%s6657_s1 + $0x178] sm:$0xff]  ;;  %v2868_v44 = vld [vmem:[%s6657_s1 + $0x268] sm:$0xff] }
 0x18e   :  { %1554 = vmatpush.msra.mxu1 %v1210_v23  ;;  %2512 = vst [vmem:[#allocation5 + $0x10] sm:$0xff] %v2487_v6  ;;  %1520 = vmatpush.msra.mxu0 %v1193_v29  ;;  %v2465_v7 = vmul.f32 %v5034_v49, %v5472_v10  ;;  %v2468_v40 = vmul.f32 %v5034_v49, %v2418_v14  ;;  %v2885_v29 = vld [vmem:[%s6657_s1 + $0x2f0] sm:$0xff] }
 0x18f   :  { %v2417_v27 = vmul.f32 %v5082_v19, %v6733_v5  ;;  %1387 = vmatmul.f32.gmra.mxu0 %v5183_v58  ;;  %v2419_v59 = vmul.f32 %v5082_v19, %v6735_v15  ;;  %v2807_v58 = vld [vmem:[%s6657_s1 + $0x80] sm:$0xff]  ;;  %2513 = vst [vmem:[#allocation5 + $0x18] sm:$0xff] %v2488_v13  ;;  %v6736_v23 = vsub.f32 %v6732_v3, %v4902_v60 }
 0x190   :  { %1422 = vmatmul.f32.gmra.mxu1 %v5126_v31  ;;  %2514 = vst [vmem:[#allocation5 + $0x20] sm:$0xff] %v2489_v22  ;;  %v2490_v54 = vsel %vm2440_vm5, %v5472_v10, %v2465_v7  ;;  %3001 = vmatpush.msra.mxu3 %v2807_v58  ;;  %v2837_v10 = vld [vmem:[%s6657_s1 + $0x170] sm:$0xff]  ;;  %v2493_v3 = vsel %vm2443_vm8, %v2418_v14, %v2468_v40  ;;  %vm1575_vm8 = vcmask 523264  }
 0x191   :  { %vm2442_vm7 = vcmp.gt.f32.partialorder %v2417_v27, 0.0  ;;  %1457 = vmatmul.f32.gmra.mxu2 %v5246_v48  ;;  %1555 = vmatpush.msra.mxu1 %v1209_v57  ;;  %vm2444_vm9 = vcmp.gt.f32.partialorder %v2419_v59, 0.0  ;;  %v2467_v31 = vmul.f32 %v5034_v49, %v2417_v27  ;;  %v2886_v48 = vld [vmem:[%s6657_s1 + $0x2f8] sm:$0xff]  ;;  %v2469_v41 = vmul.f32 %v5034_v49, %v2419_v59  ;;  %2515 = vst [vmem:[#allocation5 + $0x28] sm:$0xff] %v2490_v54 }
 0x192   :  { %1492 = vmatmul.f32.gmra.mxu3 %v5248_v46  ;;  %v2491_v46 = vsel %vm2441_vm6, %v2416_v32, %v2466_v16  ;;  %v2420_v2 = vmul.f32 %v5082_v19, %v6736_v23  ;;  %3091 = vmatpush.msrb.mxu2 %v2870_v24  ;;  %v2854_v49 = vld [vmem:[%s6657_s1 + $0x1f8] sm:$0xff]  ;;  %v6737_v63 = vsub.f32 %v4539_v28, %v4902_v60 }
 0x193   :  { %v2492_v32 = vsel %vm2442_vm7, %v2417_v27, %v2467_v31  ;;  %3021 = vmatpush.msrb.mxu0 %v2838_v61  ;;  %3126 = vmatpush.msrb.mxu3 %v2886_v48  ;;  %v2494_v6 = vsel %vm2444_vm9, %v2419_v59, %v2469_v41  ;;  %2516 = vst [vmem:[#allocation5 + $0x30] sm:$0xff] %v2491_v46  ;;  %v2836_v46 = vld [vmem:[%s6657_s1 + $0x168] sm:$0xff]  ;;  %vm1585_vm9 = vcmask 516096  }
 0x194   :  { %v2421_v4 = vmul.f32 %v5082_v19, %v6737_v63  ;;  %v6738_v57 = vsub.f32 %v4561_v33, %v4902_v60  ;;  %v6739_v13 = vsub.f32 %v4563_v36, %v4902_v60  ;;  %3092 = vmatpush.msrb.mxu2 %v2869_v11  ;;  %3056 = vmatpush.msrb.mxu1 %v2854_v49  ;;  %vm2445_vm10 = vcmp.gt.f32.partialorder %v2420_v2, 0.0  ;;  %v5601_v33 = vld [vmem:[%s6656_s2 + $0x1e8] ss:$0 sm:$0xff]  ;;  %v2853_v36 = vld [vmem:[%s6657_s1 + $0x1f0] sm:$0xff] }
 0x195   :  { %2517 = vst [vmem:[#allocation5 + $0x38] sm:$0xff] %v2492_v32  ;;  %v6740_v5 = vsub.f32 %v4609_v26, %v4902_v60  ;;  %v2470_v55 = vmul.f32 %v5601_v33, %v2420_v2  ;;  %3022 = vmatpush.msrb.mxu0 %v2837_v10  ;;  %3127 = vmatpush.msrb.mxu3 %v2885_v29  ;;  %v2866_v29 = vld [vmem:[%s6657_s1 + $0x258] sm:$0xff] }
 0x196   :  { %v2422_v28 = vmul.f32 %v5082_v19, %v6738_v57  ;;  %v2423_v22 = vmul.f32 %v5082_v19, %v6739_v13  ;;  %vm2446_vm11 = vcmp.gt.f32.partialorder %v2421_v4, 0.0  ;;  %2518 = vst [vmem:[#allocation5 + $0x40] sm:$0xff] %v2493_v3  ;;  %v2471_v26 = vmul.f32 %v5601_v33, %v2421_v4  ;;  %3093 = vmatpush.msrb.mxu2 %v2868_v44  ;;  %v2835_v3 = vld [vmem:[%s6657_s1 + $0x160] sm:$0xff]  ;;  %v2882_v13 = vld [vmem:[%s6657_s1 + $0x2d8] sm:$0xff] }
 0x197   :  { %v2424_v27 = vmul.f32 %v5082_v19, %v6740_v5  ;;  %1390 = vmatmul.f32.gmra.mxu0 %v5250_v39  ;;  %2519 = vst [vmem:[#allocation5 + $0x48] sm:$0xff] %v2494_v6  ;;  %v2535_v58 = vld [vmem:[#allocation5] ss:$5 sm:$0xff]  ;;  %v2545_v7 = vld [vmem:[#allocation5 + $0x1] ss:$5 sm:$0xff]  ;;  %v2495_v16 = vsel %vm2445_vm10, %v2420_v2, %v2470_v55  ;;  %v6741_v24 = vsub.f32 %v4626_v0, %v4902_v60 }
 0x198   :  { %vm2447_vm12 = vcmp.gt.f32.partialorder %v2422_v28, 0.0  ;;  %vm2448_vm13 = vcmp.gt.f32.partialorder %v2423_v22, 0.0  ;;  %v2472_v14 = vmul.f32 %v5601_v33, %v2422_v28  ;;  %v2473_v15 = vmul.f32 %v5601_v33, %v2423_v22  ;;  %1425 = vmatmul.f32.gmra.mxu1 %v5171_v51  ;;  %v2560_v48 = vld [vmem:[#allocation5 + $0x2] ss:$5 sm:$0xff]  ;;  %2520 = vst [vmem:[#allocation5 + $0x50] sm:$0xff] %v2495_v16  ;;  %3023 = vmatpush.msrb.mxu0 %v2836_v46 }
 0x199   :  { %vm2449_vm14 = vcmp.gt.f32.partialorder %v2424_v27, 0.0  ;;  %v2474_v59 = vmul.f32 %v5601_v33, %v2424_v27  ;;  %v2496_v31 = vsel %vm2446_vm11, %v2421_v4, %v2471_v26  ;;  %v2425_v39 = vmul.f32 %v5082_v19, %v6741_v24  ;;  %1460 = vmatmul.f32.gmra.mxu2 %v5285_v20  ;;  %3057 = vmatpush.msrb.mxu1 %v2853_v36  ;;  %v2575_v54 = vld [vmem:[#allocation5 + $0x3] ss:$5 sm:$0xff]  ;;  %v2590_v5 = vld [vmem:[#allocation5 + $0x4] ss:$5 sm:$0xff] }
 0x19a   :  { %v2497_v40 = vsel %vm2447_vm12, %v2422_v28, %v2472_v14  ;;  %v2554_v61 = vmax.f32 %v2535_v58, %v2545_v7  ;;  %v2498_v41 = vsel %vm2448_vm13, %v2423_v22, %v2473_v15  ;;  %1495 = vmatmul.f32.gmra.mxu3 %v5287_v52  ;;  %v2884_v0 = vld [vmem:[%s6657_s1 + $0x2e8] sm:$0xff]  ;;  %v2867_v20 = vld [vmem:[%s6657_s1 + $0x260] sm:$0xff]  ;;  %2521 = vst [vmem:[#allocation5 + $0x58] sm:$0xff] %v2496_v31  ;;  %v2834_v28 = vld [vmem:[%s6657_s1 + $0x158] sm:$0xff] }
 0x19b   :  { %v2499_v51 = vsel %vm2449_vm14, %v2424_v27, %v2474_v59  ;;  %v6742_v23 = vsub.f32 %v4628_v21, %v4902_v60  ;;  %v6743_v52 = vsub.f32 %v4656_v56, %v4902_v60  ;;  %v6744_v49 = vsub.f32 %v4676_v9, %v4902_v60  ;;  %3128 = vmatpush.msrb.mxu3 %v2884_v0  ;;  %v2852_v21 = vld [vmem:[%s6657_s1 + $0x1e8] sm:$0xff]  ;;  %v2883_v56 = vld [vmem:[%s6657_s1 + $0x2e0] sm:$0xff]  ;;  %v2865_v58 = vld [vmem:[%s6657_s1 + $0x250] sm:$0xff] }
 0x19c   :  { %vm2450_vm15 = vcmp.gt.f32.partialorder %v2425_v39, 0.0  ;;  %v2569_v32 = vmax.f32 %v2554_v61, %v2560_v48  ;;  %2522 = vst [vmem:[#allocation5 + $0x60] sm:$0xff] %v2497_v40  ;;  %v6745_v9 = vsub.f32 %v4684_v17, %v4902_v60  ;;  %v2475_v4 = vmul.f32 %v5601_v33, %v2425_v39  ;;  %3094 = vmatpush.msrb.mxu2 %v2867_v20  ;;  %v2851_v44 = vld [vmem:[%s6657_s1 + $0x1e0] sm:$0xff] }
 0x19d   :  { %v2426_v2 = vmul.f32 %v5082_v19, %v6742_v23  ;;  %v2427_v11 = vmul.f32 %v5082_v19, %v6743_v52  ;;  %v2428_v10 = vmul.f32 %v5082_v19, %v6744_v49  ;;  %3058 = vmatpush.msrb.mxu1 %v2852_v21  ;;  %2523 = vst [vmem:[#allocation5 + $0x68] sm:$0xff] %v2498_v41  ;;  %v1060_v0 = vld [vmem:[#allocation8 + $0x78] sm:$0x1]  ;;  %v2864_v23 = vld [vmem:[%s6657_s1 + $0x248] sm:$0xff] }
 0x19e   :  { %v2429_v63 = vmul.f32 %v5082_v19, %v6745_v9  ;;  %v2584_v57 = vmax.f32 %v2569_v32, %v2575_v54  ;;  %3024 = vmatpush.msrb.mxu0 %v2835_v3  ;;  %3129 = vmatpush.msrb.mxu3 %v2883_v56  ;;  %2524 = vst [vmem:[#allocation5 + $0x70] sm:$0xff] %v2499_v51  ;;  %v2537_v27 = vld [vmem:[#allocation5 + $0x28] ss:$5 sm:$0xff]  ;;  %v2547_v55 = vld [vmem:[#allocation5 + $0x29] ss:$5 sm:$0xff] }
 0x19f   :  { %vm2451_vm0 = vcmp.gt.f32.partialorder %v2426_v2, 0.0  ;;  %vm2452_vm1 = vcmp.gt.f32.partialorder %v2427_v11, 0.0  ;;  %v2476_v6 = vmul.f32 %v5601_v33, %v2426_v2  ;;  %v2477_v17 = vmul.f32 %v5601_v33, %v2427_v11  ;;  %3095 = vmatpush.msrb.mxu2 %v2866_v29  ;;  %3059 = vmatpush.msrb.mxu1 %v2851_v44  ;;  %v2562_v16 = vld [vmem:[#allocation5 + $0x2a] ss:$5 sm:$0xff]  ;;  %v2577_v61 = vld [vmem:[#allocation5 + $0x2b] ss:$5 sm:$0xff] }
 0x1a0   :  { %vm2453_vm2 = vcmp.gt.f32.partialorder %v2428_v10, 0.0  ;;  %vm2454_vm3 = vcmp.gt.f32.partialorder %v2429_v63, 0.0  ;;  %v2478_v22 = vmul.f32 %v5601_v33, %v2428_v10  ;;  %v2479_v36 = vmul.f32 %v5601_v33, %v2429_v63  ;;  %1393 = vmatmul.f32.gmra.mxu0 %v5289_v1  ;;  %3130 = vmatpush.msrb.mxu3 %v2882_v13  ;;  %v2833_v54 = vld [vmem:[%s6657_s1 + $0x150] sm:$0xff]  ;;  %v1061_v32 = vld [vmem:[#allocation8] sm:$0x1]  ;;  %v2831_v44 = vld [vmem:[%s6657_s1 + $0x140] sm:$0xff] }
 0x1a1   :  { %v2500_v26 = vsel %vm2450_vm15, %v2425_v39, %v2475_v4  ;;  %v2501_v14 = vsel %vm2451_vm0, %v2426_v2, %v2476_v6  ;;  %v5676_v15 = vmax.f32 %v2584_v57, %v2590_v5  ;;  %v2555_v59 = vmax.f32 %v2537_v27, %v2547_v55  ;;  %1428 = vmatmul.f32.gmra.mxu1 %v5216_v12  ;;  %v2849_v2 = vld [vmem:[%s6657_s1 + $0x1d0] sm:$0xff]  ;;  %v2880_v9 = vld [vmem:[%s6657_s1 + $0x2c8] sm:$0xff]  ;;  %v2863_v4 = vld [vmem:[%s6657_s1 + $0x240] sm:$0xff] }
 0x1a2   :  { %v2502_v7 = vsel %vm2452_vm1, %v2427_v11, %v2477_v17  ;;  %2525 = vst [vmem:[#allocation5 + $0x78] sm:$0xff] %v2500_v26  ;;  %3025 = vmatpush.msrb.mxu0 %v2834_v28  ;;  %v2503_v31 = vsel %vm2453_vm2, %v2428_v10, %v2478_v22  ;;  %v2504_v40 = vsel %vm2454_vm3, %v2429_v63, %v2479_v36  ;;  %v2848_v29 = vld [vmem:[%s6657_s1 + $0x1c8] sm:$0xff]  ;;  %v2879_v5 = vld [vmem:[%s6657_s1 + $0x2c0] sm:$0xff]  ;;  %vm1687_vm2 = vcmask 519168  }
 0x1a3   :  { %2526 = vst [vmem:[#allocation5 + $0x80] sm:$0xff] %v2501_v14  ;;  %v6746_v1 = vsub.f32 %v4716_v35, %v4902_v60  ;;  %1463 = vmatmul.f32.gmra.mxu2 %v5315_v62  ;;  %v2570_v39 = vmax.f32 %v2555_v59, %v2562_v16  ;;  %v6747_v12 = vsub.f32 %v4742_v37, %v4902_v60  ;;  %v2592_v35 = vld [vmem:[#allocation5 + $0x2c] ss:$5 sm:$0xff]  ;;  %v1062_v6 = vld [vmem:[#allocation8 + $0xc0] sm:$0x1] }
 0x1a4   :  { %2606 = vst [vmem:[#allocation7 + $0x5] sm:$0xff] %v5676_v15  ;;  %v6748_v41 = vsub.f32 %v4754_v8, %v4902_v60  ;;  %1498 = vmatmul.f32.gmra.mxu3 %v5320_v47  ;;  %3096 = vmatpush.msrb.mxu2 %v2865_v58  ;;  %v2850_v62 = vld [vmem:[%s6657_s1 + $0x1d8] sm:$0xff]  ;;  %v2881_v37 = vld [vmem:[%s6657_s1 + $0x2d0] sm:$0xff]  ;;  %v6749_v8 = vsub.f32 %v4797_v45, %v4902_v60  ;;  %v2832_v45 = vld [vmem:[%s6657_s1 + $0x148] sm:$0xff] }
 0x1a5   :  { %v2430_v24 = vmul.f32 %v5082_v19, %v6746_v1  ;;  %v2431_v48 = vmul.f32 %v5082_v19, %v6747_v12  ;;  %2527 = vst [vmem:[#allocation5 + $0x88] sm:$0xff] %v2502_v7  ;;  %v2585_v20 = vmax.f32 %v2570_v39, %v2577_v61  ;;  %3060 = vmatpush.msrb.mxu1 %v2850_v62  ;;  %v2539_v52 = vld [vmem:[#allocation5 + $0x50] ss:$5 sm:$0xff]  ;;  %v2549_v11 = vld [vmem:[#allocation5 + $0x51] ss:$5 sm:$0xff] }
 0x1a6   :  { %v2432_v51 = vmul.f32 %v5082_v19, %v6748_v41  ;;  %v5713_v47 = vmul.f32 %v5082_v19, %v6749_v8  ;;  %3026 = vmatpush.msrb.mxu0 %v2833_v54  ;;  %2528 = vst [vmem:[#allocation5 + $0x90] sm:$0xff] %v2503_v31  ;;  %v1059_v19 = vld [vmem:[#allocation8 + $0x178] sm:$0x1]  ;;  %3131 = vmatpush.msrb.mxu3 %v2881_v37  ;;  %v2579_v57 = vld [vmem:[#allocation5 + $0x53] ss:$5 sm:$0xff] }
 0x1a7   :  { %vm2455_vm4 = vcmp.gt.f32.partialorder %v2430_v24, 0.0  ;;  %v2480_v46 = vmul.f32 %v5601_v33, %v2430_v24  ;;  %vm2456_vm5 = vcmp.gt.f32.partialorder %v2431_v48, 0.0  ;;  %v2481_v60 = vmul.f32 %v5601_v33, %v2431_v48  ;;  %3097 = vmatpush.msrb.mxu2 %v2864_v23  ;;  %v2564_v56 = vld [vmem:[#allocation5 + $0x52] ss:$5 sm:$0xff]  ;;  %3061 = vmatpush.msrb.mxu1 %v2849_v2  ;;  %2529 = vst [vmem:[#allocation5 + $0x98] sm:$0xff] %v2504_v40 }
 0x1a8   :  { %vm2457_vm6 = vcmp.gt.f32.partialorder %v2432_v51, 0.0  ;;  %v2482_v49 = vmul.f32 %v5601_v33, %v2432_v51  ;;  %v5728_v21 = vmax.f32 %v2585_v20, %v2592_v35  ;;  %v2556_v3 = vmax.f32 %v2539_v52, %v2549_v11  ;;  %3027 = vmatpush.msrb.mxu0 %v2832_v45  ;;  %3132 = vmatpush.msrb.mxu3 %v2880_v9  ;;  %v2594_v36 = vld [vmem:[#allocation5 + $0x54] ss:$5 sm:$0xff] }
 0x1a9   :  { %v2505_v10 = vsel %vm2455_vm4, %v2430_v24, %v2480_v46  ;;  %v2506_v63 = vsel %vm2456_vm5, %v2431_v48, %v2481_v60  ;;  %1396 = vmatmul.f32.gmra.mxu0 %v1059_v19  ;;  %3098 = vmatpush.msrb.mxu2 %v2863_v4  ;;  %v2483_v28 = vmul.f32 %v5601_v33, %v5713_v47  ;;  %vm2458_vm7 = vcmp.gt.f32.partialorder %v5713_v47, 0.0  ;;  %v2862_v33 = vld [vmem:[%s6657_s1 + $0x238] sm:$0xff]  ;;  %v2847_v26 = vld [vmem:[%s6657_s1 + $0x1c0] sm:$0xff]  ;;  %v2861_v7 = vld [vmem:[%s6657_s1 + $0x230] sm:$0xff] }
 0x1aa   :  { %2530 = vst [vmem:[#allocation5 + $0xa0] sm:$0xff] %v2505_v10  ;;  %v2571_v17 = vmax.f32 %v2556_v3, %v2564_v56  ;;  %1431 = vmatmul.f32.gmra.mxu1 %v1060_v0  ;;  %3028 = vmatpush.msrb.mxu0 %v2831_v44  ;;  %v2507_v27 = vsel %vm2457_vm6, %v2432_v51, %v2482_v49  ;;  %v2830_v14 = vld [vmem:[%s6657_s1 + $0x138] sm:$0xff]  ;;  %v2829_v61 = vld [vmem:[%s6657_s1 + $0x130] sm:$0xff]  ;;  %v2860_v62 = vld [vmem:[%s6657_s1 + $0x228] sm:$0xff] }
 0x1ab   :  { %2607 = vst [vmem:[#allocation7 + $0xd] sm:$0xff] %v5728_v21  ;;  %v2611_v13 = vld [vmem:[#allocation7] sm:$0xff]  ;;  %1466 = vmatmul.f32.gmra.mxu2 %v1061_v32  ;;  %3062 = vmatpush.msrb.mxu1 %v2848_v29  ;;  %v2878_v58 = vld [vmem:[%s6657_s1 + $0x2b8] sm:$0xff]  ;;  %v2508_v31 = vsel %vm2458_vm7, %v5713_v47, %v2483_v28  ;;  %v2828_v0 = vld [vmem:[%s6657_s1 + $0x128] sm:$0xff] }
 0x1ac   :  { %v2623_v22 = vld [vmem:[#allocation7 + $0x1] sm:$0xff]  ;;  %2531 = vst [vmem:[#allocation5 + $0xa8] sm:$0xff] %v2506_v63  ;;  %v2586_v55 = vmax.f32 %v2571_v17, %v2579_v57  ;;  %1501 = vmatmul.f32.gmra.mxu3 %v1062_v6  ;;  %3099 = vmatpush.msrb.mxu2 %v2862_v33  ;;  %v2876_v20 = vld [vmem:[%s6657_s1 + $0x2a8] sm:$0xff]  ;;  %v2827_v45 = vld [vmem:[%s6657_s1 + $0x120] sm:$0xff] }
 0x1ad   :  { %3133 = vmatpush.msrb.mxu3 %v2879_v5  ;;  %v2846_v16 = vld [vmem:[%s6657_s1 + $0x1b8] sm:$0xff]  ;;  %2532 = vst [vmem:[#allocation5 + $0xb0] sm:$0xff] %v2507_v27  ;;  %3063 = vmatpush.msrb.mxu1 %v2847_v26  ;;  %v2877_v51 = vld [vmem:[%s6657_s1 + $0x2b0] sm:$0xff]  ;;  %v2844_v2 = vld [vmem:[%s6657_s1 + $0x1a8] sm:$0xff] }
 0x1ae   :  { %v5760_v59 = vmax.f32 %v2586_v55, %v2594_v36  ;;  %v2541_v40 = vld [vmem:[#allocation5 + $0x78] ss:$5 sm:$0xff]  ;;  %v2551_v1 = vld [vmem:[#allocation5 + $0x79] ss:$5 sm:$0xff]  ;;  %3029 = vmatpush.msrb.mxu0 %v2830_v14  ;;  %3100 = vmatpush.msrb.mxu2 %v2861_v7  ;;  %2533 = vst [vmem:[#allocation5 + $0xb8] sm:$0xff] %v2508_v31 }
 0x1af   :  { %v2557_v24 = vmax.f32 %v2541_v40, %v2551_v1  ;;  %v2566_v39 = vld [vmem:[#allocation5 + $0x7a] ss:$5 sm:$0xff]  ;;  %3134 = vmatpush.msrb.mxu3 %v2878_v58  ;;  %3064 = vmatpush.msrb.mxu1 %v2846_v16  ;;  %v2581_v8 = vld [vmem:[#allocation5 + $0x7b] ss:$5 sm:$0xff] }
 0x1b0   :  { %2608 = vst [vmem:[#allocation7 + $0x15] sm:$0xff] %v5760_v59  ;;  %v5778_v12 = vld [vmem:[#allocation7 + $0x2] sm:$0xff]  ;;  %3030 = vmatpush.msrb.mxu0 %v2829_v61  ;;  %3101 = vmatpush.msrb.mxu2 %v2860_v62  ;;  %v2875_v60 = vld [vmem:[%s6657_s1 + $0x2a0] sm:$0xff]  ;;  %v986_v17 = vld [vmem:[#allocation6 + $0x30] sm:$0x1] }
 0x1b1   :  { %1521 = vmatmul.f32.vlgmr.msra.gmra.mxu0 %v5325_v30  ;;  %v2572_v35 = vmax.f32 %v2557_v24, %v2566_v39  ;;  %3135 = vmatpush.msrb.mxu3 %v2877_v51  ;;  %v2845_v54 = vld [vmem:[%s6657_s1 + $0x1b0] sm:$0xff]  ;;  %v2858_v49 = vld [vmem:[%s6657_s1 + $0x218] sm:$0xff]  ;;  %v2843_v3 = vld [vmem:[%s6657_s1 + $0x1a0] sm:$0xff]  ;;  %992 = vst [vmem:[#allocation8 + $0xb0] sm:$0x1] %v986_v17 }
 0x1b2   :  { %v2612_v48 = vld [vmem:[#allocation7 + $0x8] sm:$0xff]  ;;  %1556 = vmatmul.f32.vlgmr.msra.gmra.mxu1 %v5327_v50  ;;  %v2859_v50 = vld [vmem:[%s6657_s1 + $0x220] sm:$0xff]  ;;  %3031 = vmatpush.msrb.mxu0 %v2828_v0  ;;  %v2857_v44 = vld [vmem:[%s6657_s1 + $0x210] sm:$0xff] }
 0x1b3   :  { %v2624_v41 = vld [vmem:[#allocation7 + $0x9] sm:$0xff]  ;;  %2967 = vmatmul.f32.vlgmr.msra.gmra.mxu2 %v2611_v13  ;;  %v2587_v30 = vmax.f32 %v2572_v35, %v2581_v8  ;;  %3065 = vmatpush.msrb.mxu1 %v2845_v54  ;;  %v998_v57 = vld [vmem:[#allocation6 + $0x31] sm:$0x1]  ;;  %v2873_v27 = vld [vmem:[%s6657_s1 + $0x290] sm:$0xff] }
 0x1b4   :  { %v5790_v37 = vld [vmem:[#allocation7 + $0x3] sm:$0xff]  ;;  %3002 = vmatmul.f32.vlgmr.msra.gmra.mxu3 %v2623_v22  ;;  %3102 = vmatpush.msrb.mxu2 %v2859_v50  ;;  %v5830_v63 = vld [vmem:[#allocation7 + $0xb] sm:$0xff]  ;;  %1004 = vst [vmem:[#allocation8 + $0xe8] sm:$0x1] %v998_v57  ;;  %v2856_v55 = vld [vmem:[%s6657_s1 + $0x208] sm:$0xff] }
 0x1b5   :  { %v5793_v47 = vld [vmem:[#allocation7 + $0x4] sm:$0xff]  ;;  %3136 = vmatpush.msrb.mxu3 %v2876_v20  ;;  %3066 = vmatpush.msrb.mxu1 %v2844_v2  ;;  %v5841_v28 = vld [vmem:[#allocation7 + $0xc] sm:$0xff]  ;;  %v2824_v33 = vld [vmem:[%s6657_s1 + $0x108] sm:$0xff] }
 0x1b6   :  { %v2596_v46 = vld [vmem:[#allocation5 + $0x7c] ss:$5 sm:$0xff]  ;;  %v2543_v10 = vld [vmem:[#allocation5 + $0xa0] ss:$5 sm:$0xff]  ;;  %3032 = vmatpush.msrb.mxu0 %v2827_v45  ;;  %3103 = vmatpush.msrb.mxu2 %v2858_v49  ;;  %v2598_v13 = vld [vmem:[#allocation5 + $0xa4] ss:$5 sm:$0xff] }
 0x1b7   :  { %v5804_v23 = vmax.f32 %v2587_v30, %v2596_v46  ;;  %v5815_v19 = vld [vmem:[#allocation7 + $0xa] sm:$0xff]  ;;  %3137 = vmatpush.msrb.mxu3 %v2875_v60  ;;  %3067 = vmatpush.msrb.mxu1 %v2843_v3  ;;  %v2841_v36 = vld [vmem:[%s6657_s1 + $0x190] sm:$0xff]  ;;  %v2872_v14 = vld [vmem:[%s6657_s1 + $0x288] sm:$0xff] }
 0x1b8   :  { %v5817_v52 = vld [vmem:[#allocation7 + $0x10] sm:$0xff]  ;;  %v2826_v9 = vld [vmem:[%s6657_s1 + $0x118] sm:$0xff]  ;;  %3104 = vmatpush.msrb.mxu2 %v2857_v44  ;;  %v2840_v58 = vld [vmem:[%s6657_s1 + $0x188] sm:$0xff] }
 0x1b9   :  { %v5819_v11 = vld [vmem:[#allocation7 + $0x11] sm:$0xff]  ;;  %1524 = vmatmul.f32.gmra.mxu0 %v5332_v42  ;;  %2609 = vst [vmem:[#allocation7 + $0x1d] sm:$0xff] %v5804_v23  ;;  %v2874_v29 = vld [vmem:[%s6657_s1 + $0x298] sm:$0xff]  ;;  %v2933_v54 = vld [vmem:[%s6657_s1 + $0x470] sm:$0xff] }
 0x1ba   :  { %v2553_v32 = vld [vmem:[#allocation5 + $0xa1] ss:$5 sm:$0xff]  ;;  %v2568_v4 = vld [vmem:[#allocation5 + $0xa2] ss:$5 sm:$0xff]  ;;  %1559 = vmatmul.f32.gmra.mxu1 %v5334_v38  ;;  %3033 = vmatpush.msrb.mxu0 %v2826_v9 }
 0x1bb   :  { %v2558_v56 = vmax.f32 %v2543_v10, %v2553_v32  ;;  %2970 = vmatmul.f32.gmra.mxu2 %v2612_v48  ;;  %v2583_v42 = vld [vmem:[#allocation5 + $0xa3] ss:$5 sm:$0xff]  ;;  %3138 = vmatpush.msrb.mxu3 %v2874_v29 }
 0x1bc   :  { %3005 = vmatmul.f32.gmra.mxu3 %v2624_v41  ;;  %v2842_v5 = vld [vmem:[%s6657_s1 + $0x198] sm:$0xff]  ;;  %v2825_v38 = vld [vmem:[%s6657_s1 + $0x110] sm:$0xff]  ;;  %3105 = vmatpush.msrb.mxu2 %v2856_v55  ;;  %v2855_v7 = vld [vmem:[%s6657_s1 + $0x200] sm:$0xff] }
 0x1bd   :  { %v2573_v6 = vmax.f32 %v2558_v56, %v2568_v4  ;;  %3068 = vmatpush.msrb.mxu1 %v2842_v5  ;;  %3034 = vmatpush.msrb.mxu0 %v2825_v38  ;;  %v2823_v16 = vld [vmem:[%s6657_s1 + $0x100] sm:$0xff]  ;;  %v2950_v51 = vld [vmem:[%s6657_s1 + $0x4f8] sm:$0xff]  ;;  %v2901_v30 = vld [vmem:[%s6657_s1 + $0x370] sm:$0xff] }
 0x1be   :  { %3139 = vmatpush.msrb.mxu3 %v2873_v27  ;;  %v5875_v31 = vld [vmem:[#allocation7 + $0x12] sm:$0xff]  ;;  %3106 = vmatpush.msrb.mxu2 %v2855_v7  ;;  %v2918_v8 = vld [vmem:[%s6657_s1 + $0x3f8] sm:$0xff]  ;;  %v2949_v46 = vld [vmem:[%s6657_s1 + $0x4f0] sm:$0xff] }
 0x1bf   :  { %v2588_v22 = vmax.f32 %v2573_v6, %v2583_v42  ;;  %3069 = vmatpush.msrb.mxu1 %v2841_v36  ;;  %3035 = vmatpush.msrb.mxu0 %v2824_v33  ;;  %v2839_v24 = vld [vmem:[%s6657_s1 + $0x180] sm:$0xff]  ;;  %v2932_v0 = vld [vmem:[%s6657_s1 + $0x468] sm:$0xff]  ;;  %v2917_v60 = vld [vmem:[%s6657_s1 + $0x3f0] sm:$0xff] }
 0x1c0   :  { %v5877_v40 = vld [vmem:[#allocation7 + $0x18] sm:$0xff]  ;;  %3140 = vmatpush.msrb.mxu3 %v2872_v14  ;;  %v2871_v61 = vld [vmem:[%s6657_s1 + $0x280] sm:$0xff]  ;;  %v2930_v44 = vld [vmem:[%s6657_s1 + $0x458] sm:$0xff] }
 0x1c1   :  { %v5861_v26 = vmax.f32 %v2588_v22, %v2598_v13  ;;  %v5879_v1 = vld [vmem:[#allocation7 + $0x19] sm:$0xff]  ;;  %1527 = vmatmul.f32.gmra.mxu0 %v5336_v18  ;;  %3070 = vmatpush.msrb.mxu1 %v2840_v58  ;;  %v2934_v18 = vld [vmem:[%s6657_s1 + $0x478] sm:$0xff]  ;;  %v5907_v35 = vpop.f32.mrf.mxu0  ;;  %v2931_v56 = vld [vmem:[%s6657_s1 + $0x460] sm:$0xff] }
 0x1c2   :  { %v5886_v39 = vld [vmem:[#allocation7 + $0x13] sm:$0xff]  ;;  %1562 = vmatmul.f32.gmra.mxu1 %v5362_v53  ;;  %3036 = vmatpush.msrb.mxu0 %v2823_v16  ;;  %v2902_v53 = vld [vmem:[%s6657_s1 + $0x378] sm:$0xff]  ;;  %v5909_v62 = vpop.f32.mrf.mxu1  ;;  %v2929_v38 = vld [vmem:[%s6657_s1 + $0x450] sm:$0xff] }
 0x1c3   :  { %2610 = vst [vmem:[#allocation7 + $0x25] sm:$0xff] %v5861_v26  ;;  %v5892_v48 = vld [vmem:[#allocation7 + $0x14] sm:$0xff]  ;;  %2973 = vmatmul.f32.gmra.mxu2 %v5817_v52  ;;  %3071 = vmatpush.msrb.mxu1 %v2839_v24  ;;  %v2898_v13 = vld [vmem:[%s6657_s1 + $0x358] sm:$0xff]  ;;  %v2897_v7 = vld [vmem:[%s6657_s1 + $0x350] sm:$0xff] }
 0x1c4   :  { %v5895_v41 = vld [vmem:[#allocation7 + $0x1a] sm:$0xff]  ;;  %3008 = vmatmul.f32.gmra.mxu3 %v5819_v11  ;;  %3231 = vmatpush.msra.mxu2 %v2934_v18  ;;  %v2899_v4 = vld [vmem:[%s6657_s1 + $0x360] sm:$0xff]  ;;  %v2946_v22 = vld [vmem:[%s6657_s1 + $0x4d8] sm:$0xff] }
 0x1c5   :  { %3141 = vmatpush.msrb.mxu3 %v2871_v61  ;;  %3161 = vmatpush.msra.mxu0 %v2902_v53  ;;  %v5934_v52 = vld [vmem:[#allocation7 + $0x1b] sm:$0xff]  ;;  %v2947_v29 = vld [vmem:[%s6657_s1 + $0x4e0] sm:$0xff]  ;;  %v6750_v55 = vld [vmem:[#allocation12_spill] sm:$0xff] }
 0x1c6   :  { %3232 = vmatpush.msra.mxu2 %v2933_v54  ;;  %3196 = vmatpush.msra.mxu1 %v2918_v8  ;;  %v5937_v11 = vld [vmem:[#allocation7 + $0x1c] sm:$0xff]  ;;  %v2915_v6 = vld [vmem:[%s6657_s1 + $0x3e0] sm:$0xff]  ;;  %v5991_v33 = vld [vmem:[#allocation7 + $0x6] sm:$0xff] }
 0x1c7   :  { %3266 = vmatpush.msra.mxu3 %v2950_v51  ;;  %3162 = vmatpush.msra.mxu0 %v2901_v30  ;;  %v2948_v3 = vld [vmem:[%s6657_s1 + $0x4e8] sm:$0xff]  ;;  %v5993_v14 = vld [vmem:[#allocation7 + $0x7] sm:$0xff] }
 0x1c8   :  { %3233 = vmatpush.msra.mxu2 %v2932_v0  ;;  %3197 = vmatpush.msra.mxu1 %v2917_v60  ;;  %v2916_v9 = vld [vmem:[%s6657_s1 + $0x3e8] sm:$0xff]  ;;  %v5995_v58 = vld [vmem:[#allocation7 + $0x8] sm:$0xff]  ;;  %v2945_v16 = vld [vmem:[%s6657_s1 + $0x4d0] sm:$0xff] }
 0x1c9   :  { %3267 = vmatpush.msra.mxu3 %v2949_v46  ;;  %1530 = vmatmul.f32.gmra.mxu0 %v5367_v43  ;;  %v5945_v32 = vpop.f32.mrf.mxu2  ;;  %v2928_v24 = vld [vmem:[%s6657_s1 + $0x448] sm:$0xff]  ;;  %v2913_v61 = vld [vmem:[%s6657_s1 + $0x3d0] sm:$0xff]  ;;  %v1063_v53 = vld [vmem:[#allocation8 + $0xb0] sm:$0x1] }
 0x1ca   :  { %v5926_v20 = vld [vmem:[#allocation7 + $0x20] sm:$0xff]  ;;  %v2616_v2 = vld [vmem:[#allocation7 + $0x28] sm:$0x1]  ;;  %v2628_v45 = vld [vmem:[#allocation7 + $0x29] sm:$0x1]  ;;  %1565 = vmatmul.f32.gmra.mxu1 %v5372_v25  ;;  %v5947_v43 = vpop.f32.mrf.mxu3  ;;  %3234 = vmatpush.msra.mxu2 %v2931_v56 }
 0x1cb   :  { %v5928_v50 = vld [vmem:[#allocation7 + $0x21] sm:$0xff]  ;;  %2622 = vst [vmem:[#allocation9 + $0x110] sm:$0x1] %v2616_v2  ;;  %2976 = vmatmul.f32.gmra.mxu2 %v5877_v40  ;;  %v2900_v25 = vld [vmem:[%s6657_s1 + $0x368] sm:$0xff]  ;;  %3268 = vmatpush.msra.mxu3 %v2948_v3  ;;  %v2640_v5 = vld [vmem:[#allocation7 + $0x2a] sm:$0x1] }
 0x1cc   :  { %2634 = vst [vmem:[#allocation9 + $0x58] sm:$0x1] %v2628_v45  ;;  %v5940_v49 = vld [vmem:[#allocation7 + $0x22] sm:$0xff]  ;;  %3011 = vmatmul.f32.gmra.mxu3 %v5879_v1  ;;  %3163 = vmatpush.msra.mxu0 %v2900_v25  ;;  %v5975_v57 = vpop.f32.mrf.mxu0  ;;  %v2652_v27 = vld [vmem:[#allocation7 + $0x2b] sm:$0x1]  ;;  %v2896_v18 = vld [vmem:[%s6657_s1 + $0x348] sm:$0xff] }
 0x1cd   :  { %v5942_v10 = vld [vmem:[#allocation7 + $0x23] sm:$0xff]  ;;  %3198 = vmatpush.msra.mxu1 %v2916_v9  ;;  %v5977_v42 = vpop.f32.mrf.mxu1  ;;  %3269 = vmatpush.msra.mxu3 %v2947_v29  ;;  %v2664_v36 = vld [vmem:[#allocation7 + $0x2c] sm:$0x1]  ;;  %2646 = vst [vmem:[#allocation9 + $0x18] sm:$0x1] %v2640_v5  ;;  %v2944_v8 = vld [vmem:[%s6657_s1 + $0x4c8] sm:$0xff] }
 0x1ce   :  { %v5973_v17 = vld [vmem:[#allocation7 + $0x24] sm:$0xff]  ;;  %3164 = vmatpush.msra.mxu0 %v2899_v4  ;;  %3235 = vmatpush.msra.mxu2 %v2930_v44  ;;  %2658 = vst [vmem:[#allocation9 + $0xd0] sm:$0x1] %v2652_v27  ;;  %v1064_v46 = vld [vmem:[#allocation8 + $0xe8] sm:$0x1]  ;;  %v6025_v0 = vld [vmem:[#allocation7 + $0xe] sm:$0xff] }
 0x1cf   :  { %3199 = vmatpush.msra.mxu1 %v2915_v6  ;;  %3270 = vmatpush.msra.mxu3 %v2946_v22  ;;  %2670 = vst [vmem:[#allocation9 + $0xe8] sm:$0x1] %v2664_v36  ;;  %v6023_v30 = vld [vmem:[#allocation7 + $0x9] sm:$0xff]  ;;  %v2912_v60 = vld [vmem:[%s6657_s1 + $0x3c8] sm:$0xff] }
 0x1d0   :  { %3165 = vmatpush.msra.mxu0 %v2898_v13  ;;  %3236 = vmatpush.msra.mxu2 %v2929_v38  ;;  %v6027_v2 = vld [vmem:[#allocation7 + $0xf] sm:$0xff]  ;;  %v6051_v22 = vld [vmem:[#allocation7 + $0x17] sm:$0xff] }
 0x1d1   :  { %1533 = vmatmul.f32.gmra.mxu0 %v5375_v34  ;;  %v2914_v34 = vld [vmem:[%s6657_s1 + $0x3d8] sm:$0xff]  ;;  %3271 = vmatpush.msra.mxu3 %v2945_v16  ;;  %v2927_v45 = vld [vmem:[%s6657_s1 + $0x440] sm:$0xff]  ;;  %v6065_v36 = vld [vmem:[#allocation7 + $0x1e] sm:$0xff] }
 0x1d2   :  { %1568 = vmatmul.f32.gmra.mxu1 %v6750_v55  ;;  %3166 = vmatpush.msra.mxu0 %v2897_v7  ;;  %v2895_v25 = vld [vmem:[%s6657_s1 + $0x340] sm:$0xff]  ;;  %v2781_v4 = vld [vmem:[#allocation9 + $0x110] sm:$0x1]  ;;  %v6071_v16 = vld [vmem:[#allocation7 + $0x1f] sm:$0xff] }
 0x1d3   :  { %2979 = vmatmul.f32.gmra.mxu2 %v5926_v20  ;;  %3200 = vmatpush.msra.mxu1 %v2914_v34  ;;  %v6042_v9 = vld [vmem:[#allocation7 + $0x10] sm:$0xff]  ;;  %v2926_v5 = vld [vmem:[%s6657_s1 + $0x438] sm:$0xff] }
 0x1d4   :  { %3014 = vmatmul.f32.gmra.mxu3 %v5928_v50  ;;  %v6016_v51 = vpop.f32.mrf.mxu2  ;;  %3237 = vmatpush.msra.mxu2 %v2928_v24  ;;  %v2943_v29 = vld [vmem:[%s6657_s1 + $0x4c0] sm:$0xff]  ;;  %v2894_v27 = vld [vmem:[%s6657_s1 + $0x338] sm:$0xff]  ;;  %v2925_v24 = vld [vmem:[%s6657_s1 + $0x430] sm:$0xff] }
 0x1d5   :  { %v6018_v54 = vpop.f32.mrf.mxu3  ;;  %3201 = vmatpush.msra.mxu1 %v2913_v61  ;;  %3167 = vmatpush.msra.mxu0 %v2896_v18  ;;  %v6047_v44 = vld [vmem:[#allocation7 + $0x11] sm:$0xff]  ;;  %v2782_v6 = vld [vmem:[#allocation9 + $0x58] sm:$0x1]  ;;  %v2942_v55 = vld [vmem:[%s6657_s1 + $0x4b8] sm:$0xff] }
 0x1d6   :  { %3272 = vmatpush.msra.mxu3 %v2944_v8  ;;  %v6038_v3 = vpop.f32.mrf.mxu0  ;;  %3238 = vmatpush.msra.mxu2 %v2927_v45  ;;  %v6049_v13 = vld [vmem:[#allocation7 + $0x16] sm:$0xff]  ;;  %v2910_v61 = vld [vmem:[%s6657_s1 + $0x3b8] sm:$0xff]  ;;  %v2893_v18 = vld [vmem:[%s6657_s1 + $0x330] sm:$0xff] }
 0x1d7   :  { %v6040_v56 = vpop.f32.mrf.mxu1  ;;  %3168 = vmatpush.msra.mxu0 %v2895_v25  ;;  %3202 = vmatpush.msra.mxu1 %v2912_v60  ;;  %v2911_v38 = vld [vmem:[%s6657_s1 + $0x3c0] sm:$0xff]  ;;  %v2909_v45 = vld [vmem:[%s6657_s1 + $0x3b0] sm:$0xff]  ;;  %v2892_v25 = vld [vmem:[%s6657_s1 + $0x328] sm:$0xff] }
 0x1d8   :  { %3273 = vmatpush.msra.mxu3 %v2943_v29  ;;  %3239 = vmatpush.msra.mxu2 %v2926_v5  ;;  %v6094_v60 = vld [vmem:[#allocation7 + $0x26] sm:$0xff]  ;;  %v2908_v29 = vld [vmem:[%s6657_s1 + $0x3a8] sm:$0xff] }
 0x1d9   :  { %1536 = vmatmul.f32.gmra.mxu0 %v1063_v53  ;;  %3203 = vmatpush.msra.mxu1 %v2911_v38  ;;  %v2941_v53 = vld [vmem:[%s6657_s1 + $0x4b0] sm:$0xff]  ;;  %v2891_v38 = vld [vmem:[%s6657_s1 + $0x320] sm:$0xff] }
 0x1da   :  { %1571 = vmatmul.f32.gmra.mxu1 %v1064_v46  ;;  %3169 = vmatpush.msra.mxu0 %v2894_v27  ;;  %v2939_v27 = vld [vmem:[%s6657_s1 + $0x4a0] sm:$0xff] }
 0x1db   :  { %2982 = vmatmul.f32.gmra.mxu2 %v2781_v4  ;;  %3274 = vmatpush.msra.mxu3 %v2942_v55  ;;  %v2923_v4 = vld [vmem:[%s6657_s1 + $0x420] sm:$0xff]  ;;  %v2922_v55 = vld [vmem:[%s6657_s1 + $0x418] sm:$0xff] }
 0x1dc   :  { %3017 = vmatmul.f32.gmra.mxu3 %v2782_v6  ;;  %3240 = vmatpush.msra.mxu2 %v2925_v24  ;;  %v6113_v6 = vld [vmem:[#allocation7 + $0x29] sm:$0xff] }
 0x1dd   :  { %3204 = vmatpush.msra.mxu1 %v2910_v61  ;;  %3170 = vmatpush.msra.mxu0 %v2893_v18  ;;  %v2890_v18 = vld [vmem:[%s6657_s1 + $0x318] sm:$0xff] }
 0x1de   :  { %v6067_v34 = vpop.f32.mrf.mxu2  ;;  %3275 = vmatpush.msra.mxu3 %v2941_v53 }
 0x1df   :  { %v6069_v7 = vpop.f32.mrf.mxu3  ;;  %3205 = vmatpush.msra.mxu1 %v2909_v45  ;;  %3171 = vmatpush.msra.mxu0 %v2892_v25  ;;  %v2889_v45 = vld [vmem:[%s6657_s1 + $0x310] sm:$0xff] }
 0x1e0   :  { %v1251_v8 = vpop.f32.mrf.mxu0 }
 0x1e1   :  { %3037 = vmatmul.f32.vlgmr.msrb.gmra.mxu0 %v5778_v12  ;;  %v2924_v12 = vld [vmem:[%s6657_s1 + $0x428] sm:$0xff]  ;;  %3206 = vmatpush.msra.mxu1 %v2908_v29 }
 0x1e2   :  { %3072 = vmatmul.f32.vlgmr.msrb.gmra.mxu1 %v5790_v37  ;;  %v1286_v46 = vpop.f32.mrf.mxu1  ;;  %v6096_v37 = vld [vmem:[#allocation7 + $0x27] sm:$0xff]  ;;  %3241 = vmatpush.msra.mxu2 %v2924_v12 }
 0x1e3   :  { %3107 = vmatmul.f32.vlgmr.msrb.gmra.mxu2 %v5793_v47  ;;  %v2940_v47 = vld [vmem:[%s6657_s1 + $0x4a8] sm:$0xff]  ;;  %v1287_v5 = vadd.f32 %v1286_v46, %v1251_v8  ;;  %3172 = vmatpush.msra.mxu0 %v2891_v38  ;;  %v2938_v12 = vld [vmem:[%s6657_s1 + $0x498] sm:$0xff] }
 0x1e4   :  { %3142 = vmatmul.f32.vlgmr.msrb.gmra.mxu3 %v5676_v15  ;;  %v6111_v15 = vld [vmem:[#allocation7 + $0x28] sm:$0xff]  ;;  %3242 = vmatpush.msra.mxu2 %v2923_v4  ;;  %v2920_v4 = vld [vmem:[%s6657_s1 + $0x408] sm:$0xff] }
 0x1e5   :  { %3276 = vmatpush.msra.mxu3 %v2940_v47  ;;  %v2676_v8 = vld [vmem:[#allocation7 + $0x2d] sm:$0x1]  ;;  %3173 = vmatpush.msra.mxu0 %v2890_v18  ;;  %v2888_v38 = vld [vmem:[%s6657_s1 + $0x308] sm:$0xff]  ;;  %v2903_v18 = vld [vmem:[%s6657_s1 + $0x380] sm:$0xff] }
 0x1e6   :  { %3243 = vmatpush.msra.mxu2 %v2922_v55  ;;  %2682 = vst [vmem:[#allocation9 + $0x1c8] sm:$0x1] %v2676_v8  ;;  %v2936_v55 = vld [vmem:[%s6657_s1 + $0x488] sm:$0xff] }
 0x1e7   :  { %3277 = vmatpush.msra.mxu3 %v2939_v27  ;;  %3174 = vmatpush.msra.mxu0 %v2889_v45  ;;  %v2783_v45 = vld [vmem:[#allocation9 + $0x18] sm:$0x1] }
 0x1e8   :  { %v1321_v24 = vpop.f32.mrf.mxu2 }
 0x1e9   :  { %3040 = vmatmul.f32.gmra.mxu0 %v5815_v19  ;;  %v1356_v61 = vpop.f32.mrf.mxu3  ;;  %v2907_v19 = vld [vmem:[%s6657_s1 + $0x3a0] sm:$0xff]  ;;  %v1322_v53 = vadd.f32 %v1321_v24, %v1287_v5  ;;  %3278 = vmatpush.msra.mxu3 %v2938_v12  ;;  %v2905_v5 = vld [vmem:[%s6657_s1 + $0x390] sm:$0xff] }
 0x1ea   :  { %3075 = vmatmul.f32.gmra.mxu1 %v5830_v63  ;;  %v2921_v63 = vld [vmem:[%s6657_s1 + $0x410] sm:$0xff]  ;;  %3175 = vmatpush.msra.mxu0 %v2888_v38  ;;  %v2919_v24 = vld [vmem:[%s6657_s1 + $0x400] sm:$0xff] }
 0x1eb   :  { %3110 = vmatmul.f32.gmra.mxu2 %v5841_v28  ;;  %v1254_v46 = vpop.f32.mrf.mxu0  ;;  %v2906_v28 = vld [vmem:[%s6657_s1 + $0x398] sm:$0xff]  ;;  %v6146_v25 = vadd.f32 %v1356_v61, %v1322_v53  ;;  %3207 = vmatpush.msra.mxu1 %v2907_v19  ;;  %v2935_v53 = vld [vmem:[%s6657_s1 + $0x480] sm:$0xff] }
 0x1ec   :  { %3145 = vmatmul.f32.gmra.mxu3 %v5728_v21  ;;  %v1289_v47 = vpop.f32.mrf.mxu1  ;;  %v2937_v21 = vld [vmem:[%s6657_s1 + $0x490] sm:$0xff]  ;;  %3244 = vmatpush.msra.mxu2 %v2921_v63 }
 0x1ed   :  { %3208 = vmatpush.msra.mxu1 %v2906_v28  ;;  %3279 = vmatpush.msra.mxu3 %v2937_v21  ;;  %v1290_v29 = vadd.f32 %v1289_v47, %v1254_v46  ;;  %v2784_v47 = vld [vmem:[#allocation9 + $0xd0] sm:$0x1]  ;;  %v2786_v21 = vld [vmem:[#allocation9 + $0x1c8] sm:$0x1] }
 0x1ee   :  { %3245 = vmatpush.msra.mxu2 %v2920_v4  ;;  %v2785_v4 = vld [vmem:[#allocation9 + $0xe8] sm:$0x1] }
 0x1ef   :  { %3209 = vmatpush.msra.mxu1 %v2905_v5  ;;  %3280 = vmatpush.msra.mxu3 %v2936_v55  ;;  %v2700_v55 = vld [vmem:[#allocation7 + $0x2f] sm:$0x1] }
 0x1f0   :  { %3246 = vmatpush.msra.mxu2 %v2919_v24  ;;  %2706 = vst [vmem:[#allocation9 + $0x118] sm:$0x1] %v2700_v55 }
 0x1f1   :  { %3043 = vmatmul.f32.gmra.mxu0 %v5875_v31  ;;  %v2904_v31 = vld [vmem:[%s6657_s1 + $0x388] sm:$0xff]  ;;  %3281 = vmatpush.msra.mxu3 %v2935_v53 }
 0x1f2   :  { %3078 = vmatmul.f32.gmra.mxu1 %v5886_v39  ;;  %v2887_v39 = vld [vmem:[%s6657_s1 + $0x300] sm:$0xff] }
 0x1f3   :  { %v1324_v27 = vpop.f32.mrf.mxu2  ;;  %3113 = vmatmul.f32.gmra.mxu2 %v5892_v48  ;;  %3210 = vmatpush.msra.mxu1 %v2904_v31 }
 0x1f4   :  { %v1325_v61 = vadd.f32 %v1324_v27, %v1290_v29  ;;  %3148 = vmatmul.f32.gmra.mxu3 %v5760_v59  ;;  %v1359_v19 = vpop.f32.mrf.mxu3  ;;  %v6184_v48 = vpop.f32.mrf.mxu0  ;;  %3176 = vmatpush.msra.mxu0 %v2887_v39 }
 0x1f5   :  { %v6186_v63 = vpop.f32.mrf.mxu1  ;;  %3211 = vmatpush.msra.mxu1 %v2903_v18 }
 0x1f6   :  { %v6182_v12 = vadd.f32 %v1359_v19, %v1325_v61  ;;  %v2724_v61 = vld [vmem:[#allocation7 + $0x31] sm:$0x1] }
 0x1f7   :  { %2730 = vst [vmem:[#allocation9 + $0x98] sm:$0x1] %v2724_v61 }
 0x1f9   :  { %3046 = vmatmul.f32.gmra.mxu0 %v5895_v41 }
 0x1fa   :  { %3081 = vmatmul.f32.gmra.mxu1 %v5934_v52 }
 0x1fb   :  { %3116 = vmatmul.f32.gmra.mxu2 %v5937_v11 }
 0x1fc   :  { %3151 = vmatmul.f32.gmra.mxu3 %v5804_v23  ;;  %v6192_v59 = vpop.f32.mrf.mxu2  ;;  %v6194_v8 = vpop.f32.mrf.mxu0 }
 0x1fd   :  { %v6196_v46 = vpop.f32.mrf.mxu3  ;;  %v6198_v28 = vpop.f32.mrf.mxu1 }
 0x201   :  { %3049 = vmatmul.f32.gmra.mxu0 %v5940_v49 }
 0x202   :  { %3084 = vmatmul.f32.gmra.mxu1 %v5942_v10 }
 0x203   :  { %3119 = vmatmul.f32.gmra.mxu2 %v5973_v17 }
 0x204   :  { %3154 = vmatmul.f32.gmra.mxu3 %v5861_v26  ;;  %v6204_v41 = vpop.f32.mrf.mxu2  ;;  %v1385_v52 = vpop.f32.mrf.mxu0 }
 0x205   :  { %v6206_v23 = vpop.f32.mrf.mxu3  ;;  %v6208_v11 = vpop.f32.mrf.mxu1 }
 0x209   :  { %3052 = vmatmul.f32.gmra.mxu0 %v2783_v45 }
 0x20a   :  { %3087 = vmatmul.f32.gmra.mxu1 %v2784_v47 }
 0x20b   :  { %3122 = vmatmul.f32.gmra.mxu2 %v2785_v4 }
 0x20c   :  { %3157 = vmatmul.f32.gmra.mxu3 %v2786_v21  ;;  %v1455_v49 = vpop.f32.mrf.mxu2  ;;  %v1388_v10 = vpop.f32.mrf.mxu0 }
 0x20d   :  { %v6210_v17 = vpop.f32.mrf.mxu3  ;;  %v6212_v26 = vpop.f32.mrf.mxu1 }
 0x211   :  { %3177 = vmatmul.f32.vlgmr.msra.gmra.mxu0 %v5991_v33 }
 0x212   :  { %3212 = vmatmul.f32.vlgmr.msra.gmra.mxu1 %v5993_v14 }
 0x213   :  { %3247 = vmatmul.f32.vlgmr.msra.gmra.mxu2 %v5995_v58  ;;  %v2688_v58 = vld [vmem:[#allocation7 + $0x2e] sm:$0x1] }
 0x214   :  { %3282 = vmatmul.f32.vlgmr.msra.gmra.mxu3 %v6023_v30  ;;  %v6218_v29 = vpop.f32.mrf.mxu2  ;;  %v6220_v5 = vpop.f32.mrf.mxu0  ;;  %v2712_v30 = vld [vmem:[#allocation7 + $0x30] sm:$0x1]  ;;  %2694 = vst [vmem:[#allocation9 + $0xf0] sm:$0x1] %v2688_v58 }
 0x215   :  { %v6222_v38 = vpop.f32.mrf.mxu3  ;;  %v6224_v27 = vpop.f32.mrf.mxu1  ;;  %2718 = vst [vmem:[#allocation9 + $0x150] sm:$0x1] %v2712_v30 }
 0x219   :  { %3180 = vmatmul.f32.gmra.mxu0 %v6025_v0 }
 0x21a   :  { %3215 = vmatmul.f32.gmra.mxu1 %v6027_v2 }
 0x21b   :  { %3250 = vmatmul.f32.gmra.mxu2 %v6042_v9  ;;  %v1281_v9 = vadd.f32 %v5977_v42, %v5975_v57  ;;  %v2787_v18 = vld [vmem:[#allocation9 + $0xf0] sm:$0x1] }
 0x21c   :  { %3285 = vmatmul.f32.gmra.mxu3 %v6047_v44  ;;  %v6230_v33 = vpop.f32.mrf.mxu2 }
 0x21d   :  { %v6232_v14 = vpop.f32.mrf.mxu0  ;;  %v6234_v31 = vpop.f32.mrf.mxu3 }
 0x21e   :  { %v6236_v24 = vpop.f32.mrf.mxu1  ;;  %v1395_v61 = vadd.f32 %v6232_v14, %v6182_v12 }
 0x221   :  { %3183 = vmatmul.f32.gmra.mxu0 %v6049_v13  ;;  %v1278_v13 = vadd.f32 %v5909_v62, %v5907_v35 }
 0x222   :  { %3218 = vmatmul.f32.gmra.mxu1 %v6051_v22  ;;  %v1316_v22 = vadd.f32 %v6016_v51, %v1281_v9 }
 0x223   :  { %3253 = vmatmul.f32.gmra.mxu2 %v5877_v40  ;;  %v1313_v40 = vadd.f32 %v5945_v32, %v1278_v13 }
 0x224   :  { %3288 = vmatmul.f32.gmra.mxu3 %v5879_v1  ;;  %v1284_v1 = vadd.f32 %v6040_v56, %v6038_v3  ;;  %v1351_v57 = vadd.f32 %v6018_v54, %v1316_v22 }
 0x225   :  { %v1348_v51 = vadd.f32 %v5947_v43, %v1313_v40 }
 0x226   :  { %v6242_v0 = vpop.f32.mrf.mxu2  ;;  %v6244_v2 = vpop.f32.mrf.mxu0  ;;  %v1319_v42 = vadd.f32 %v6067_v34, %v1284_v1 }
 0x227   :  { %v6248_v44 = vpop.f32.mrf.mxu3  ;;  %v6250_v39 = vpop.f32.mrf.mxu1  ;;  %v1383_v3 = vadd.f32 %v6194_v8, %v1348_v51 }
 0x228   :  { %v1354_v19 = vadd.f32 %v6069_v7, %v1319_v42 }
 0x229   :  { %3186 = vmatmul.f32.gmra.mxu0 %v6065_v36  ;;  %v1386_v36 = vadd.f32 %v1385_v52, %v1351_v57  ;;  %v1418_v43 = vadd.f32 %v6198_v28, %v1383_v3  ;;  %v2790_v28 = vld [vmem:[#allocation9 + $0x98] sm:$0x1] }
 0x22a   :  { %3221 = vmatmul.f32.gmra.mxu1 %v6071_v16 }
 0x22b   :  { %3256 = vmatmul.f32.gmra.mxu2 %v5926_v20  ;;  %v1421_v20 = vadd.f32 %v6208_v11, %v1386_v36  ;;  %v1453_v7 = vadd.f32 %v6204_v41, %v1418_v43  ;;  %v2789_v11 = vld [vmem:[#allocation9 + $0x150] sm:$0x1]  ;;  %v1392_v41 = vadd.f32 %v6220_v5, %v6146_v25 }
 0x22c   :  { %3291 = vmatmul.f32.gmra.mxu3 %v5928_v50  ;;  %v1389_v50 = vadd.f32 %v1388_v10, %v1354_v19 }
 0x22d   :  { %v1456_v54 = vadd.f32 %v1455_v49, %v1421_v20  ;;  %v1488_v45 = vadd.f32 %v6206_v23, %v1453_v7 }
 0x22e   :  { %v6264_v35 = vpop.f32.mrf.mxu2  ;;  %v1522_v62 = vpop.f32.mrf.mxu0  ;;  %v1424_v53 = vadd.f32 %v6212_v26, %v1389_v50 }
 0x22f   :  { %v6267_v16 = vpop.f32.mrf.mxu3  ;;  %v1557_v32 = vpop.f32.mrf.mxu1  ;;  %v1523_v4 = vadd.f32 %v1522_v62, %v1488_v45 }
 0x231   :  { %3189 = vmatmul.f32.gmra.mxu0 %v6094_v60  ;;  %v6293_v25 = vadd.f32 %v1557_v32, %v1523_v4 }
 0x232   :  { %3224 = vmatmul.f32.gmra.mxu1 %v6096_v37  ;;  %v2788_v37 = vld [vmem:[#allocation9 + $0x118] sm:$0x1] }
 0x233   :  { %3259 = vmatmul.f32.gmra.mxu2 %v6111_v15  ;;  %v1491_v15 = vadd.f32 %v6210_v17, %v1456_v54  ;;  %v1427_v17 = vadd.f32 %v6224_v27, %v1392_v41  ;;  %v1576_v40 = vsel %vm1575_vm8, %v6293_v25, 0.0 }
 0x234   :  { %3294 = vmatmul.f32.gmra.mxu3 %v6113_v6  ;;  %v1459_v6 = vadd.f32 %v6218_v29, %v1424_v53 }
 0x235   :  { %v1462_v23 = vadd.f32 %v6230_v33, %v1427_v17  ;;  %v1594_v33 = vmul.f32 %v6293_v25, %v6293_v25 }
 0x236   :  { %v2968_v56 = vpop.f32.mrf.mxu2  ;;  %v1525_v34 = vpop.f32.mrf.mxu0  ;;  %v1494_v21 = vadd.f32 %v6222_v38, %v1459_v6  ;;  %v1293_v38 = vadd.f32 %v6186_v63, %v6184_v48  ;;  %v1430_v63 = vadd.f32 %v6236_v24, %v1395_v61 }
 0x237   :  { %v3003_v60 = vpop.f32.mrf.mxu3  ;;  %v1560_v8 = vpop.f32.mrf.mxu1  ;;  %v1526_v47 = vadd.f32 %v1525_v34, %v1491_v15  ;;  %v1497_v13 = vadd.f32 %v6234_v31, %v1462_v23  ;;  %v1600_v32 = vsel %vm1575_vm8, %v1594_v33, 0.0 }
 0x238   :  { %v6279_v52 = vadd.f32 %v3003_v60, %v2968_v56  ;;  %v1328_v9 = vadd.f32 %v6192_v59, %v1293_v38  ;;  %v1465_v24 = vadd.f32 %v6242_v0, %v1430_v63 }
 0x239   :  { %3192 = vmatmul.f32.gmra.mxu0 %v2787_v18  ;;  %v6288_v26 = vadd.f32 %v1560_v8, %v1526_v47 }
 0x23a   :  { %3227 = vmatmul.f32.gmra.mxu1 %v2788_v37  ;;  %v1363_v62 = vadd.f32 %v6196_v46, %v1328_v9  ;;  %v1500_v0 = vadd.f32 %v6248_v44, %v1465_v24 }
 0x23b   :  { %3262 = vmatmul.f32.gmra.mxu2 %v2789_v11  ;;  %v1595_v27 = vmul.f32 %v6288_v26, %v6288_v26  ;;  %v1577_v22 = vsel %vm1575_vm8, %v6288_v26, 0.0 }
 0x23c   :  { %3297 = vmatmul.f32.gmra.mxu3 %v2790_v28  ;;  %v1578_v51 = vadd.f32 %v1577_v22, %v1576_v40  ;;  %v1398_v43 = vadd.f32 %v6244_v2, %v1363_v62 }
 0x23d   :  { %v1601_v59 = vsel %vm1575_vm8, %v1595_v27, 0.0 }
 0x23e   :  { %v2971_v49 = vpop.f32.mrf.mxu2  ;;  %v1528_v10 = vpop.f32.mrf.mxu0  ;;  %v1602_v20 = vadd.f32 %v1601_v59, %v1600_v32  ;;  %v1433_v8 = vadd.f32 %v6250_v39, %v1398_v43 }
 0x23f   :  { %v3006_v29 = vpop.f32.mrf.mxu3  ;;  %v1529_v58 = vadd.f32 %v1528_v10, %v1494_v21  ;;  %v1563_v30 = vpop.f32.mrf.mxu1 }
 0x240   :  { %v6290_v55 = vadd.f32 %v3006_v29, %v2971_v49  ;;  %v1468_v6 = vadd.f32 %v6264_v35, %v1433_v8 }
 0x241   :  { %v6295_v5 = vadd.f32 %v1563_v30, %v1529_v58 }
 0x242   :  { %v1503_v47 = vadd.f32 %v6267_v16, %v1468_v6 }
 0x243   :  { %v1596_v48 = vmul.f32 %v6295_v5, %v6295_v5  ;;  %v1579_v31 = vsel %vm1575_vm8, %v6295_v5, 0.0 }
 0x244   :  { %v1580_v50 = vadd.f32 %v1579_v31, %v1578_v51 }
 0x245   :  { %v1603_v19 = vsel %vm1575_vm8, %v1596_v48, 0.0 }
 0x246   :  { %v2974_v12 = vpop.f32.mrf.mxu2  ;;  %v1531_v14 = vpop.f32.mrf.mxu0  ;;  %v1604_v56 = vadd.f32 %v1603_v19, %v1602_v20 }
 0x247   :  { %v3009_v1 = vpop.f32.mrf.mxu3  ;;  %v1532_v57 = vadd.f32 %v1531_v14, %v1497_v13  ;;  %v1566_v42 = vpop.f32.mrf.mxu1 }
 0x248   :  { %v6318_v36 = vadd.f32 %v3009_v1, %v2974_v12 }
 0x249   :  { %v6323_v3 = vadd.f32 %v1566_v42, %v1532_v57 }
 0x24b   :  { %v1581_v54 = vsel %vm1575_vm8, %v6323_v3, 0.0  ;;  %v1597_v46 = vmul.f32 %v6323_v3, %v6323_v3 }
 0x24c   :  { %v1582_v34 = vadd.f32 %v1581_v54, %v1580_v50 }
 0x24d   :  { %v1605_v18 = vsel %vm1575_vm8, %v1597_v46, 0.0 }
 0x24e   :  { %v1606_v7 = vadd.f32 %v1605_v18, %v1604_v56  ;;  %v2977_v53 = vpop.f32.mrf.mxu2  ;;  %v1534_v60 = vpop.f32.mrf.mxu0 }
 0x24f   :  { %v3012_v37 = vpop.f32.mrf.mxu3  ;;  %v1535_v11 = vadd.f32 %v1534_v60, %v1500_v0  ;;  %v1569_v2 = vpop.f32.mrf.mxu1 }
 0x250   :  { %v6333_v15 = vadd.f32 %v3012_v37, %v2977_v53 }
 0x251   :  { %v6336_v28 = vadd.f32 %v1569_v2, %v1535_v11 }
 0x253   :  { %v1583_v45 = vsel %vm1575_vm8, %v6336_v28, 0.0  ;;  %v1598_v44 = vmul.f32 %v6336_v28, %v6336_v28 }
 0x254   :  { %v1584_v41 = vadd.f32 %v1583_v45, %v1582_v34 }
 0x255   :  { %v1607_v39 = vsel %vm1575_vm8, %v1598_v44, 0.0 }
 0x256   :  { %v2980_v21 = vpop.f32.mrf.mxu2  ;;  %v1537_v4 = vpop.f32.mrf.mxu0  ;;  %v1608_v49 = vadd.f32 %v1607_v39, %v1606_v7 }
 0x257   :  { %v3015_v10 = vpop.f32.mrf.mxu3  ;;  %v1538_v17 = vadd.f32 %v1537_v4, %v1503_v47  ;;  %v1572_v35 = vpop.f32.mrf.mxu1 }
 0x258   :  { %v6344_v29 = vadd.f32 %v3015_v10, %v2980_v21  ;;  %v6360_v10 = vld [vmem:[%s6656_s2 + $0x1e9] ss:$0 sm:$0xff] }
 0x259   :  { %v1573_v58 = vadd.f32 %v1572_v35, %v1538_v17 }
 0x25b   :  { %v1586_v30 = vsel %vm1585_vm9, %v1573_v58, 0.0  ;;  %v1599_v23 = vmul.f32 %v1573_v58, %v1573_v58 }
 0x25c   :  { %v1587_v38 = vadd.f32 %v1586_v30, %v1584_v41 }
 0x25d   :  { %v1609_v61 = vsel %vm1585_vm9, %v1599_v23, 0.0 }
 0x25e   :  { %v1588_v27 = vrot.slane %v1587_v38, 4  ;;  %v1610_v16 = vadd.f32 %v1609_v61, %v1608_v49  ;;  %v2983_v19 = vpop.f32.mrf.mxu2  ;;  %v3038_v43 = vpop.f32.mrf.mxu0 }
 0x25f   :  { %v3018_v20 = vpop.f32.mrf.mxu3  ;;  %v3073_v54 = vpop.f32.mrf.mxu1  ;;  %v3039_v56 = vadd.f32 %v3038_v43, %v6279_v52 }
 0x260   :  { %v1589_v9 = vadd.f32 %v1588_v27, %v1587_v38  ;;  %v1611_v13 = vrot.slane %v1610_v16, 4  ;;  %v6351_v50 = vadd.f32 %v3018_v20, %v2983_v19 }
 0x261   :  { %v3074_v34 = vadd.f32 %v3073_v54, %v3039_v56 }
 0x262   :  { %v1590_v33 = vrot.slane %v1589_v9, 2  ;;  %v1612_v22 = vadd.f32 %v1611_v13, %v1610_v16 }
 0x264   :  { %v1591_v48 = vadd.f32 %v1590_v33, %v1589_v9  ;;  %v1613_v63 = vrot.slane %v1612_v22, 2 }
 0x266   :  { %v1592_v12 = vrot.slane %v1591_v48, 1  ;;  %v1614_v14 = vadd.f32 %v1613_v63, %v1612_v22  ;;  %v3108_v0 = vpop.f32.mrf.mxu2 }
 0x267   :  { %v3143_v18 = vpop.f32.mrf.mxu3  ;;  %v3109_v7 = vadd.f32 %v3108_v0, %v3074_v34  ;;  %v3076_v53 = vpop.f32.mrf.mxu1 }
 0x268   :  { %v1593_v40 = vadd.f32 %v1592_v12, %v1591_v48  ;;  %v1615_v59 = vrot.slane %v1614_v14, 1 }
 0x269   :  { %v3144_v37 = vadd.f32 %v3143_v18, %v3109_v7 }
 0x26a   :  { %v1616_v31 = vadd.f32 %v1615_v59, %v1614_v14  ;;  %v1617_v1 = vmul.f32 0.024390243, %v1593_v40 }
 0x26c   :  { %v1618_v57 = vmul.f32 0.024390243, %v1616_v31  ;;  %v1619_v42 = vmul.f32 %v1617_v1, %v1617_v1  ;;  %v1622_v62 = vsub.f32 %v6288_v26, %v1617_v1  ;;  %v1624_v51 = vsub.f32 %v6323_v3, %v1617_v1  ;;  %v3041_v26 = vpop.f32.mrf.mxu0 }
 0x26d   :  { %v1625_v24 = vsub.f32 %v6336_v28, %v1617_v1  ;;  %v3042_v60 = vadd.f32 %v3041_v26, %v6290_v55  ;;  %v1621_v4 = vsub.f32 %v6293_v25, %v1617_v1  ;;  %v1623_v49 = vsub.f32 %v6295_v5, %v1617_v1 }
 0x26e   :  { %v1620_v32 = vsub.f32 %v1618_v57, %v1619_v42  ;;  %v3111_v28 = vpop.f32.mrf.mxu2 }
 0x26f   :  { %v3077_v11 = vadd.f32 %v3076_v53, %v3042_v60  ;;  %v3146_v45 = vpop.f32.mrf.mxu3  ;;  %v3079_v47 = vpop.f32.mrf.mxu1 }
 0x270   :  { %v1626_v46 = vadd.f32 1e-05, %v1620_v32 }
 0x271   :  { %v3112_v52 = vadd.f32 %v3111_v28, %v3077_v11 }
 0x272   :  { %3706 = vrsqrt.f32 %v1626_v46  ;;  %vm1633_vm11 = vweird.f32 %v1626_v46 }
 0x273   :  { %v3147_v21 = vadd.f32 %v3146_v45, %v3112_v52 }
 0x274   :  { %v3044_v41 = vpop.f32.mrf.mxu0 }
 0x275   :  { %v3045_v54 = vadd.f32 %v3044_v41, %v6318_v36 }
 0x276   :  { %v3114_v38 = vpop.f32.mrf.mxu2 }
 0x277   :  { %v3149_v61 = vpop.f32.mrf.mxu3  ;;  %v3082_v9 = vpop.f32.mrf.mxu1  ;;  %v3080_v7 = vadd.f32 %v3079_v47, %v3045_v54 }
 0x278   :  { %v3707_v3 = vpop.eup %3706 }
 0x279   :  { %v1628_v8 = vmul.f32 %v3707_v3, %v1626_v46  ;;  %vm1634_vm10 = vweird.f32 %v3707_v3 }
 0x27a   :  { %vm1635_vm12 = vmor %vm1633_vm11, %vm1634_vm10 }
 0x27b   :  { %v1629_v2 = vmul.f32 %v3707_v3, %v1628_v8 }
 0x27c   :  { %v3047_v16 = vpop.f32.mrf.mxu0 }
 0x27d   :  { %v1630_v6 = vmul.f32 0.5, %v1629_v2  ;;  %v3048_v60 = vadd.f32 %v3047_v16, %v6333_v15 }
 0x27e   :  { %v3117_v40 = vpop.f32.mrf.mxu2 }
 0x27f   :  { %v1631_v44 = vsub.f32 1.5, %v1630_v6  ;;  %v3152_v59 = vpop.f32.mrf.mxu3  ;;  %v3085_v1 = vpop.f32.mrf.mxu1 }
 0x281   :  { %v1632_v39 = vmul.f32 %v3707_v3, %v1631_v44  ;;  %v3083_v44 = vadd.f32 %v3082_v9, %v3048_v60 }
 0x283   :  { %v1636_v55 = vsel %vm1635_vm12, %v3707_v3, %v1632_v39  ;;  %v3115_v3 = vadd.f32 %v3114_v38, %v3080_v7  ;;  %v3118_v39 = vadd.f32 %v3117_v40, %v3083_v44 }
 0x284   :  { %v1637_v17 = vmul.f32 %v1636_v55, %v1621_v4  ;;  %v1638_v35 = vmul.f32 %v1636_v55, %v1622_v62  ;;  %v1639_v58 = vmul.f32 %v1636_v55, %v1623_v49  ;;  %v1640_v30 = vmul.f32 %v1636_v55, %v1624_v51  ;;  %v3050_v31 = vpop.f32.mrf.mxu0 }
 0x285   :  { %v1641_v23 = vmul.f32 %v1636_v55, %v1625_v24  ;;  %v3150_v28 = vadd.f32 %v3149_v61, %v3115_v3  ;;  %v3051_v55 = vadd.f32 %v3050_v31, %v6344_v29  ;;  %v3153_v61 = vadd.f32 %v3152_v59, %v3118_v39 }
 0x286   :  { %vm1642_vm13 = vcmp.gt.f32.partialorder %v1637_v17, 0.0  ;;  %vm1643_vm14 = vcmp.gt.f32.partialorder %v1638_v35, 0.0  ;;  %vm1644_vm15 = vcmp.gt.f32.partialorder %v1639_v58, 0.0  ;;  %vm1645_vm0 = vcmp.gt.f32.partialorder %v1640_v30, 0.0  ;;  %v3120_v57 = vpop.f32.mrf.mxu2 }
 0x287   :  { %v1648_v25 = vmul.f32 %v6360_v10, %v1637_v17  ;;  %v1649_v5 = vmul.f32 %v6360_v10, %v1638_v35  ;;  %v1650_v27 = vmul.f32 %v6360_v10, %v1639_v58  ;;  %vm1646_vm1 = vcmp.gt.f32.partialorder %v1641_v23, 0.0  ;;  %v3155_v42 = vpop.f32.mrf.mxu3  ;;  %v3088_v51 = vpop.f32.mrf.mxu1 }
 0x288   :  { %v1651_v13 = vmul.f32 %v6360_v10, %v1640_v30  ;;  %v1652_v33 = vmul.f32 %v6360_v10, %v1641_v23  ;;  %v3086_v16 = vadd.f32 %v3085_v1, %v3051_v55 }
 0x289   :  { %v1653_v22 = vsel %vm1642_vm13, %v1637_v17, %v1648_v25  ;;  %v1654_v48 = vsel %vm1643_vm14, %v1638_v35, %v1649_v5  ;;  %v1655_v63 = vsel %vm1644_vm15, %v1639_v58, %v1650_v27 }
 0x28a   :  { %v1656_v12 = vsel %vm1645_vm0, %v1640_v30, %v1651_v13  ;;  %1658 = vst.msk [vmem:[#allocation4] sm:$0xff] %vm1575_vm8, %v1653_v22  ;;  %v1657_v14 = vsel %vm1646_vm1, %v1641_v23, %v1652_v33  ;;  %v3121_v33 = vadd.f32 %v3120_v57, %v3086_v16 }
 0x28b   :  { %1659 = vst.msk [vmem:[#allocation4 + $0x8] sm:$0xff] %vm1575_vm8, %v1654_v48 }
 0x28c   :  { %1660 = vst.msk [vmem:[#allocation4 + $0x10] sm:$0xff] %vm1575_vm8, %v1655_v63  ;;  %v3053_v62 = vpop.f32.mrf.mxu0  ;;  %v3156_v1 = vadd.f32 %v3155_v42, %v3121_v33 }
 0x28d   :  { %1661 = vst.msk [vmem:[#allocation4 + $0x18] sm:$0xff] %vm1575_vm8, %v1656_v12  ;;  %v3054_v63 = vadd.f32 %v3053_v62, %v6351_v50 }
 0x28e   :  { %1662 = vst.msk [vmem:[#allocation4 + $0x20] sm:$0xff] %vm1575_vm8, %v1657_v14  ;;  %v6372_v24 = vpop.f32.mrf.mxu2 }
 0x28f   :  { %v6374_v32 = vpop.f32.mrf.mxu3  ;;  %v3213_v20 = vpop.f32.mrf.mxu1 }
 0x294   :  { %v3178_v19 = vpop.f32.mrf.mxu0 }
 0x295   :  { %v3179_v43 = vadd.f32 %v3178_v19, %v3144_v37  ;;  %v1666_v7 = vld [vmem:[#allocation4 + $0x2] ss:$10 sm:$0xf]  ;;  %v1668_v3 = vld [vmem:[#allocation4 + $0x3] ss:$10 sm:$0xf] }
 0x296   :  { %v3248_v46 = vpop.f32.mrf.mxu2 }
 0x297   :  { %v3283_v56 = vpop.f32.mrf.mxu3  ;;  %v3214_v34 = vadd.f32 %v3213_v20, %v3179_v43  ;;  %v3216_v18 = vpop.f32.mrf.mxu1  ;;  %v3089_v43 = vadd.f32 %v3088_v51, %v3054_v63 }
 0x299   :  { %v3249_v26 = vadd.f32 %v3248_v46, %v3214_v34  ;;  %v1663_v46 = vld [vmem:[#allocation4] ss:$10 sm:$0xf] }
 0x29b   :  { %v6378_v8 = vadd.f32 %v3283_v56, %v3249_v26  ;;  %v1664_v56 = vld [vmem:[#allocation4 + $0x1] ss:$10 sm:$0xf] }
 0x29c   :  { %v3181_v0 = vpop.f32.mrf.mxu0 }
 0x29d   :  { %v3182_v53 = vadd.f32 %v3181_v0, %v3147_v21  ;;  %v3318_v52 = vmul.f32 %v6378_v8, %v6378_v8  ;;  %v3301_v15 = vsel %vm1575_vm8, %v6378_v8, 0.0  ;;  %v1665_v0 = vmax.f32 %v1663_v46, %v1664_v56 }
 0x29e   :  { %v3251_v2 = vpop.f32.mrf.mxu2 }
 0x29f   :  { %v3217_v11 = vadd.f32 %v3216_v18, %v3182_v53  ;;  %v3286_v6 = vpop.f32.mrf.mxu3  ;;  %v3219_v36 = vpop.f32.mrf.mxu1  ;;  %v3324_v17 = vsel %vm1575_vm8, %v3318_v52, 0.0  ;;  %v3124_v18 = vadd.f32 %v6372_v24, %v3089_v43  ;;  %v1667_v26 = vmax.f32 %v1665_v0, %v1666_v7 }
 0x2a1   :  { %v3252_v37 = vadd.f32 %v3251_v2, %v3217_v11 }
 0x2a3   :  { %v6382_v41 = vadd.f32 %v3286_v6, %v3252_v37  ;;  %v1669_v6 = vmax.f32 %v1667_v26, %v1668_v3 }
 0x2a4   :  { %v3184_v45 = vpop.f32.mrf.mxu0 }
 0x2a5   :  { %v3185_v47 = vadd.f32 %v3184_v45, %v3150_v28  ;;  %v3302_v21 = vsel %vm1575_vm8, %v6382_v41, 0.0  ;;  %v3319_v4 = vmul.f32 %v6382_v41, %v6382_v41  ;;  %v3159_v28 = vadd.f32 %v6374_v32, %v3124_v18  ;;  %v1670_v45 = vld [vmem:[#allocation4 + $0x4] ss:$10 sm:$0xf] }
 0x2a6   :  { %v3303_v49 = vadd.f32 %v3302_v21, %v3301_v15  ;;  %v3254_v23 = vpop.f32.mrf.mxu2 }
 0x2a7   :  { %v3325_v35 = vsel %vm1575_vm8, %v3319_v4, 0.0  ;;  %v3220_v58 = vadd.f32 %v3219_v36, %v3185_v47  ;;  %v3289_v38 = vpop.f32.mrf.mxu3  ;;  %v3222_v27 = vpop.f32.mrf.mxu1  ;;  %v1671_v36 = vmax.f32 %v1669_v6, %v1670_v45  ;;  %v1673_v47 = vld [vmem:[#allocation4 + $0x5] ss:$10 sm:$0xf] }
 0x2a8   :  { %v3326_v30 = vadd.f32 %v3325_v35, %v3324_v17 }
 0x2a9   :  { %v3255_v25 = vadd.f32 %v3254_v23, %v3220_v58  ;;  %v1674_v15 = vmax.f32 %v1671_v36, %v1673_v47  ;;  %v1679_v58 = vld [vmem:[#allocation4 + $0x7] ss:$10 sm:$0xf] }
 0x2ab   :  { %v6393_v9 = vadd.f32 %v3289_v38, %v3255_v25 }
 0x2ac   :  { %v3187_v5 = vpop.f32.mrf.mxu0 }
 0x2ad   :  { %v3188_v13 = vadd.f32 %v3187_v5, %v3153_v61  ;;  %v3304_v29 = vsel %vm1575_vm8, %v6393_v9, 0.0  ;;  %v3320_v22 = vmul.f32 %v6393_v9, %v6393_v9  ;;  %v1682_v5 = vld [vmem:[#allocation4 + $0x8] ss:$10 sm:$0xf] }
 0x2ae   :  { %v3305_v48 = vadd.f32 %v3304_v29, %v3303_v49  ;;  %v3257_v59 = vpop.f32.mrf.mxu2  ;;  %v1676_v49 = vld [vmem:[#allocation4 + $0x6] ss:$10 sm:$0xf] }
 0x2af   :  { %v3327_v12 = vsel %vm1575_vm8, %v3320_v22, 0.0  ;;  %v3223_v14 = vadd.f32 %v3222_v27, %v3188_v13  ;;  %v3292_v31 = vpop.f32.mrf.mxu3  ;;  %v3225_v34 = vpop.f32.mrf.mxu1  ;;  %v1677_v17 = vmax.f32 %v1674_v15, %v1676_v49  ;;  %v1685_v13 = vld [vmem:[#allocation4 + $0x9] ss:$10 sm:$0xf] }
 0x2b0   :  { %v3328_v40 = vadd.f32 %v3327_v12, %v3326_v30 }
 0x2b1   :  { %v3258_v19 = vadd.f32 %v3257_v59, %v3223_v14  ;;  %v1680_v61 = vmax.f32 %v1677_v17, %v1679_v58 }
 0x2b3   :  { %v6401_v57 = vadd.f32 %v3292_v31, %v3258_v19  ;;  %v1683_v27 = vmax.f32 %v1680_v61, %v1682_v5 }
 0x2b4   :  { %v3190_v20 = vpop.f32.mrf.mxu0 }
 0x2b5   :  { %v3191_v54 = vadd.f32 %v3190_v20, %v3156_v1  ;;  %v3306_v50 = vsel %vm1575_vm8, %v6401_v57, 0.0  ;;  %v3321_v62 = vmul.f32 %v6401_v57, %v6401_v57  ;;  %v1686_v33 = vmax.f32 %v1683_v27, %v1685_v13 }
 0x2b6   :  { %v3307_v42 = vadd.f32 %v3306_v50, %v3305_v48  ;;  %v3260_v11 = vpop.f32.mrf.mxu2 }
 0x2b7   :  { %v3329_v51 = vsel %vm1575_vm8, %v3321_v62, 0.0  ;;  %v3226_v53 = vadd.f32 %v3225_v34, %v3191_v54  ;;  %v3295_v2 = vpop.f32.mrf.mxu3  ;;  %v3228_v39 = vpop.f32.mrf.mxu1  ;;  %v1688_v63 = vsel %vm1687_vm2, %v1686_v33, -inf }
 0x2b8   :  { %v3330_v60 = vadd.f32 %v3329_v51, %v3328_v40  ;;  %v1689_v14 = vrot.slane %v1688_v63, 4 }
 0x2b9   :  { %v3261_v24 = vadd.f32 %v3260_v11, %v3226_v53 }
 0x2ba   :  { %v1690_v31 = vmax.f32 %v1688_v63, %v1689_v14 }
 0x2bb   :  { %v6410_v44 = vadd.f32 %v3295_v2, %v3261_v24 }
 0x2bc   :  { %v3193_v37 = vpop.f32.mrf.mxu0  ;;  %v1691_v20 = vrot.slane %v1690_v31, 2 }
 0x2bd   :  { %v3194_v52 = vadd.f32 %v3193_v37, %v3159_v28  ;;  %v3308_v21 = vsel %vm1575_vm8, %v6410_v44, 0.0  ;;  %v3322_v4 = vmul.f32 %v6410_v44, %v6410_v44 }
 0x2be   :  { %v3309_v55 = vadd.f32 %v3308_v21, %v3307_v42  ;;  %v3263_v30 = vpop.f32.mrf.mxu2  ;;  %v1692_v46 = vmax.f32 %v1690_v31, %v1691_v20 }
 0x2bf   :  { %v3331_v32 = vsel %vm1575_vm8, %v3322_v4, 0.0  ;;  %v3229_v35 = vadd.f32 %v3228_v39, %v3194_v52  ;;  %v3298_v23 = vpop.f32.mrf.mxu3 }
 0x2c0   :  { %v3332_v38 = vadd.f32 %v3331_v32, %v3330_v60  ;;  %v1693_v0 = vrot.slane %v1692_v46, 1 }
 0x2c1   :  { %v3264_v25 = vadd.f32 %v3263_v30, %v3229_v35 }
 0x2c2   :  { %v1694_v62 = vmax.f32 %v1692_v46, %v1693_v0 }
 0x2c3   :  { %v3299_v16 = vadd.f32 %v3298_v23, %v3264_v25 }
 0x2c4   :  { %v1695_v26 = vsub.f32 %v1686_v33, %v1694_v62 }
 0x2c5   :  { %v3310_v29 = vsel %vm1585_vm9, %v3299_v16, 0.0  ;;  %v3323_v22 = vmul.f32 %v3299_v16, %v3299_v16 }
 0x2c6   :  { %v3311_v48 = vadd.f32 %v3310_v29, %v3309_v55  ;;  %v1696_v3 = vmul.f32 1.442695, %v1695_v26 }
 0x2c7   :  { %v3333_v12 = vsel %vm1585_vm9, %v3323_v22, 0.0 }
 0x2c8   :  { %v3312_v40 = vrot.slane %v3311_v48, 4  ;;  %v3334_v59 = vadd.f32 %v3333_v12, %v3332_v38  ;;  %3708 = vpow2.f32 %v1696_v3 }
 0x2ca   :  { %v3313_v1 = vadd.f32 %v3312_v40, %v3311_v48  ;;  %v3335_v19 = vrot.slane %v3334_v59, 4 }
 0x2cc   :  { %v3314_v43 = vrot.slane %v3313_v1, 2  ;;  %v3336_v54 = vadd.f32 %v3335_v19, %v3334_v59 }
 0x2ce   :  { %v3315_v56 = vadd.f32 %v3314_v43, %v3313_v1  ;;  %v3337_v34 = vrot.slane %v3336_v54, 2  ;;  %v3709_v52 = vpop.eup %3708 }
 0x2cf   :  { %v1698_v47 = vsel %vm1687_vm2, %v3709_v52, 0.0 }
 0x2d0   :  { %v3316_v18 = vrot.slane %v3315_v56, 1  ;;  %v3338_v50 = vadd.f32 %v3337_v34, %v3336_v54  ;;  %v1699_v39 = vrot.slane %v1698_v47, 4 }
 0x2d2   :  { %v3317_v7 = vadd.f32 %v3316_v18, %v3315_v56  ;;  %v3339_v42 = vrot.slane %v3338_v50, 1  ;;  %v1700_v15 = vadd.f32 %v1699_v39, %v1698_v47 }
 0x2d4   :  { %v3340_v51 = vadd.f32 %v3339_v42, %v3338_v50  ;;  %v3341_v53 = vmul.f32 0.024390243, %v3317_v7 }
 0x2d6   :  { %v3342_v60 = vmul.f32 0.024390243, %v3340_v51  ;;  %v3343_v11 = vmul.f32 %v3341_v53, %v3341_v53  ;;  %v3345_v2 = vsub.f32 %v6378_v8, %v3341_v53  ;;  %v3346_v6 = vsub.f32 %v6382_v41, %v3341_v53 }
 0x2d7   :  { %v3347_v28 = vsub.f32 %v6393_v9, %v3341_v53  ;;  %v3348_v24 = vsub.f32 %v6401_v57, %v3341_v53  ;;  %v3349_v37 = vsub.f32 %v6410_v44, %v3341_v53  ;;  %v1701_v8 = vrot.slane %v1700_v15, 2 }
 0x2d8   :  { %v3344_v45 = vsub.f32 %v3342_v60, %v3343_v11 }
 0x2d9   :  { %v1702_v41 = vadd.f32 %v1701_v8, %v1700_v15 }
 0x2da   :  { %v3350_v36 = vadd.f32 1e-05, %v3344_v45 }
 0x2db   :  { %v1703_v9 = vrot.slane %v1702_v41, 1 }
 0x2dc   :  { %3710 = vrsqrt.f32 %v3350_v36  ;;  %vm3357_vm4 = vweird.f32 %v3350_v36 }
 0x2dd   :  { %v1704_v57 = vadd.f32 %v1703_v9, %v1702_v41 }
 0x2df   :  { %3712 = vrcp.f32 %v1704_v57  ;;  %v1716_v40 = vand.u32 2147483648, %v1704_v57  ;;  %v1714_v31 = vand.u32 2147483647, %v1704_v57  ;;  %vm1710_vm14 = vweird.f32 %v1704_v57 }
 0x2e1   :  { %v1717_v1 = vor.u32 1.1754944e-38, %v1716_v40  ;;  %vm1715_vm0 = vcmp.eq.f32.partialorder %v1714_v31, 8.507059e+37  ;;  %v3487_v40 = vld [vmem:[%s6656_s2 + $0x80] sm:$0xff]  ;;  %v3486_v31 = vld [vmem:[%s6656_s2 + $0x78] sm:$0xff] }
 0x2e2   :  { %v3711_v21 = vpop.eup %3710  ;;  %3511 = vmatpush.msrb.mxu0 %v3487_v40  ;;  %v3696_v40 = vld [vmem:[%s6656_s2 + $0x1eb] ss:$0 sm:$0xff] }
 0x2e3   :  { %v3352_v4 = vmul.f32 %v3711_v21, %v3350_v36  ;;  %vm3358_vm3 = vweird.f32 %v3711_v21 }
 0x2e4   :  { %vm3359_vm5 = vmor %vm3357_vm4, %vm3358_vm3  ;;  %3512 = vmatpush.msrb.mxu0 %v3486_v31 }
 0x2e5   :  { %v3353_v49 = vmul.f32 %v3711_v21, %v3352_v4  ;;  %v3713_v61 = vpop.eup %3712 }
 0x2e6   :  { %v1706_v33 = vmul.f32 %v3713_v61, %v1704_v57  ;;  %vm1711_vm13 = vweird.f32 %v3713_v61 }
 0x2e7   :  { %v3354_v55 = vmul.f32 0.5, %v3353_v49  ;;  %vm1712_vm15 = vmor %vm1710_vm14, %vm1711_vm13 }
 0x2e8   :  { %v1707_v12 = vsub.f32 1.0, %v1706_v33 }
 0x2e9   :  { %v3355_v17 = vsub.f32 1.5, %v3354_v55 }
 0x2ea   :  { %v1708_v59 = vmul.f32 %v3713_v61, %v1707_v12 }
 0x2eb   :  { %v3356_v44 = vmul.f32 %v3711_v21, %v3355_v17 }
 0x2ed   :  { %v3360_v32 = vsel %vm3359_vm5, %v3711_v21, %v3356_v44  ;;  %vm1727_vm5 = vcmask 1040896  }
 0x2ee   :  { %v3361_v35 = vmul.f32 %v3360_v32, %v3345_v2  ;;  %v3362_v58 = vmul.f32 %v3360_v32, %v3346_v6  ;;  %v3363_v30 = vmul.f32 %v3360_v32, %v3347_v28  ;;  %v3364_v23 = vmul.f32 %v3360_v32, %v3348_v24 }
 0x2ef   :  { %v3365_v38 = vmul.f32 %v3360_v32, %v3349_v37 }
 0x2f0   :  { %vm3366_vm6 = vcmp.gt.f32.partialorder %v3361_v35, 0.0  ;;  %vm3367_vm7 = vcmp.gt.f32.partialorder %v3362_v58, 0.0  ;;  %vm3368_vm10 = vcmp.gt.f32.partialorder %v3363_v30, 0.0  ;;  %vm3369_vm11 = vcmp.gt.f32.partialorder %v3364_v23, 0.0 }
 0x2f1   :  { %v3371_v25 = vmul.f32 %v6360_v10, %v3361_v35  ;;  %v3372_v5 = vmul.f32 %v6360_v10, %v3362_v58  ;;  %v3373_v27 = vmul.f32 %v6360_v10, %v3363_v30  ;;  %vm3370_vm12 = vcmp.gt.f32.partialorder %v3365_v38, 0.0 }
 0x2f2   :  { %v3374_v16 = vmul.f32 %v6360_v10, %v3364_v23  ;;  %v3375_v13 = vmul.f32 %v6360_v10, %v3365_v38  ;;  %v1709_v10 = vadd.f32 %v3713_v61, %v1708_v59  ;;  %v3503_v59 = vld [vmem:[%s6656_s2 + $0x100] sm:$0xff] }
 0x2f3   :  { %v3376_v29 = vsel %vm3366_vm6, %v3361_v35, %v3371_v25  ;;  %v3377_v22 = vsel %vm3367_vm7, %v3362_v58, %v3372_v5  ;;  %v3378_v48 = vsel %vm3368_vm10, %v3363_v30, %v3373_v27  ;;  %3531 = vmatpush.msrb.mxu1 %v3503_v59  ;;  %vm3637_vm7 = vcmask 261120  }
 0x2f4   :  { %v3379_v63 = vsel %vm3369_vm11, %v3364_v23, %v3374_v16  ;;  %3381 = vst.msk [vmem:[#allocation5] sm:$0xff] %vm1575_vm8, %v3376_v29  ;;  %v3380_v14 = vsel %vm3370_vm12, %v3365_v38, %v3375_v13  ;;  %v1713_v19 = vsel %vm1712_vm15, %v3713_v61, %v1709_v10  ;;  %v3502_v10 = vld [vmem:[%s6656_s2 + $0xf8] sm:$0xff]  ;;  %vm3661_vm10 = vcmask 1024  }
 0x2f5   :  { %3382 = vst.msk [vmem:[#allocation5 + $0x8] sm:$0xff] %vm1575_vm8, %v3377_v22  ;;  %v1718_v20 = vsel %vm1715_vm0, %v1717_v1, %v1713_v19  ;;  %v3485_v1 = vld [vmem:[%s6656_s2 + $0x70] sm:$0xff]  ;;  %3532 = vmatpush.msrb.mxu1 %v3502_v10 }
 0x2f6   :  { %3383 = vst.msk [vmem:[#allocation5 + $0x10] sm:$0xff] %vm1575_vm8, %v3378_v48  ;;  %v1719_v43 = vmul.f32 %v3709_v52, %v1718_v20  ;;  %v3501_v19 = vld [vmem:[%s6656_s2 + $0xf0] sm:$0xff]  ;;  %v3484_v20 = vld [vmem:[%s6656_s2 + $0x68] sm:$0xff]  ;;  %3513 = vmatpush.msrb.mxu0 %v3485_v1 }
 0x2f7   :  { %3384 = vst.msk [vmem:[#allocation5 + $0x18] sm:$0xff] %vm1575_vm8, %v3379_v63  ;;  %3533 = vmatpush.msrb.mxu1 %v3501_v19  ;;  %v3596_v19 = vld [vmem:[%s6656_s2 + $0x188] sm:$0xff] }
 0x2f8   :  { %3385 = vst.msk [vmem:[#allocation5 + $0x20] sm:$0xff] %vm1575_vm8, %v3380_v14  ;;  %v3667_v54 = vrot.slane %v1719_v43, 9  ;;  %3514 = vmatpush.msrb.mxu0 %v3484_v20  ;;  %v3635_v20 = vld [vmem:[%s6656_s2 + $0x1e0] sm:$0xff] }
 0x2f9   :  { %1720 = vst.msk [vmem:[#allocation10] sm:$0x1] %vm1585_vm9, %v1719_v43 }
 0x2fa   :  { %1729 = vst.sshfl [vmem:[#allocation1] sm:$0xff pattern:$0x73625140] %v1719_v43  ;;  %1724 = vrot.lane.b32.xlu2 %v3667_v54, %s3728_s17  ;;  %v3483_v54 = vld [vmem:[%s6656_s2 + $0x60] sm:$0xff] }
 0x2fb   :  { %3515 = vmatpush.msrb.mxu0 %v3483_v54  ;;  %v3698_v54 = vld [vmem:[%s6656_s2 + $0x1ed] ss:$0 sm:$0xff] }
 0x2fe   :  { %v3386_v46 = vld [vmem:[#allocation5] ss:$10 sm:$0xf]  ;;  %v3387_v56 = vld [vmem:[#allocation5 + $0x1] ss:$10 sm:$0xf] }
 0x2ff   :  { %v3388_v34 = vmax.f32 %v3386_v46, %v3387_v56  ;;  %v3389_v0 = vld [vmem:[#allocation5 + $0x2] ss:$10 sm:$0xf]  ;;  %v3391_v50 = vld [vmem:[#allocation5 + $0x3] ss:$10 sm:$0xf] }
 0x300   :  { %v3393_v7 = vld [vmem:[#allocation5 + $0x4] ss:$10 sm:$0xf]  ;;  %v3396_v51 = vld [vmem:[#allocation5 + $0x5] ss:$10 sm:$0xf] }
 0x301   :  { %v3390_v18 = vmax.f32 %v3388_v34, %v3389_v0  ;;  %v1731_v42 = vld [vmem:[#allocation1 + $0x1] ss:$4 sm:$0xff]  ;;  %v3399_v3 = vld [vmem:[#allocation5 + $0x6] ss:$10 sm:$0xf] }
 0x302   :  { %1734 = vst.sshfl [vmem:[#allocation1] sm:$0xff pattern:$0x73625140] %v1719_v43  ;;  %v3402_v11 = vld [vmem:[#allocation5 + $0x7] ss:$10 sm:$0xf] }
 0x303   :  { %v3392_v62 = vmax.f32 %v3390_v18, %v3391_v50  ;;  %1733 = vst.msk [vmem:[#allocation10 + $0x2] sm:$0x1] %vm1585_vm9, %v1731_v42  ;;  %v3405_v6 = vld [vmem:[#allocation5 + $0x8] ss:$10 sm:$0xf] }
 0x304   :  { %v3408_v45 = vld [vmem:[#allocation5 + $0x9] ss:$10 sm:$0xf] }
 0x305   :  { %v3394_v26 = vmax.f32 %v3392_v62, %v3393_v7  ;;  %v3500_v43 = vld [vmem:[%s6656_s2 + $0xe8] sm:$0xff]  ;;  %v3499_v46 = vld [vmem:[%s6656_s2 + $0xe0] sm:$0xff]  ;;  %v3482_v56 = vld [vmem:[%s6656_s2 + $0x58] sm:$0xff] }
 0x306   :  { %3534 = vmatpush.msrb.mxu1 %v3500_v43  ;;  %v3498_v34 = vld [vmem:[%s6656_s2 + $0xd8] sm:$0xff]  ;;  %v3481_v0 = vld [vmem:[%s6656_s2 + $0x50] sm:$0xff]  ;;  %3516 = vmatpush.msrb.mxu0 %v3482_v56  ;;  %v3480_v50 = vld [vmem:[%s6656_s2 + $0x48] sm:$0xff] }
 0x307   :  { %v3397_v53 = vmax.f32 %v3394_v26, %v3396_v51  ;;  %v3497_v18 = vld [vmem:[%s6656_s2 + $0xd0] sm:$0xff]  ;;  %v3496_v62 = vld [vmem:[%s6656_s2 + $0xc8] sm:$0xff]  ;;  %v3479_v42 = vld [vmem:[%s6656_s2 + $0x40] sm:$0xff] }
 0x308   :  { %3535 = vmatpush.msrb.mxu1 %v3499_v46  ;;  %3517 = vmatpush.msrb.mxu0 %v3481_v0  ;;  %v3495_v26 = vld [vmem:[%s6656_s2 + $0xc0] sm:$0xff]  ;;  %v3478_v51 = vld [vmem:[%s6656_s2 + $0x38] sm:$0xff]  ;;  %v3697_v43 = vld [vmem:[%s6656_s2 + $0x1ec] ss:$0 sm:$0xff] }
 0x309   :  { %v3400_v60 = vmax.f32 %v3397_v53, %v3399_v3  ;;  %v1736_v28 = vld [vmem:[#allocation1 + $0x1] ss:$4 sm:$0xff] }
 0x30a   :  { %v3668_v37 = vrot.slane %v1736_v28, 9  ;;  %3536 = vmatpush.msrb.mxu1 %v3498_v34  ;;  %3518 = vmatpush.msrb.mxu0 %v3480_v50  ;;  %v3494_v53 = vld [vmem:[%s6656_s2 + $0xb8] sm:$0xff]  ;;  %v3477_v3 = vld [vmem:[%s6656_s2 + $0x30] sm:$0xff]  ;;  %v3491_v28 = vld [vmem:[%s6656_s2 + $0xa0] sm:$0xff] }
 0x30b   :  { %v3403_v2 = vmax.f32 %v3400_v60, %v3402_v11  ;;  %v3493_v60 = vld [vmem:[%s6656_s2 + $0xb0] sm:$0xff]  ;;  %v3476_v11 = vld [vmem:[%s6656_s2 + $0x28] sm:$0xff] }
 0x30c   :  { %1739 = vrot.lane.b32.xlu0 %v3668_v37, %s3728_s17  ;;  %3537 = vmatpush.msrb.mxu1 %v3497_v18  ;;  %v3490_v37 = vld [vmem:[%s6656_s2 + $0x98] sm:$0xff]  ;;  %v3633_v50 = vld [vmem:[%s6656_s2 + $0x1d0] sm:$0xff] }
 0x30d   :  { %v3406_v24 = vmax.f32 %v3403_v2, %v3405_v6  ;;  %3519 = vmatpush.msrb.mxu0 %v3479_v42  ;;  %v3492_v2 = vld [vmem:[%s6656_s2 + $0xa8] sm:$0xff]  ;;  %v3475_v6 = vld [vmem:[%s6656_s2 + $0x20] sm:$0xff]  ;;  %v3634_v18 = vld [vmem:[%s6656_s2 + $0x1d8] sm:$0xff] }
 0x30e   :  { %3538 = vmatpush.msrb.mxu1 %v3496_v62  ;;  %v3632_v62 = vld [vmem:[%s6656_s2 + $0x1c8] sm:$0xff] }
 0x30f   :  { %v3409_v36 = vmax.f32 %v3406_v24, %v3408_v45  ;;  %3520 = vmatpush.msrb.mxu0 %v3478_v51  ;;  %v3474_v24 = vld [vmem:[%s6656_s2 + $0x18] sm:$0xff]  ;;  %v3473_v45 = vld [vmem:[%s6656_s2 + $0x10] sm:$0xff]  ;;  %v3700_v42 = vld [vmem:[%s6656_s2 + $0x1ef] ss:$0 sm:$0xff] }
 0x310   :  { %3539 = vmatpush.msrb.mxu1 %v3495_v26 }
 0x311   :  { %v3410_v52 = vsel %vm1687_vm2, %v3409_v36, -inf  ;;  %3521 = vmatpush.msrb.mxu0 %v3477_v3 }
 0x312   :  { %v3411_v47 = vrot.slane %v3410_v52, 4  ;;  %3540 = vmatpush.msrb.mxu1 %v3494_v53 }
 0x313   :  { %3522 = vmatpush.msrb.mxu0 %v3476_v11 }
 0x314   :  { %v3412_v39 = vmax.f32 %v3410_v52, %v3411_v47  ;;  %3541 = vmatpush.msrb.mxu1 %v3493_v60  ;;  %v3472_v52 = vld [vmem:[%s6656_s2 + $0x8] sm:$0xff]  ;;  %v3701_v60 = vld [vmem:[%s6656_s2 + $0x1f0] ss:$0 sm:$0xff] }
 0x315   :  { %3523 = vmatpush.msrb.mxu0 %v3475_v6  ;;  %v3488_v47 = vld [vmem:[%s6656_s2 + $0x88] sm:$0xff] }
 0x316   :  { %v3413_v15 = vrot.slane %v3412_v39, 2  ;;  %3542 = vmatpush.msrb.mxu1 %v3492_v2 }
 0x317   :  { %3524 = vmatpush.msrb.mxu0 %v3474_v24 }
 0x318   :  { %v3414_v21 = vmax.f32 %v3412_v39, %v3413_v15  ;;  %3543 = vmatpush.msrb.mxu1 %v3491_v28  ;;  %v3570_v39 = vld [vmem:[%s6656_s2 + $0x180] sm:$0xff]  ;;  %v3569_v15 = vld [vmem:[%s6656_s2 + $0x178] sm:$0xff] }
 0x319   :  { %3525 = vmatpush.msrb.mxu0 %v3473_v45  ;;  %3572 = vmatpush.msrb.mxu2 %v3570_v39 }
 0x31a   :  { %v3415_v4 = vrot.slane %v3414_v21, 1  ;;  %3544 = vmatpush.msrb.mxu1 %v3490_v37 }
 0x31b   :  { %3526 = vmatpush.msrb.mxu0 %v3472_v52  ;;  %3573 = vmatpush.msrb.mxu2 %v3569_v15 }
 0x31c   :  { %v3416_v8 = vmax.f32 %v3414_v21, %v3415_v4  ;;  %v3568_v21 = vld [vmem:[%s6656_s2 + $0x170] sm:$0xff]  ;;  %v3567_v4 = vld [vmem:[%s6656_s2 + $0x168] sm:$0xff] }
 0x31d   :  { %3574 = vmatpush.msrb.mxu2 %v3568_v21  ;;  %3653 = vmatpush.msra.mxu0 %v3635_v20 }
 0x31e   :  { %v3417_v49 = vsub.f32 %v3409_v36, %v3416_v8  ;;  %v3489_v36 = vld [vmem:[%s6656_s2 + $0x90] sm:$0xff] }
 0x31f   :  { %3545 = vmatpush.msrb.mxu1 %v3489_v36  ;;  %3575 = vmatpush.msrb.mxu2 %v3567_v4 }
 0x320   :  { %v3418_v41 = vmul.f32 1.442695, %v3417_v49  ;;  %v3566_v49 = vld [vmem:[%s6656_s2 + $0x160] sm:$0xff]  ;;  %3654 = vmatpush.msra.mxu0 %v3634_v18 }
 0x321   :  { %3546 = vmatpush.msrb.mxu1 %v3488_v47  ;;  %3576 = vmatpush.msrb.mxu2 %v3566_v49 }
 0x322   :  { %3714 = vpow2.f32 %v3418_v41  ;;  %v3565_v41 = vld [vmem:[%s6656_s2 + $0x158] sm:$0xff]  ;;  %3655 = vmatpush.msra.mxu0 %v3633_v50 }
 0x323   :  { %3577 = vmatpush.msrb.mxu2 %v3565_v41 }
 0x324   :  { %3656 = vmatpush.msra.mxu0 %v3632_v62 }
 0x328   :  { %v3715_v55 = vpop.eup %3714 }
 0x329   :  { %v3420_v9 = vsel %vm1687_vm2, %v3715_v55, 0.0 }
 0x32a   :  { %v3421_v17 = vrot.slane %v3420_v9, 4 }
 0x32c   :  { %v3422_v57 = vadd.f32 %v3421_v17, %v3420_v9  ;;  %v3563_v9 = vld [vmem:[%s6656_s2 + $0x148] sm:$0xff] }
 0x32e   :  { %v3423_v44 = vrot.slane %v3422_v57, 2 }
 0x330   :  { %v3424_v32 = vadd.f32 %v3423_v44, %v3422_v57  ;;  %v3562_v57 = vld [vmem:[%s6656_s2 + $0x140] sm:$0xff]  ;;  %v3561_v44 = vld [vmem:[%s6656_s2 + $0x138] sm:$0xff] }
 0x332   :  { %v3425_v35 = vrot.slane %v3424_v32, 1 }
 0x334   :  { %v3426_v58 = vadd.f32 %v3425_v35, %v3424_v32  ;;  %v3560_v32 = vld [vmem:[%s6656_s2 + $0x130] sm:$0xff]  ;;  %v3559_v35 = vld [vmem:[%s6656_s2 + $0x128] sm:$0xff] }
 0x336   :  { %3716 = vrcp.f32 %v3426_v58  ;;  %v3438_v61 = vand.u32 2147483648, %v3426_v58  ;;  %v3436_v5 = vand.u32 2147483647, %v3426_v58  ;;  %vm3432_vm3 = vweird.f32 %v3426_v58 }
 0x338   :  { %v3439_v16 = vor.u32 1.1754944e-38, %v3438_v61  ;;  %vm3437_vm2 = vcmp.eq.f32.partialorder %v3436_v5, 8.507059e+37  ;;  %v3555_v5 = vld [vmem:[%s6656_s2 + $0x108] sm:$0xff] }
 0x33c   :  { %v3717_v30 = vpop.eup %3716 }
 0x33d   :  { %v3428_v23 = vmul.f32 %v3717_v30, %v3426_v58  ;;  %vm3433_vm1 = vweird.f32 %v3717_v30 }
 0x33e   :  { %vm3434_vm4 = vmor %vm3432_vm3, %vm3433_vm1 }
 0x33f   :  { %v3429_v38 = vsub.f32 1.0, %v3428_v23  ;;  %v3557_v23 = vld [vmem:[%s6656_s2 + $0x118] sm:$0xff] }
 0x341   :  { %v3430_v25 = vmul.f32 %v3717_v30, %v3429_v38 }
 0x343   :  { %v3431_v27 = vadd.f32 %v3717_v30, %v3430_v25  ;;  %v3556_v25 = vld [vmem:[%s6656_s2 + $0x110] sm:$0xff] }
 0x345   :  { %v3435_v13 = vsel %vm3434_vm4, %v3717_v30, %v3431_v27  ;;  %v3558_v30 = vld [vmem:[%s6656_s2 + $0x120] sm:$0xff] }
 0x346   :  { %v3440_v33 = vsel %vm3437_vm2, %v3439_v16, %v3435_v13  ;;  %v3603_v27 = vld [vmem:[%s6656_s2 + $0x1c0] sm:$0xff]  ;;  %v3602_v16 = vld [vmem:[%s6656_s2 + $0x1b8] sm:$0xff]  ;;  %v3601_v13 = vld [vmem:[%s6656_s2 + $0x1b0] sm:$0xff] }
 0x347   :  { %v3441_v29 = vmul.f32 %v3715_v55, %v3440_v33  ;;  %v3564_v55 = vld [vmem:[%s6656_s2 + $0x150] sm:$0xff]  ;;  %3616 = vmatpush.msrb.mxu3 %v3603_v27  ;;  %v3600_v33 = vld [vmem:[%s6656_s2 + $0x1a8] sm:$0xff] }
 0x348   :  { %3578 = vmatpush.msrb.mxu2 %v3564_v55 }
 0x349   :  { %3450 = vst.sshfl [vmem:[#allocation1] sm:$0xff pattern:$0x73625140] %v3441_v29  ;;  %v3669_v22 = vrot.slane %v3441_v29, 9  ;;  %3617 = vmatpush.msrb.mxu3 %v3602_v16 }
 0x34a   :  { %3442 = vst.msk [vmem:[#allocation10 + $0x1] sm:$0x1] %vm1585_vm9, %v3441_v29  ;;  %3579 = vmatpush.msrb.mxu2 %v3563_v9 }
 0x34b   :  { %3446 = vrot.lane.b32.xlu1 %v3669_v22, %s3728_s17  ;;  %3618 = vmatpush.msrb.mxu3 %v3601_v13  ;;  %v3598_v22 = vld [vmem:[%s6656_s2 + $0x198] sm:$0xff] }
 0x34c   :  { %3580 = vmatpush.msrb.mxu2 %v3562_v57 }
 0x34d   :  { %3619 = vmatpush.msrb.mxu3 %v3600_v33 }
 0x34e   :  { %3581 = vmatpush.msrb.mxu2 %v3561_v44 }
 0x350   :  { %v3452_v48 = vld [vmem:[#allocation1 + $0x1] ss:$4 sm:$0xff]  ;;  %3582 = vmatpush.msrb.mxu2 %v3560_v32 }
 0x351   :  { %3455 = vst.sshfl [vmem:[#allocation1] sm:$0xff pattern:$0x73625140] %v3441_v29  ;;  %v3599_v29 = vld [vmem:[%s6656_s2 + $0x1a0] sm:$0xff] }
 0x352   :  { %3454 = vst.msk [vmem:[#allocation10 + $0x3] sm:$0x1] %vm1585_vm9, %v3452_v48  ;;  %3583 = vmatpush.msrb.mxu2 %v3559_v35  ;;  %3620 = vmatpush.msrb.mxu3 %v3599_v29  ;;  %v3597_v48 = vld [vmem:[%s6656_s2 + $0x190] sm:$0xff] }
 0x354   :  { %v1725_v12 = vpop.permute.xlu2 %1724  ;;  %3584 = vmatpush.msrb.mxu2 %v3558_v30  ;;  %3621 = vmatpush.msrb.mxu3 %v3598_v22 }
 0x355   :  { %1728 = vst.msk [vmem:[#allocation10] sm:$0x1] %vm1727_vm5, %v1725_v12 }
 0x356   :  { %3585 = vmatpush.msrb.mxu2 %v3557_v23  ;;  %3622 = vmatpush.msrb.mxu3 %v3597_v48 }
 0x358   :  { %v3457_v63 = vld [vmem:[#allocation1 + $0x1] ss:$4 sm:$0xff]  ;;  %3586 = vmatpush.msrb.mxu2 %v3556_v25  ;;  %3623 = vmatpush.msrb.mxu3 %v3596_v19 }
 0x359   :  { %v3670_v14 = vrot.slane %v3457_v63, 9  ;;  %v3695_v63 = vld [vmem:[%s6656_s2 + $0x1ea] ss:$0 sm:$0xff] }
 0x35a   :  { %3587 = vmatpush.msrb.mxu2 %v3555_v5 }
 0x35b   :  { %3460 = vrot.lane.b32.xlu2 %v3670_v14, %s3728_s17 }
 0x37e   :  { %v1740_v7 = vpop.permute.xlu0 %1739 }
 0x37f   :  { %1742 = vst.msk [vmem:[#allocation10 + $0x2] sm:$0x1] %vm1727_vm5, %v1740_v7  ;;  %v3699_v7 = vld [vmem:[%s6656_s2 + $0x1ee] ss:$0 sm:$0xff] }
 0x3b5   :  { %v3461_v8 = vpop.permute.xlu2 %3460 }
 0x3b6   :  { %3463 = vst.msk [vmem:[#allocation10 + $0x3] sm:$0x1] %vm1727_vm5, %v3461_v8 }
 0x3bd   :  { %v3447_v17 = vpop.permute.xlu1 %3446 }
 0x3be   :  { %3449 = vst.msk [vmem:[#allocation10 + $0x1] sm:$0x1] %vm1727_vm5, %v3447_v17 }
 0x3c5   :  { %v3471_v58 = vld [vmem:[#allocation10] sm:$0xf] }
 0x3c6   :  { %3506 = vst [vmem:[#allocation1] ss:$4 sm:$0xff] %v3471_v58 }
 0x3cd   :  { %v3507_v38 = vld.sshfl [vmem:[#allocation1] sm:$0xff pattern:$0x73625140]  ;;  %v3508_v61 = vld.sshfl [vmem:[#allocation1 + $0x8] sm:$0xff pattern:$0x73625140] }
 0x3ce   :  { %3527 = vmatmul.f32.vlgmr.msrb.gmra.mxu0 %v3507_v38  ;;  %3547 = vmatmul.f32.vlgmr.msrb.gmra.mxu1 %v3508_v61 }
 0x44b   :  { %v3528_v12 = vpop.f32.mrf.mxu0  ;;  %v3548_v59 = vpop.f32.mrf.mxu1 }
 0x44c   :  { %v3529_v14 = vadd.f32 %v3695_v63, %v3528_v12 }
 0x44e   :  { %v3549_v31 = vadd.f32 %v3548_v59, %v3529_v14 }
 0x450   :  { %vm3551_vm9 = vcmp.gt.f32.partialorder %v3549_v31, 0.0  ;;  %v3553_v10 = vmul.f32 %v3696_v40, %v3549_v31 }
 0x452   :  { %v3554_v1 = vsel %vm3551_vm9, %v3549_v31, %v3553_v10 }
 0x453   :  { %3588 = vmatmul.f32.vlgmr.msrb.gmra.mxu2 %v3554_v1 }
 0x4d6   :  { %v3589_v46 = vpop.f32.mrf.mxu2 }
 0x4d7   :  { %v3590_v56 = vadd.f32 %v3697_v43, %v3589_v46 }
 0x4d9   :  { %vm3592_vm6 = vcmp.gt.f32.partialorder %v3590_v56, 0.0  ;;  %v3594_v34 = vmul.f32 %v3698_v54, %v3590_v56 }
 0x4db   :  { %v3595_v0 = vsel %vm3592_vm6, %v3590_v56, %v3594_v34 }
 0x4dc   :  { %3671 = vmatmul.msk.f32.vlgmr.msrb.gmra.mxu3 %vm1575_vm8, %v3595_v0 }
 0x55f   :  { %v3625_v26 = vpop.f32.mrf.mxu3 }
 0x560   :  { %v3626_v51 = vadd.f32 %v3699_v7, %v3625_v26 }
 0x562   :  { %vm3628_vm8 = vcmp.gt.f32.partialorder %v3626_v51, 0.0  ;;  %v3630_v53 = vmul.f32 %v3700_v42, %v3626_v51 }
 0x564   :  { %v3631_v3 = vsel %vm3628_vm8, %v3626_v51, %v3630_v53 }
 0x565   :  { %3672 = vmatmul.msk.f32.vlgmr.msra.gmra.mxu0 %vm3637_vm7, %v3631_v3 }
 0x5e2   :  { %v3658_v11 = vpop.f32.mrf.mxu0 }
 0x5e3   :  { %v3659_v2 = vadd.f32 %v3701_v60, %v3658_v11 }
 0x5e5   :  { %3662 = vst.msk [vmem:[%s6658_s3] sm:$0x3] %vm3661_vm10, %v3659_v2 }

</bundles_post_ra>
